<compile_context>
chip_gen: v6e
topology: v6e:2x2x1
jax: 0.10.0
libtpu: 0.0.40
codegen_flags: <defaults>
</compile_context>

<pallas_src>
import functools

import jax
import jax.numpy as jnp
from jax.experimental import pallas as pl
from jax.experimental.pallas import tpu as pltpu


def _round_up(v, m):
    return ((v + m - 1) // m) * m


def mapping_kernel(x_ref, eps_ref, w_enc_ref, b_enc_ref,
                   w_dis_ref, b_dis_ref, w_cls_ref, b_cls_ref,
                   mus_ref, stds_ref, dis_ref, pred_ref, enc_ref,
                   *, train_G: bool):
    L = mus_ref.shape[-1]
    x = x_ref[...]

    # Fused encoder Linear(resSize, 2L) + LeakyReLU(0.2).  N = 2L fills the
    # 256-wide MXU on v6e/v7x; the split at column L is lane-aligned (free).
    h = jnp.dot(x, w_enc_ref[...], preferred_element_type=jnp.float32)
    h = h + b_enc_ref[...]
    h = jnp.maximum(h, 0.2 * h)                       # LeakyReLU: one VALU op

    mus = h[:, :L]
    stds_raw = h[:, L:]
    # sigmoid: exp + reciprocal on the EUP (approx=False keeps 2e-5 tolerance).
    stds = pl.reciprocal(1.0 + jnp.exp(-stds_raw), approx=False)

    # reparameter(mu, sigma) = eps * sigma + mu
    enc = eps_ref[...].astype(jnp.float32) * stds + mus

    # Discriminator Linear(L, 1): VPU multiply + lane reduction against a
    # (1, L) weight row instead of a 1-column MXU matmul.
    dis_in = mus if train_G else enc
    dis_col = (jnp.sum(dis_in * w_dis_ref[...], axis=-1, keepdims=True)
               + b_dis_ref[...])

    # Classifier + LogSoftmax(dim=1) on mus.
    logits = (jnp.dot(mus, w_cls_ref[...], preferred_element_type=jnp.float32)
              + b_cls_ref[...])
    z = logits - jnp.max(logits, axis=-1, keepdims=True)
    pred = z - jnp.log(jnp.sum(jnp.exp(z), axis=-1, keepdims=True))

    mus_ref[...] = mus.astype(mus_ref.dtype)
    stds_ref[...] = stds.astype(stds_ref.dtype)
    # Lane-dense store: broadcast the 1-wide dis column across 128 lanes so the
    # writeback is an unmasked vst; the wrapper slices column 0 back out.
    dis_ref[...] = jnp.broadcast_to(dis_col, dis_ref.shape).astype(dis_ref.dtype)
    pred_ref[...] = pred.astype(pred_ref.dtype)
    enc_ref[...] = enc.astype(enc_ref.dtype)


def _pick_vmem_limit(bytes_needed):
    # Leave headroom for Mosaic-internal scratch: never ask for the full
    # 64 MiB of a v7x TensorCore.  Derive from HW when the query is available.
    cap = 48 << 20
    try:
        cap = min(cap, int(pltpu.get_tpu_info().vmem_capacity_bytes) * 3 // 4)
    except Exception:
        pass
    return int(min(max(bytes_needed, 16 << 20), cap))


def mapping_forward(x, eps, params, *, train_G=False, tm=256, param_dtype=None):
    """x: (B, resSize), eps: (B, latenSize) ~ N(0,1).
    Returns (mus, stds, dis_out, pred, encoder_out); outputs are f32.
    param_dtype=jnp.bfloat16 enables the bf16-storage / f32-accumulate path."""
    w_enc, b_enc, w_dis, b_dis, w_cls, b_cls = params
    if param_dtype is not None:
        cast = lambda a: a.astype(param_dtype)
        x, eps = cast(x), cast(eps)
        w_enc, b_enc = cast(w_enc), cast(b_enc)
        w_dis, b_dis = cast(w_dis), cast(b_dis)
        w_cls, b_cls = cast(w_cls), cast(b_cls)

    B, res_size = x.shape
    two_l = w_enc.shape[1]
    L = two_l // 2
    nclass = w_cls.shape[1]
    DIS_PAD = 128                       # lane-dense dis_out slab width

    # Batch tile: big (fewer grid-step overheads, fills MXU rows) but always
    # leave >= 2 grid steps so v7x's two TensorCores both get work.
    tm = min(tm, B)
    if B > 8:
        tm = min(tm, max(8, _round_up(-(-B // 2), 8)))
        tm = max(8, (tm // 8) * 8)
    grid = (pl.cdiv(B, tm),)
    # NOTE: if B % tm != 0, padded tail rows run exp/log_softmax on garbage but
    # those rows are dropped on store (row-wise reductions never mix rows).

    itemsize = x.dtype.itemsize
    weights_bytes = sum(int(a.size) * a.dtype.itemsize
                        for a in (w_enc, b_enc, w_dis, b_dis, w_cls, b_cls))
    act_in_bytes = tm * (res_size + L) * itemsize
    act_out_bytes = tm * (3 * L + nclass + DIS_PAD) * 4
    vmem_limit = _pick_vmem_limit(2 * weights_bytes
                                  + 2 * (act_in_bytes + act_out_bytes)
                                  + (8 << 20))

    flops = 2 * B * (res_size * two_l + L + L * nclass)
    transcendentals = B * (L + nclass + 2)
    bytes_accessed = ((int(x.size) + int(eps.size)) * itemsize + weights_bytes
                      + B * (3 * L + nclass + DIS_PAD) * 4)

    def run(weight_buffer_count):
        def row(f):
            return pl.BlockSpec((tm, f), lambda i: (i, 0))

        def resident(shape):
            # Constant index map => never re-fetched; single-buffer to halve
            # the resident-weight VMEM footprint.
            if weight_buffer_count == 1:
                return pl.BlockSpec(shape, lambda i: (0, 0),
                                    pipeline_mode=pl.Buffered(1))
            return pl.BlockSpec(shape, lambda i: (0, 0))

        return pl.pallas_call(
            functools.partial(mapping_kernel, train_G=train_G),
            out_shape=(
                jax.ShapeDtypeStruct((B, L), jnp.float32),        # mus
                jax.ShapeDtypeStruct((B, L), jnp.float32),        # stds
                jax.ShapeDtypeStruct((B, DIS_PAD), jnp.float32),  # dis (padded)
                jax.ShapeDtypeStruct((B, nclass), jnp.float32),   # pred
                jax.ShapeDtypeStruct((B, L), jnp.float32),        # encoder_out
            ),
            grid_spec=pltpu.PrefetchScalarGridSpec(
                num_scalar_prefetch=0,
                grid=grid,
                in_specs=[
                    row(res_size),                          # x
                    row(L),                                 # eps
                    resident(w_enc.shape), resident(b_enc.shape),
                    resident(w_dis.shape), resident(b_dis.shape),
                    resident(w_cls.shape), resident(b_cls.shape),
                ],
                out_specs=[row(L), row(L), row(DIS_PAD), row(nclass), row(L)],
            ),
            compiler_params=pltpu.CompilerParams(
                dimension_semantics=("parallel",),
                vmem_limit_bytes=vmem_limit),
            cost_estimate=pl.CostEstimate(
                flops=flops,
                transcendentals=transcendentals,
                bytes_accessed=bytes_accessed),
        )(x, eps, w_enc, b_enc, w_dis, b_dis, w_cls, b_cls)

    try:
        mus, stds, dis_pad, pred, enc = run(1)   # single-buffered weights
    except Exception:
        mus, stds, dis_pad, pred, enc = run(2)   # fallback: default buffering
    return mus, stds, dis_pad[:, :1], pred, enc


def init_params(key, res_size, laten_size, nclass_seen):
    """weights_init: Linear weight ~ N(0, 0.02), bias = 0.  Weights are stored
    (in, out).  The encoder weight stays fused as (resSize, 2*latenSize); the
    discriminator weight is a (1, latenSize) row for the in-kernel VPU
    reduction."""
    k1, k2, k3 = jax.random.split(key, 3)
    w_enc = 0.02 * jax.random.normal(k1, (res_size, 2 * laten_size), jnp.float32)
    b_enc = jnp.zeros((1, 2 * laten_size), jnp.float32)
    w_dis = 0.02 * jax.random.normal(k2, (1, laten_size), jnp.float32)
    b_dis = jnp.zeros((1, 1), jnp.float32)
    w_cls = 0.02 * jax.random.normal(k3, (laten_size, nclass_seen), jnp.float32)
    b_cls = jnp.zeros((1, nclass_seen), jnp.float32)
    return (w_enc, b_enc, w_dis, b_dis, w_cls, b_cls)


def _ref_forward(x, eps, params, train_G=False):
    """Pure-JAX reference (f32, highest-precision matmuls)."""
    w_enc, b_enc, w_dis, b_dis, w_cls, b_cls = params
    hp = jax.lax.Precision.HIGHEST
    L = w_enc.shape[1] // 2
    laten = jnp.dot(x, w_enc, precision=hp) + b_enc
    laten = jnp.where(laten >= 0, laten, 0.2 * laten)
    mus, stds = laten[:, :L], jax.nn.sigmoid(laten[:, L:])
    enc = eps * stds + mus
    dis_in = mus if train_G else enc
    dis = jnp.dot(dis_in, w_dis.T, precision=hp) + b_dis
    pred = jax.nn.log_softmax(jnp.dot(mus, w_cls, precision=hp) + b_cls, axis=1)
    return mus, stds, dis, pred, enc


if __name__ == "__main__":
    # Small but lane/MXU-friendly shapes consistent with the module.
    B, RES_SIZE, LATEN_SIZE, NCLASS_SEEN = 256, 256, 128, 128

    key = jax.random.PRNGKey(0)
    k_x, k_eps, k_params = jax.random.split(key, 3)

    x = jax.random.normal(k_x, (B, RES_SIZE), jnp.float32)
    eps = jax.random.normal(k_eps, (B, LATEN_SIZE), jnp.float32)
    params = init_params(k_params, RES_SIZE, LATEN_SIZE, NCLASS_SEEN)

    names = ("mus", "stds", "dis_out", "pred", "encoder_out")
    shapes = ((B, LATEN_SIZE), (B, LATEN_SIZE), (B, 1),
              (B, NCLASS_SEEN), (B, LATEN_SIZE))

    # f32 path (reference tolerance), both train_G branches.
    for train_G in (False, True):
        outs = jax.block_until_ready(
            mapping_forward(x, eps, params, train_G=train_G))
        refs = _ref_forward(x, eps, params, train_G=train_G)
        for name, o, r, shp in zip(names, outs, refs, shapes):
            assert o.shape == shp, (name, o.shape, shp)
            assert jnp.allclose(o, r, atol=2e-5, rtol=2e-5), (name, train_G)

    # bf16 storage path (f32 accumulation): loose-tolerance smoke test.
    outs_bf16 = jax.block_until_ready(
        mapping_forward(x, eps, params, train_G=False,
                        param_dtype=jnp.bfloat16))
    refs = _ref_forward(x, eps, params, train_G=False)
    for name, o, r, shp in zip(names, outs_bf16, refs, shapes):
        assert o.shape == shp, ("bf16", name, o.shape, shp)
        assert jnp.allclose(o, r, atol=3e-2, rtol=3e-2), ("bf16", name)

    print("KERNEL_OK")
</pallas_src>

<mosaic_0001>
module attributes {stable_mosaic.version = 11 : i64} {
  func.func @mapping_kernel(%arg0: i32, %arg1: memref<128x256xf32, #tpu.memory_space<vmem>>, %arg2: memref<128x128xf32, #tpu.memory_space<vmem>>, %arg3: memref<256x256xf32, #tpu.memory_space<vmem>>, %arg4: memref<1x256xf32, #tpu.memory_space<vmem>>, %arg5: memref<1x128xf32, #tpu.memory_space<vmem>>, %arg6: memref<1x1xf32, #tpu.memory_space<vmem>>, %arg7: memref<128x128xf32, #tpu.memory_space<vmem>>, %arg8: memref<1x128xf32, #tpu.memory_space<vmem>>, %arg9: memref<128x128xf32, #tpu.memory_space<vmem>>, %arg10: memref<128x128xf32, #tpu.memory_space<vmem>>, %arg11: memref<128x128xf32, #tpu.memory_space<vmem>>, %arg12: memref<128x128xf32, #tpu.memory_space<vmem>>, %arg13: memref<128x128xf32, #tpu.memory_space<vmem>>) attributes {dimension_semantics = [#tpu.dimension_semantics<parallel>], iteration_bounds = array<i64: 2>, scalar_prefetch = 0 : i64, scratch_operands = 0 : i64, tpu.core_type = #tpu.core_type<tc>, window_params = [{transform_indices = @transform_0, window_bounds = array<i64: 128, 256>}, {transform_indices = @transform_1, window_bounds = array<i64: 128, 128>}, {pipeline_mode = #tpu.pipeline_mode<synchronous>, transform_indices = @transform_2, window_bounds = array<i64: 256, 256>}, {pipeline_mode = #tpu.pipeline_mode<synchronous>, transform_indices = @transform_3, window_bounds = array<i64: 1, 256>}, {pipeline_mode = #tpu.pipeline_mode<synchronous>, transform_indices = @transform_4, window_bounds = array<i64: 1, 128>}, {pipeline_mode = #tpu.pipeline_mode<synchronous>, transform_indices = @transform_5, window_bounds = array<i64: 1, 1>}, {pipeline_mode = #tpu.pipeline_mode<synchronous>, transform_indices = @transform_6, window_bounds = array<i64: 128, 128>}, {pipeline_mode = #tpu.pipeline_mode<synchronous>, transform_indices = @transform_7, window_bounds = array<i64: 1, 128>}, {transform_indices = @transform_8, window_bounds = array<i64: 128, 128>}, {transform_indices = @transform_9, window_bounds = array<i64: 128, 128>}, {transform_indices = @transform_10, window_bounds = array<i64: 128, 128>}, {transform_indices = @transform_11, window_bounds = array<i64: 128, 128>}, {transform_indices = @transform_12, window_bounds = array<i64: 128, 128>}]} {
    %c0 = arith.constant 0 : index
    %c0_0 = arith.constant 0 : index
    %0 = vector.load %arg1[%c0, %c0_0] : memref<128x256xf32, #tpu.memory_space<vmem>>, vector<128x256xf32>
    %c0_1 = arith.constant 0 : index
    %c0_2 = arith.constant 0 : index
    %1 = vector.load %arg3[%c0_1, %c0_2] : memref<256x256xf32, #tpu.memory_space<vmem>>, vector<256x256xf32>
    %cst = arith.constant dense<0.000000e+00> : vector<128x256xf32>
    %2 = tpu.matmul %0, %1, %cst {dimension_numbers = #tpu.dot_dimension_numbers<[1], [0], [0], [1], [0, 0, 1, 1], [], []>} : vector<128x256xf32>, vector<256x256xf32>, vector<128x256xf32> -> vector<128x256xf32>
    %c0_3 = arith.constant 0 : index
    %c0_4 = arith.constant 0 : index
    %3 = vector.load %arg4[%c0_3, %c0_4] : memref<1x256xf32, #tpu.memory_space<vmem>>, vector<1x256xf32>
    %4 = vector.broadcast %3 : vector<1x256xf32> to vector<128x256xf32>
    %5 = arith.addf %2, %4 : vector<128x256xf32>
    %cst_5 = arith.constant 2.000000e-01 : f32
    %6 = vector.broadcast %cst_5 : f32 to vector<128x256xf32>
    %7 = arith.mulf %6, %5 : vector<128x256xf32>
    %8 = arith.maximumf %5, %7 : vector<128x256xf32>
    %9 = vector.extract_strided_slice %8 {offsets = [0, 0], sizes = [128, 128], strides = [1, 1]} : vector<128x256xf32> to vector<128x128xf32>
    %10 = vector.extract_strided_slice %8 {offsets = [0, 128], sizes = [128, 128], strides = [1, 1]} : vector<128x256xf32> to vector<128x128xf32>
    %cst_6 = arith.constant 0.000000e+00 : f32
    %11 = vector.broadcast %cst_6 : f32 to vector<128x128xf32>
    %12 = arith.subf %11, %10 : vector<128x128xf32>
    %13 = math.exp %12 : vector<128x128xf32>
    %cst_7 = arith.constant 1.000000e+00 : f32
    %14 = vector.broadcast %cst_7 : f32 to vector<128x128xf32>
    %15 = arith.addf %14, %13 : vector<128x128xf32>
    %16 = tpu.reciprocal %15 : vector<128x128xf32> -> vector<128x128xf32>
    %c0_8 = arith.constant 0 : index
    %c0_9 = arith.constant 0 : index
    %17 = vector.load %arg2[%c0_8, %c0_9] : memref<128x128xf32, #tpu.memory_space<vmem>>, vector<128x128xf32>
    %18 = arith.mulf %17, %16 : vector<128x128xf32>
    %19 = arith.addf %18, %9 : vector<128x128xf32>
    %c0_10 = arith.constant 0 : index
    %c0_11 = arith.constant 0 : index
    %20 = vector.load %arg5[%c0_10, %c0_11] : memref<1x128xf32, #tpu.memory_space<vmem>>, vector<1x128xf32>
    %21 = vector.broadcast %20 : vector<1x128xf32> to vector<128x128xf32>
    %22 = arith.mulf %19, %21 : vector<128x128xf32>
    %cst_12 = arith.constant dense<0.000000e+00> : vector<128xf32>
    %23 = vector.multi_reduction <add>, %22, %cst_12 [1] : vector<128x128xf32> to vector<128xf32>
    %24 = vector.shape_cast %23 : vector<128xf32> to vector<128x1xf32>
    %c0_13 = arith.constant 0 : index
    %c0_14 = arith.constant 0 : index
    %25 = vector.load %arg6[%c0_13, %c0_14] : memref<1x1xf32, #tpu.memory_space<vmem>>, vector<1x1xf32>
    %26 = vector.broadcast %25 : vector<1x1xf32> to vector<128x1xf32>
    %27 = arith.addf %24, %26 : vector<128x1xf32>
    %c0_15 = arith.constant 0 : index
    %c0_16 = arith.constant 0 : index
    %28 = vector.load %arg7[%c0_15, %c0_16] : memref<128x128xf32, #tpu.memory_space<vmem>>, vector<128x128xf32>
    %cst_17 = arith.constant dense<0.000000e+00> : vector<128x128xf32>
    %29 = tpu.matmul %9, %28, %cst_17 {dimension_numbers = #tpu.dot_dimension_numbers<[1], [0], [0], [1], [0, 0, 1, 1], [], []>} : vector<128x128xf32>, vector<128x128xf32>, vector<128x128xf32> -> vector<128x128xf32>
    %c0_18 = arith.constant 0 : index
    %c0_19 = arith.constant 0 : index
    %30 = vector.load %arg8[%c0_18, %c0_19] : memref<1x128xf32, #tpu.memory_space<vmem>>, vector<1x128xf32>
    %31 = vector.broadcast %30 : vector<1x128xf32> to vector<128x128xf32>
    %32 = arith.addf %29, %31 : vector<128x128xf32>
    %cst_20 = arith.constant dense<0xFF800000> : vector<128xf32>
    %33 = vector.multi_reduction <maximumf>, %32, %cst_20 [1] : vector<128x128xf32> to vector<128xf32>
    %34 = vector.shape_cast %33 : vector<128xf32> to vector<128x1xf32>
    %35 = vector.broadcast %34 : vector<128x1xf32> to vector<128x128xf32>
    %36 = arith.subf %32, %35 : vector<128x128xf32>
    %37 = math.exp %36 : vector<128x128xf32>
    %cst_21 = arith.constant dense<0.000000e+00> : vector<128xf32>
    %38 = vector.multi_reduction <add>, %37, %cst_21 [1] : vector<128x128xf32> to vector<128xf32>
    %39 = vector.shape_cast %38 : vector<128xf32> to vector<128x1xf32>
    %40 = math.log %39 : vector<128x1xf32>
    %41 = vector.broadcast %40 : vector<128x1xf32> to vector<128x128xf32>
    %42 = arith.subf %36, %41 : vector<128x128xf32>
    %c0_22 = arith.constant 0 : index
    %c0_23 = arith.constant 0 : index
    %43 = vector.load %arg9[%c0_22, %c0_23] : memref<128x128xf32, #tpu.memory_space<vmem>>, vector<128x128xf32>
    tpu.vector_store %arg9[%c0_22, %c0_23], %9 {strides = array<i32>} : memref<128x128xf32, #tpu.memory_space<vmem>>, vector<128x128xf32>,
    %c0_24 = arith.constant 0 : index
    %c0_25 = arith.constant 0 : index
    %44 = vector.load %arg10[%c0_24, %c0_25] : memref<128x128xf32, #tpu.memory_space<vmem>>, vector<128x128xf32>
    tpu.vector_store %arg10[%c0_24, %c0_25], %16 {strides = array<i32>} : memref<128x128xf32, #tpu.memory_space<vmem>>, vector<128x128xf32>,
    %45 = vector.shape_cast %27 : vector<128x1xf32> to vector<128x1xf32>
    %46 = vector.broadcast %45 : vector<128x1xf32> to vector<128x128xf32>
    %c0_26 = arith.constant 0 : index
    %c0_27 = arith.constant 0 : index
    %47 = vector.load %arg11[%c0_26, %c0_27] : memref<128x128xf32, #tpu.memory_space<vmem>>, vector<128x128xf32>
    tpu.vector_store %arg11[%c0_26, %c0_27], %46 {strides = array<i32>} : memref<128x128xf32, #tpu.memory_space<vmem>>, vector<128x128xf32>,
    %c0_28 = arith.constant 0 : index
    %c0_29 = arith.constant 0 : index
    %48 = vector.load %arg12[%c0_28, %c0_29] : memref<128x128xf32, #tpu.memory_space<vmem>>, vector<128x128xf32>
    tpu.vector_store %arg12[%c0_28, %c0_29], %42 {strides = array<i32>} : memref<128x128xf32, #tpu.memory_space<vmem>>, vector<128x128xf32>,
    %c0_30 = arith.constant 0 : index
    %c0_31 = arith.constant 0 : index
    %49 = vector.load %arg13[%c0_30, %c0_31] : memref<128x128xf32, #tpu.memory_space<vmem>>, vector<128x128xf32>
    tpu.vector_store %arg13[%c0_30, %c0_31], %19 {strides = array<i32>} : memref<128x128xf32, #tpu.memory_space<vmem>>, vector<128x128xf32>,
    return
  }
  func.func @transform_0(%arg0: i32) -> (i32, i32) {
    %c0_i32 = arith.constant 0 : i32
    %c0_i32_0 = arith.constant 0 : i32
    return %arg0, %c0_i32 : i32, i32
  }
  func.func @transform_1(%arg0: i32) -> (i32, i32) {
    %c0_i32 = arith.constant 0 : i32
    %c0_i32_0 = arith.constant 0 : i32
    return %arg0, %c0_i32 : i32, i32
  }
  func.func @transform_2(%arg0: i32) -> (i32, i32) {
    %c0_i32 = arith.constant 0 : i32
    %c0_i32_0 = arith.constant 0 : i32
    %c0_i32_1 = arith.constant 0 : i32
    return %c0_i32, %c0_i32_0 : i32, i32
  }
  func.func @transform_3(%arg0: i32) -> (i32, i32) {
    %c0_i32 = arith.constant 0 : i32
    %c0_i32_0 = arith.constant 0 : i32
    %c0_i32_1 = arith.constant 0 : i32
    return %c0_i32, %c0_i32_0 : i32, i32
  }
  func.func @transform_4(%arg0: i32) -> (i32, i32) {
    %c0_i32 = arith.constant 0 : i32
    %c0_i32_0 = arith.constant 0 : i32
    %c0_i32_1 = arith.constant 0 : i32
    return %c0_i32, %c0_i32_0 : i32, i32
  }
  func.func @transform_5(%arg0: i32) -> (i32, i32) {
    %c0_i32 = arith.constant 0 : i32
    %c0_i32_0 = arith.constant 0 : i32
    %c0_i32_1 = arith.constant 0 : i32
    return %c0_i32, %c0_i32_0 : i32, i32
  }
  func.func @transform_6(%arg0: i32) -> (i32, i32) {
    %c0_i32 = arith.constant 0 : i32
    %c0_i32_0 = arith.constant 0 : i32
    %c0_i32_1 = arith.constant 0 : i32
    return %c0_i32, %c0_i32_0 : i32, i32
  }
  func.func @transform_7(%arg0: i32) -> (i32, i32) {
    %c0_i32 = arith.constant 0 : i32
    %c0_i32_0 = arith.constant 0 : i32
    %c0_i32_1 = arith.constant 0 : i32
    return %c0_i32, %c0_i32_0 : i32, i32
  }
  func.func @transform_8(%arg0: i32) -> (i32, i32) {
    %c0_i32 = arith.constant 0 : i32
    %c0_i32_0 = arith.constant 0 : i32
    return %arg0, %c0_i32 : i32, i32
  }
  func.func @transform_9(%arg0: i32) -> (i32, i32) {
    %c0_i32 = arith.constant 0 : i32
    %c0_i32_0 = arith.constant 0 : i32
    return %arg0, %c0_i32 : i32, i32
  }
  func.func @transform_10(%arg0: i32) -> (i32, i32) {
    %c0_i32 = arith.constant 0 : i32
    %c0_i32_0 = arith.constant 0 : i32
    return %arg0, %c0_i32 : i32, i32
  }
  func.func @transform_11(%arg0: i32) -> (i32, i32) {
    %c0_i32 = arith.constant 0 : i32
    %c0_i32_0 = arith.constant 0 : i32
    return %arg0, %c0_i32 : i32, i32
  }
  func.func @transform_12(%arg0: i32) -> (i32, i32) {
    %c0_i32 = arith.constant 0 : i32
    %c0_i32_0 = arith.constant 0 : i32
    return %arg0, %c0_i32 : i32, i32
  }
}

module attributes {stable_mosaic.version = 11 : i64} {
  func.func @mapping_kernel(%arg0: i32, %arg1: memref<128x256xf32, #tpu.memory_space<vmem>>, %arg2: memref<128x128xf32, #tpu.memory_space<vmem>>, %arg3: memref<256x256xf32, #tpu.memory_space<vmem>>, %arg4: memref<1x256xf32, #tpu.memory_space<vmem>>, %arg5: memref<1x128xf32, #tpu.memory_space<vmem>>, %arg6: memref<1x1xf32, #tpu.memory_space<vmem>>, %arg7: memref<128x128xf32, #tpu.memory_space<vmem>>, %arg8: memref<1x128xf32, #tpu.memory_space<vmem>>, %arg9: memref<128x128xf32, #tpu.memory_space<vmem>>, %arg10: memref<128x128xf32, #tpu.memory_space<vmem>>, %arg11: memref<128x128xf32, #tpu.memory_space<vmem>>, %arg12: memref<128x128xf32, #tpu.memory_space<vmem>>, %arg13: memref<128x128xf32, #tpu.memory_space<vmem>>) attributes {dimension_semantics = [#tpu.dimension_semantics<parallel>], iteration_bounds = array<i64: 2>, scalar_prefetch = 0 : i64, scratch_operands = 0 : i64, tpu.core_type = #tpu.core_type<tc>, window_params = [{transform_indices = @transform_0, window_bounds = array<i64: 128, 256>}, {transform_indices = @transform_1, window_bounds = array<i64: 128, 128>}, {pipeline_mode = #tpu.pipeline_mode<synchronous>, transform_indices = @transform_2, window_bounds = array<i64: 256, 256>}, {pipeline_mode = #tpu.pipeline_mode<synchronous>, transform_indices = @transform_3, window_bounds = array<i64: 1, 256>}, {pipeline_mode = #tpu.pipeline_mode<synchronous>, transform_indices = @transform_4, window_bounds = array<i64: 1, 128>}, {pipeline_mode = #tpu.pipeline_mode<synchronous>, transform_indices = @transform_5, window_bounds = array<i64: 1, 1>}, {pipeline_mode = #tpu.pipeline_mode<synchronous>, transform_indices = @transform_6, window_bounds = array<i64: 128, 128>}, {pipeline_mode = #tpu.pipeline_mode<synchronous>, transform_indices = @transform_7, window_bounds = array<i64: 1, 128>}, {transform_indices = @transform_8, window_bounds = array<i64: 128, 128>}, {transform_indices = @transform_9, window_bounds = array<i64: 128, 128>}, {transform_indices = @transform_10, window_bounds = array<i64: 128, 128>}, {transform_indices = @transform_11, window_bounds = array<i64: 128, 128>}, {transform_indices = @transform_12, window_bounds = array<i64: 128, 128>}]} {
    %c0 = arith.constant 0 : index
    %c0_0 = arith.constant 0 : index
    %0 = vector.load %arg1[%c0, %c0_0] : memref<128x256xf32, #tpu.memory_space<vmem>>, vector<128x256xf32>
    %c0_1 = arith.constant 0 : index
    %c0_2 = arith.constant 0 : index
    %1 = vector.load %arg3[%c0_1, %c0_2] : memref<256x256xf32, #tpu.memory_space<vmem>>, vector<256x256xf32>
    %cst = arith.constant dense<0.000000e+00> : vector<128x256xf32>
    %2 = tpu.matmul %0, %1, %cst {dimension_numbers = #tpu.dot_dimension_numbers<[1], [0], [0], [1], [0, 0, 1, 1], [], []>} : vector<128x256xf32>, vector<256x256xf32>, vector<128x256xf32> -> vector<128x256xf32>
    %c0_3 = arith.constant 0 : index
    %c0_4 = arith.constant 0 : index
    %3 = vector.load %arg4[%c0_3, %c0_4] : memref<1x256xf32, #tpu.memory_space<vmem>>, vector<1x256xf32>
    %4 = vector.broadcast %3 : vector<1x256xf32> to vector<128x256xf32>
    %5 = arith.addf %2, %4 : vector<128x256xf32>
    %cst_5 = arith.constant 2.000000e-01 : f32
    %6 = vector.broadcast %cst_5 : f32 to vector<128x256xf32>
    %7 = arith.mulf %6, %5 : vector<128x256xf32>
    %8 = arith.maximumf %5, %7 : vector<128x256xf32>
    %9 = vector.extract_strided_slice %8 {offsets = [0, 0], sizes = [128, 128], strides = [1, 1]} : vector<128x256xf32> to vector<128x128xf32>
    %10 = vector.extract_strided_slice %8 {offsets = [0, 128], sizes = [128, 128], strides = [1, 1]} : vector<128x256xf32> to vector<128x128xf32>
    %cst_6 = arith.constant 0.000000e+00 : f32
    %11 = vector.broadcast %cst_6 : f32 to vector<128x128xf32>
    %12 = arith.subf %11, %10 : vector<128x128xf32>
    %13 = math.exp %12 : vector<128x128xf32>
    %cst_7 = arith.constant 1.000000e+00 : f32
    %14 = vector.broadcast %cst_7 : f32 to vector<128x128xf32>
    %15 = arith.addf %14, %13 : vector<128x128xf32>
    %16 = tpu.reciprocal %15 : vector<128x128xf32> -> vector<128x128xf32>
    %c0_8 = arith.constant 0 : index
    %c0_9 = arith.constant 0 : index
    %17 = vector.load %arg2[%c0_8, %c0_9] : memref<128x128xf32, #tpu.memory_space<vmem>>, vector<128x128xf32>
    %18 = arith.mulf %17, %16 : vector<128x128xf32>
    %19 = arith.addf %18, %9 : vector<128x128xf32>
    %c0_10 = arith.constant 0 : index
    %c0_11 = arith.constant 0 : index
    %20 = vector.load %arg5[%c0_10, %c0_11] : memref<1x128xf32, #tpu.memory_space<vmem>>, vector<1x128xf32>
    %21 = vector.broadcast %20 : vector<1x128xf32> to vector<128x128xf32>
    %22 = arith.mulf %19, %21 : vector<128x128xf32>
    %cst_12 = arith.constant dense<0.000000e+00> : vector<128xf32>
    %23 = vector.multi_reduction <add>, %22, %cst_12 [1] : vector<128x128xf32> to vector<128xf32>
    %24 = vector.shape_cast %23 : vector<128xf32> to vector<128x1xf32>
    %c0_13 = arith.constant 0 : index
    %c0_14 = arith.constant 0 : index
    %25 = vector.load %arg6[%c0_13, %c0_14] : memref<1x1xf32, #tpu.memory_space<vmem>>, vector<1x1xf32>
    %26 = vector.broadcast %25 : vector<1x1xf32> to vector<128x1xf32>
    %27 = arith.addf %24, %26 : vector<128x1xf32>
    %c0_15 = arith.constant 0 : index
    %c0_16 = arith.constant 0 : index
    %28 = vector.load %arg7[%c0_15, %c0_16] : memref<128x128xf32, #tpu.memory_space<vmem>>, vector<128x128xf32>
    %cst_17 = arith.constant dense<0.000000e+00> : vector<128x128xf32>
    %29 = tpu.matmul %9, %28, %cst_17 {dimension_numbers = #tpu.dot_dimension_numbers<[1], [0], [0], [1], [0, 0, 1, 1], [], []>} : vector<128x128xf32>, vector<128x128xf32>, vector<128x128xf32> -> vector<128x128xf32>
    %c0_18 = arith.constant 0 : index
    %c0_19 = arith.constant 0 : index
    %30 = vector.load %arg8[%c0_18, %c0_19] : memref<1x128xf32, #tpu.memory_space<vmem>>, vector<1x128xf32>
    %31 = vector.broadcast %30 : vector<1x128xf32> to vector<128x128xf32>
    %32 = arith.addf %29, %31 : vector<128x128xf32>
    %cst_20 = arith.constant dense<0xFF800000> : vector<128xf32>
    %33 = vector.multi_reduction <maximumf>, %32, %cst_20 [1] : vector<128x128xf32> to vector<128xf32>
    %34 = vector.shape_cast %33 : vector<128xf32> to vector<128x1xf32>
    %35 = vector.broadcast %34 : vector<128x1xf32> to vector<128x128xf32>
    %36 = arith.subf %32, %35 : vector<128x128xf32>
    %37 = math.exp %36 : vector<128x128xf32>
    %cst_21 = arith.constant dense<0.000000e+00> : vector<128xf32>
    %38 = vector.multi_reduction <add>, %37, %cst_21 [1] : vector<128x128xf32> to vector<128xf32>
    %39 = vector.shape_cast %38 : vector<128xf32> to vector<128x1xf32>
    %40 = math.log %39 : vector<128x1xf32>
    %41 = vector.broadcast %40 : vector<128x1xf32> to vector<128x128xf32>
    %42 = arith.subf %36, %41 : vector<128x128xf32>
    %c0_22 = arith.constant 0 : index
    %c0_23 = arith.constant 0 : index
    %43 = vector.load %arg9[%c0_22, %c0_23] : memref<128x128xf32, #tpu.memory_space<vmem>>, vector<128x128xf32>
    tpu.vector_store %arg9[%c0_22, %c0_23], %9 {strides = array<i32>} : memref<128x128xf32, #tpu.memory_space<vmem>>, vector<128x128xf32>,
    %c0_24 = arith.constant 0 : index
    %c0_25 = arith.constant 0 : index
    %44 = vector.load %arg10[%c0_24, %c0_25] : memref<128x128xf32, #tpu.memory_space<vmem>>, vector<128x128xf32>
    tpu.vector_store %arg10[%c0_24, %c0_25], %16 {strides = array<i32>} : memref<128x128xf32, #tpu.memory_space<vmem>>, vector<128x128xf32>,
    %45 = vector.shape_cast %27 : vector<128x1xf32> to vector<128x1xf32>
    %46 = vector.broadcast %45 : vector<128x1xf32> to vector<128x128xf32>
    %c0_26 = arith.constant 0 : index
    %c0_27 = arith.constant 0 : index
    %47 = vector.load %arg11[%c0_26, %c0_27] : memref<128x128xf32, #tpu.memory_space<vmem>>, vector<128x128xf32>
    tpu.vector_store %arg11[%c0_26, %c0_27], %46 {strides = array<i32>} : memref<128x128xf32, #tpu.memory_space<vmem>>, vector<128x128xf32>,
    %c0_28 = arith.constant 0 : index
    %c0_29 = arith.constant 0 : index
    %48 = vector.load %arg12[%c0_28, %c0_29] : memref<128x128xf32, #tpu.memory_space<vmem>>, vector<128x128xf32>
    tpu.vector_store %arg12[%c0_28, %c0_29], %42 {strides = array<i32>} : memref<128x128xf32, #tpu.memory_space<vmem>>, vector<128x128xf32>,
    %c0_30 = arith.constant 0 : index
    %c0_31 = arith.constant 0 : index
    %49 = vector.load %arg13[%c0_30, %c0_31] : memref<128x128xf32, #tpu.memory_space<vmem>>, vector<128x128xf32>
    tpu.vector_store %arg13[%c0_30, %c0_31], %19 {strides = array<i32>} : memref<128x128xf32, #tpu.memory_space<vmem>>, vector<128x128xf32>,
    return
  }
  func.func @transform_0(%arg0: i32) -> (i32, i32) {
    %c0_i32 = arith.constant 0 : i32
    %c0_i32_0 = arith.constant 0 : i32
    return %arg0, %c0_i32 : i32, i32
  }
  func.func @transform_1(%arg0: i32) -> (i32, i32) {
    %c0_i32 = arith.constant 0 : i32
    %c0_i32_0 = arith.constant 0 : i32
    return %arg0, %c0_i32 : i32, i32
  }
  func.func @transform_2(%arg0: i32) -> (i32, i32) {
    %c0_i32 = arith.constant 0 : i32
    %c0_i32_0 = arith.constant 0 : i32
    %c0_i32_1 = arith.constant 0 : i32
    return %c0_i32, %c0_i32_0 : i32, i32
  }
  func.func @transform_3(%arg0: i32) -> (i32, i32) {
    %c0_i32 = arith.constant 0 : i32
    %c0_i32_0 = arith.constant 0 : i32
    %c0_i32_1 = arith.constant 0 : i32
    return %c0_i32, %c0_i32_0 : i32, i32
  }
  func.func @transform_4(%arg0: i32) -> (i32, i32) {
    %c0_i32 = arith.constant 0 : i32
    %c0_i32_0 = arith.constant 0 : i32
    %c0_i32_1 = arith.constant 0 : i32
    return %c0_i32, %c0_i32_0 : i32, i32
  }
  func.func @transform_5(%arg0: i32) -> (i32, i32) {
    %c0_i32 = arith.constant 0 : i32
    %c0_i32_0 = arith.constant 0 : i32
    %c0_i32_1 = arith.constant 0 : i32
    return %c0_i32, %c0_i32_0 : i32, i32
  }
  func.func @transform_6(%arg0: i32) -> (i32, i32) {
    %c0_i32 = arith.constant 0 : i32
    %c0_i32_0 = arith.constant 0 : i32
    %c0_i32_1 = arith.constant 0 : i32
    return %c0_i32, %c0_i32_0 : i32, i32
  }
  func.func @transform_7(%arg0: i32) -> (i32, i32) {
    %c0_i32 = arith.constant 0 : i32
    %c0_i32_0 = arith.constant 0 : i32
    %c0_i32_1 = arith.constant 0 : i32
    return %c0_i32, %c0_i32_0 : i32, i32
  }
  func.func @transform_8(%arg0: i32) -> (i32, i32) {
    %c0_i32 = arith.constant 0 : i32
    %c0_i32_0 = arith.constant 0 : i32
    return %arg0, %c0_i32 : i32, i32
  }
  func.func @transform_9(%arg0: i32) -> (i32, i32) {
    %c0_i32 = arith.constant 0 : i32
    %c0_i32_0 = arith.constant 0 : i32
    return %arg0, %c0_i32 : i32, i32
  }
  func.func @transform_10(%arg0: i32) -> (i32, i32) {
    %c0_i32 = arith.constant 0 : i32
    %c0_i32_0 = arith.constant 0 : i32
    return %arg0, %c0_i32 : i32, i32
  }
  func.func @transform_11(%arg0: i32) -> (i32, i32) {
    %c0_i32 = arith.constant 0 : i32
    %c0_i32_0 = arith.constant 0 : i32
    return %arg0, %c0_i32 : i32, i32
  }
  func.func @transform_12(%arg0: i32) -> (i32, i32) {
    %c0_i32 = arith.constant 0 : i32
    %c0_i32_0 = arith.constant 0 : i32
    return %arg0, %c0_i32 : i32, i32
  }
}

</mosaic_0001>

<bundles_post_ra>
// kernel: tpu_custom_call.1
= control target key start
LH: loop header
LB: loop body
LE: loop exit
PB: predicated region body
PF: predicated region fallthrough
CT: control target
= control target key end

     0   :  { %s3510_s0 = inlined_call_operand.hbm [shape: f32[256,256], index: 0, kind: input, shape index: {}]   ;;  %s3511_s1 = inlined_call_operand.hbm [shape: f32[256,128], index: 1, kind: input, shape index: {}]   ;;  %s3512_s2 = inlined_call_operand.hbm [shape: f32[256,256], index: 2, kind: input, shape index: {}]   ;;  %s3513_s3 = inlined_call_operand.vmem [shape: f32[1,256], index: 3, kind: input, shape index: {}]   ;;  %s3514_s4 = inlined_call_operand.vmem [shape: f32[1,128], index: 4, kind: input, shape index: {}]   ;;  %s3515_s5 = inlined_call_operand.<no memory space> [shape: f32[1,1], index: 5, kind: input, shape index: {}]   ;;  %s3516_s6 = inlined_call_operand.hbm [shape: f32[128,128], index: 6, kind: input, shape index: {}]   ;;  %s3517_s7 = inlined_call_operand.vmem [shape: f32[1,128], index: 7, kind: input, shape index: {}]   ;;  %s3518_s8 = inlined_call_operand.hbm [shape: f32[256,128], index: 8, kind: output, shape index: {0}]   ;;  %s3519_s9 = inlined_call_operand.hbm [shape: f32[256,128], index: 9, kind: output, shape index: {1}]   ;;  %s3520_s10 = inlined_call_operand.hbm [shape: f32[256,128], index: 10, kind: output, shape index: {2}]   ;;  %s3521_s11 = inlined_call_operand.hbm [shape: f32[256,128], index: 11, kind: output, shape index: {3}]   ;;  %s3522_s12 = inlined_call_operand.hbm [shape: f32[256,128], index: 12, kind: output, shape index: {4}]  }
   0x1   :  { %3537 = sst [smem:[#allocation30_spill]] %s3510_s0  ;;  %v18_v0 = vstv %s3515_s5 }
   0x2   :  { %3538 = sst [smem:[#allocation31_spill]] %s3512_s2  ;;  %19 = vst [vmem:[#allocation2] sm:$0x1] %v18_v0 }
   0x3   :  { %3539 = sst [smem:[#allocation32_spill]] %s3516_s6 }
   0x4   :  { %3540 = sst [smem:[#allocation33_spill]] %s3522_s12 }
   0x5   :  { %20 = vsyncpa [#allocation4], 0 }
   0x6   :  { %22 = vsyncpa [#allocation4 + $0x1], 0 }
   0x7   :  { %23 = vsyncpa [#allocation7], 0 }
   0x8   :  { %25 = vsyncpa [#allocation7 + $0x1], 0 }
   0x9   :  { %26 = vsyncpa [#allocation10], 0 }
   0xa   :  { %27 = vsyncpa [#allocation5], 0 }
   0xb   :  { %29 = vsyncpa [#allocation5 + $0x1], 0 }
   0xc   :  { %30 = vsyncpa [#allocation13], 0 }
   0xd   :  { %32 = vsyncpa [#allocation13 + $0x1], 0 }
   0xe   :  { %33 = vsyncpa [#allocation16], 0 }
   0xf   :  { %35 = vsyncpa [#allocation16 + $0x1], 0  ;;  %s2657_s23 = smov 0   ;;  %s2659_s24 = smov 0  }
  0x10   :  { %s2661_s25 = smov 0   ;;  %s2663_s26 = smov 0  }
  0x11 LB: > { %3541 = sst [smem:[#allocation25_spill]] %s2559_s23  ;;  %s2678_s5 = sadd.s32 4294967295, %s2571_s26   ;;  %s2571_s26 = sphi %s2663_s26, %s3573_s26   ;;  %s2567_s25 = sphi %s2661_s25, %s3575_s25   ;;  %s2563_s24 = sphi %s2659_s24, %s3577_s24   ;;  %s2559_s23 = sphi %s2657_s23, %s3576_s23  }
  0x12   : > { %3542 = sst [smem:[#allocation26_spill]] %s2567_s25  ;;  %s3523_s27 = sadd.s32 4294967294, %s2571_s26  }
  0x13   : > { %p61_p0 = scmp.ne.s32.totalorder %s2563_s24, %s2559_s23  ;;  %p3531_p1 = scmp.eq.s32.totalorder %s2678_s5, 0 }
  0x14   : > { %p237_p2 = scmp.eq.s32.totalorder %s2678_s5, 1  ;;  %p243_p3 = scmp.eq.s32.totalorder %s3523_s27, 1 }
  0x15   : > { %p2689_p4 = por %p3531_p1, %p61_p0  ;;  %p1909_p5 = scmp.ge.s32.totalorder %s2571_s26, 1 }
  0x16   : > { %p2694_p6 = por %p243_p3, %p61_p0  ;;  %p354_p7 = scmp.lt.s32.totalorder %s2571_s26, 3 }
  0x17   : > { %s3543_s28 = scalar_select %p2689_p4, 1, 0 }
  0x18   : > { %s3544_s29 = scalar_select %p2694_p6, 1, 0 }
  0x19   : > { %p2699_p8 = pnand %p1909_p5, %p354_p7  ;;  %s2573_s13 = smov [#allocation8]  }
  0x1a   : > { %3545 = sst [smem:[#allocation27_spill]] %s3544_s29  ;;  %s366_s14 = sshll.u32 %s2573_s13, 4  ;;  %s367_s14 = int_to_ptr.vmem [resolvable:$true] %s366_s14 }
  0x1b   : > { %p2068_p9 = pneg %p2699_p8  ;;  %s2574_s16 = smov [#allocation9]  }
  0x1c   : > { %s388_s17 = sshll.u32 %s2574_s16, 4  ;;  %s2286_s18 = scalar_lea.vmem %s367_s14, 8192  ;;  %s389_s17 = int_to_ptr.vmem [resolvable:$true] %s388_s17 }
  0x1d   : > { %p2708_p11 = pnand %p2068_p9, %p3531_p1  ;;  %p2287_p13 = scmp.ne.s32.totalorder %s367_s14, %s2286_s18 }
  0x1e   : > { %p2294_p5 = scmp.lt.s32.totalorder %s367_s14, %s367_s14  ;;  %p2295_p7 = scmp.lt.s32.totalorder %s2286_s18, %s2286_s18 }
  0x1f   : > { %p2277_p12 = pneg %p2708_p11 }
  0x20   : > { %p2296_p10 = por %p2295_p7, %p2294_p5 }
  0x21   : > { %p2289_p0 = pnand %p2287_p13, %p2277_p12 }
  0x23   : > { %p2290_p3 = pneg %p2289_p0 }
  0x25   : > { %p2297_p9 = pnand %p2296_p10, %p2290_p3 }
  0x27   : > { %2300 = shalt.err (!%p2297_p9)
}
  0x28   : > { %s3524_s19 = smov 256   ;;  %s3527_s20 = smov 16  }
  0x29   : > { %s3548_s2 = sld [smem:[#allocation31_spill]]  ;;  %s2312_s13 = scalar_lea.vmem %s389_s17, 2048 }
  0x2a   : > { %p2313_p13 = scmp.ne.s32.totalorder %s389_s17, %s2312_s13  ;;  %p2320_p10 = scmp.lt.s32.totalorder %s389_s17, %s389_s17 }
  0x2b   : > { %p2321_p3 = scmp.lt.s32.totalorder %s2312_s13, %s2312_s13 }
  0x2c   : > { %p2315_p0 = pnand %p2313_p13, %p2277_p12 }
  0x2d   : > { %p2322_p7 = por %p2321_p3, %p2320_p10 }
  0x2e   : > { %p2316_p5 = pneg %p2315_p0 }
  0x2f   : > { %2071 = dma.hbm_to_vmem [thread:$0]  (!%p2708_p11), %s3548_s2, 8192, %s367_s14, [#allocation7], %s3524_s19, %s3524_s19, %s3527_s20  }
  0x30   : > { %p2323_p9 = pnand %p2322_p7, %p2316_p5 }
  0x32   : > { %2326 = shalt.err (!%p2323_p9)
}
  0x33   : > { %s3525_s16 = smov 128   ;;  %s3526_s14 = smov 8  }
  0x34   : > { %s3549_s6 = sld [smem:[#allocation32_spill]]  ;;  %s2737_s22 = sadd.s32 1, %s2571_s26  }
  0x35   : > { %3550 = sst [smem:[#allocation28_spill]] %s2737_s22  ;;  %s45_s13 = ssub.s32 %s2571_s26, %s2737_s22 }
  0x36   : > { %p46_p12 = scmp.eq.s32.totalorder %s45_s13, 0  ;;  %s48_s27 = sadd.s32 1, %s2567_s25 }
  0x37   : > { %p55_p13 = scmp.ne.s32.totalorder %s2567_s25, %s2563_s24  ;;  %p56_p0 = scmp.eq.s32.totalorder %s2571_s26, 0 }
  0x38   : > { %s2746_s19 = scalar_select %p46_p12, %s2567_s25, %s48_s27  }
  0x39   : > { %p57_p5 = por %p56_p0, %p55_p13  ;;  %p2750_p10 = por %p237_p2, %p55_p13 }
  0x3a   : > { %2074 = dma.hbm_to_vmem [thread:$0]  (!%p2708_p11), %s3549_s6, 2048, %s389_s17, [#allocation10], %s3525_s16, %s3525_s16, %s3526_s14  }
  0x3b   : > { %3551 = sst [smem:[#allocation29_spill]] %s2746_s19  ;;  %p2100_p3 = scmp.lt.s32.totalorder %s2571_s26, 2 }
  0x3c   : > { %s3552_s15 = scalar_select %p2750_p10, 1, 0 }
  0x3d   : > { %s2756_s18 = sand.u32 1, %s2567_s25   ;;  %s1951_s21 = sshll.u32 %s2571_s26, 12 }
  0x3e   : > { %s1913_s17 = sshll.u32 %s2756_s18, 8  ;;  %s3553_s0 = sld [smem:[#allocation30_spill]] }
  0x3f   : > { %s409_s27 = scalar_lea.vmem [#allocation3], %s1913_s17  ;;  %p2767_p2 = pnand %p2100_p3, %p57_p5 }
  0x40   : > { %s417_s20 = sshll.u32 %s409_s27, 4  ;;  %s406_s25 = scalar_lea.sflag [#allocation4], %s2756_s18  ;;  %s2765_s20 = int_to_ptr.vmem [resolvable:$true] %s417_s20 }
  0x41   : > { %p2329_p7 = pneg %p2767_p2 }
  0x44   : > { %s2763_s14 = scalar_lea.hbm %s3553_s0, %s1951_s21  ;;  %s2332_s21 = scalar_lea.hbm %s3553_s0, 8192 }
  0x45   : > { %s2327_s22 = scalar_lea.hbm %s2763_s14, 4096  ;;  %p2333_p13 = scmp.lt.s32.totalorder %s2763_s14, %s3553_s0 }
  0x46   : > { %p2328_p11 = scmp.ne.s32.totalorder %s2763_s14, %s2327_s22  ;;  %p2334_p0 = scmp.lt.s32.totalorder %s2332_s21, %s2327_s22 }
  0x48   : > { %p2330_p9 = pnand %p2329_p7, %p2328_p11  ;;  %p2335_p5 = por %p2334_p0, %p2333_p13 }
  0x4a   : > { %p2331_p12 = pneg %p2330_p9 }
  0x4c   : > { %p2336_p3 = pnand %p2335_p5, %p2331_p12 }
  0x4e   : > { %2339 = shalt.err (!%p2336_p3)
}
  0x4f   : > { %s2340_s6 = scalar_lea.vmem %s2765_s20, 4096  ;;  %s2579_s16 = smov [#allocation3]  }
  0x50   : > { %p2341_p1 = scmp.ne.s32.totalorder %s2765_s20, %s2340_s6  ;;  %s2345_s17 = sshll.u32 %s2579_s16, 4  ;;  %s2346_s17 = int_to_ptr.vmem [resolvable:$false] %s2345_s17 }
  0x51   : > { %s2347_s19 = scalar_lea.vmem %s2346_s17, 8192  ;;  %p2348_p6 = scmp.lt.s32.totalorder %s2765_s20, %s2346_s17 }
  0x52   : > { %p2343_p11 = pnand %p2341_p1, %p2329_p7  ;;  %p2349_p10 = scmp.lt.s32.totalorder %s2347_s19, %s2340_s6 }
  0x54   : > { %p2344_p9 = pneg %p2343_p11  ;;  %p2350_p4 = por %p2349_p10, %p2348_p6 }
  0x56   : > { %p2351_p13 = pnand %p2350_p4, %p2344_p9 }
  0x58   : > { %2354 = shalt.err (!%p2351_p13)
}
  0x59   : > { %s3555_s22 = smov 16   ;;  %s3556_s21 = smov 256  }
  0x5a   : > { %2078 = dma.hbm_to_vmem [thread:$0]  (!%p2767_p2), %s2763_s14, 4096, %s2765_s20, %s406_s25, %s3556_s21, %s3556_s21, %s3555_s22  }
  0x5b   : > { %s1952_s13 = sshll.u32 %s2571_s26, 11  ;;  %s3557_s16 = sshll.u32 %s2756_s18, 7 }
  0x5c   : > { %s2807_s19 = scalar_lea.hbm %s3511_s1, %s1952_s13  ;;  %s431_s17 = scalar_lea.vmem [#allocation6], %s3557_s16 }
  0x5d   : > { %s438_s0 = sshll.u32 %s431_s17, 4  ;;  %s3558_s29 = sand.u32 1, %s2571_s26   ;;  %s2811_s0 = int_to_ptr.vmem [resolvable:$true] %s438_s0 }
  0x5e   : > { %s428_s23 = scalar_lea.sflag [#allocation7], %s3558_s29  ;;  %s2355_s12 = scalar_lea.hbm %s2807_s19, 2048 }
  0x5f   : > { %p2356_p1 = scmp.ne.s32.totalorder %s2807_s19, %s2355_s12  ;;  %s2360_s14 = scalar_lea.hbm %s3511_s1, 4096 }
  0x60   : > { %p2361_p10 = scmp.lt.s32.totalorder %s2807_s19, %s3511_s1  ;;  %p2362_p12 = scmp.lt.s32.totalorder %s2360_s14, %s2355_s12 }
  0x61   : > { %p2358_p4 = pnand %p2356_p1, %p2329_p7 }
  0x62   : > { %p2363_p0 = por %p2362_p12, %p2361_p10 }
  0x63   : > { %p2359_p6 = pneg %p2358_p4 }
  0x65   : > { %p2364_p5 = pnand %p2363_p0, %p2359_p6 }
  0x67   : > { %2367 = shalt.err (!%p2364_p5)
}
  0x68   : > { %s2368_s29 = scalar_lea.vmem %s2811_s0, 2048  ;;  %s2580_s21 = smov [#allocation6]  }
  0x69   : > { %p2369_p3 = scmp.ne.s32.totalorder %s2811_s0, %s2368_s29  ;;  %s2373_s13 = sshll.u32 %s2580_s21, 4  ;;  %s2374_s13 = int_to_ptr.vmem [resolvable:$false] %s2373_s13 }
  0x6a   : > { %s2375_s27 = scalar_lea.vmem %s2374_s13, 4096  ;;  %p2376_p13 = scmp.lt.s32.totalorder %s2811_s0, %s2374_s13 }
  0x6b   : > { %p2371_p11 = pnand %p2369_p3, %p2329_p7  ;;  %p2377_p1 = scmp.lt.s32.totalorder %s2375_s27, %s2368_s29 }
  0x6d   : > { %p2372_p9 = pneg %p2371_p11  ;;  %p2378_p4 = por %p2377_p1, %p2376_p13 }
  0x6f   : > { %p2379_p10 = pnand %p2378_p4, %p2372_p9 }
  0x71   : > { %2382 = shalt.err (!%p2379_p10)
}
  0x72   : > { %s3559_s12 = smov 8   ;;  %s3560_s6 = smov 128  }
  0x73   : > { %2081 = dma.hbm_to_vmem [thread:$0]  (!%p2767_p2), %s2807_s19, 2048, %s2811_s0, %s428_s23, %s3560_s6, %s3560_s6, %s3559_s12  }
  0x74   : > { %450 = sbr.rel (%p2699_p8) target bundleno = 1126 (0x466), region = 52  ;;  %s2843_s16 = sand.u32 (!%p2699_p8), 1, %s2563_s24  }
  0x75   : > { %s1921_s17 = sshll.u32 (!%p2699_p8), %s2843_s16, 8  ;;  %s453_s25 = scalar_lea.sflag (!%p2699_p8), [#allocation4], %s2843_s16 }
  0x76   : > { %s2847_s20 = scalar_lea.vmem (!%p2699_p8), [#allocation3], %s1921_s17  ;;  %p3561_p7 = scmp.ne.s32.totalorder (!%p2699_p8), %s3543_s28, 0 }
  0x79   : > { %2530 = dma.done.wait (%p3561_p7), %s453_s25, 4096  }
  0x7a   : > { %2532 = vsyncadd (%p3561_p7), %s453_s25, 4294963200  ;;  %s2854_s0 = sand.u32 1, %s2678_s5   ;;  %s2857_s2 = sshll.u32 %s2843_s16, 7 }
  0x7b   : > { %s462_s23 = scalar_lea.sflag [#allocation7], %s2854_s0  ;;  %s2861_s30 = scalar_lea.vmem [#allocation6], %s2857_s2 }
  0x7c   : > { %2534 = dma.done.wait (%p3561_p7), %s462_s23, 2048  }
  0x7d   : > { %2536 = vsyncadd (%p3561_p7), %s462_s23, 4294965248  ;;  %p3562_p8 = scmp.eq.s32.totalorder %s2678_s5, 0 }
  0x7f   : > { %2538 = dma.done.wait (%p3562_p8), [#allocation7], 8192   ;;  %p3563_p2 = pmov %p3562_p8 }
  0x81   : > { %2540 = vsyncadd (%p3563_p2), [#allocation7], 4294959104  ;;  %p3564_p6 = pmov %p3563_p2 }
  0x82   : > { %p3565_p12 = pmov %p3563_p2 }
  0x83   : > { %2542 = dma.done.wait (%p3564_p6), [#allocation10], 2048  }
  0x84   : > { %2544 = vsyncadd (%p3565_p12), [#allocation10], 4294965248  ;;  %v609_v1 = vld [vmem:[#allocation8 + $0xf8] sm:$0xff]  ;;  %v608_v2 = vld [vmem:[#allocation8 + $0xf0] sm:$0xff]  ;;  %s2920_s14 = scalar_lea.vmem [#allocation11], %s2857_s2  ;;  %s2987_s18 = scalar_lea.vmem [#allocation12], %s2857_s2 }
  0x85   : > { %v607_v3 = vld [vmem:[#allocation8 + $0xe8] sm:$0xff]  ;;  %654 = vmatprep.subr.mxu0 %v609_v1  ;;  %v606_v4 = vld [vmem:[#allocation8 + $0xe0] sm:$0xff]  ;;  %v605_v5 = vld [vmem:[#allocation8 + $0xd8] sm:$0xff]  ;;  %s3007_s21 = scalar_lea.vmem [#allocation17], %s2857_s2  ;;  %s3186_s12 = scalar_lea.vmem [#allocation14], %s2857_s2 }
  0x86   : > { %655 = vmatpush1.msra.mxu0 %v608_v2  ;;  %v604_v6 = vld [vmem:[#allocation8 + $0xd0] sm:$0xff]  ;;  %v603_v7 = vld [vmem:[#allocation8 + $0xc8] sm:$0xff]  ;;  %v602_v8 = vld [vmem:[#allocation8 + $0xc0] sm:$0xff]  ;;  %s3279_s6 = scalar_lea.vmem [#allocation15], %s2857_s2  ;;  %s3285_s17 = sshll.u32 %s2678_s5, 11 }
  0x87   : > { %656 = vmatprep.subr.mxu0 %v607_v3  ;;  %v601_v9 = vld [vmem:[#allocation8 + $0xb8] sm:$0xff]  ;;  %v600_v10 = vld [vmem:[#allocation8 + $0xb0] sm:$0xff]  ;;  %v599_v11 = vld [vmem:[#allocation8 + $0xa8] sm:$0xff]  ;;  %s1623_s25 = sshll.u32 %s2987_s18, 4  ;;  %s3293_s23 = scalar_lea.hbm %s3519_s9, %s3285_s17  ;;  %s3296_s25 = int_to_ptr.vmem [resolvable:$true] %s1623_s25 }
  0x88   : > { %657 = vmatpush1.msra.mxu0 %v606_v4  ;;  %v598_v12 = vld [vmem:[#allocation8 + $0xa0] sm:$0xff]  ;;  %v597_v13 = vld [vmem:[#allocation8 + $0x98] sm:$0xff]  ;;  %v596_v14 = vld [vmem:[#allocation8 + $0x90] sm:$0xff]  ;;  %s2383_s5 = scalar_lea.vmem %s3296_s25, 2048  ;;  %p3566_p5 = scmp.ne.s32.totalorder %s3552_s15, 0 }
  0x89   : > { %658 = vmatprep.subr.mxu0 %v605_v5  ;;  %v595_v15 = vld [vmem:[#allocation8 + $0x88] sm:$0xff]  ;;  %v594_v16 = vld [vmem:[#allocation8 + $0x80] sm:$0xff]  ;;  %v593_v17 = vld [vmem:[#allocation8 + $0x78] sm:$0xff]  ;;  %p2384_p0 = scmp.ne.s32.totalorder %s3296_s25, %s2383_s5  ;;  %s2582_s28 = smov [#allocation12]  }
  0x8a   : > { %659 = vmatpush1.msra.mxu0 %v604_v6  ;;  %v592_v18 = vld [vmem:[#allocation8 + $0x70] sm:$0xff]  ;;  %v591_v19 = vld [vmem:[#allocation8 + $0x68] sm:$0xff]  ;;  %v590_v20 = vld [vmem:[#allocation8 + $0x60] sm:$0xff]  ;;  %s2387_s19 = sshll.u32 %s2582_s28, 4  ;;  %s2388_s19 = int_to_ptr.vmem [resolvable:$false] %s2387_s19 }
  0x8b   : > { %660 = vmatprep.subr.mxu0 %v603_v7  ;;  %v589_v21 = vld [vmem:[#allocation8 + $0x58] sm:$0xff]  ;;  %v588_v22 = vld [vmem:[#allocation8 + $0x50] sm:$0xff]  ;;  %v587_v23 = vld [vmem:[#allocation8 + $0x48] sm:$0xff]  ;;  %p2385_p3 = pnand %p2384_p0, %p3566_p5  ;;  %p2390_p9 = scmp.lt.s32.totalorder %s3296_s25, %s2388_s19 }
  0x8c   : > { %661 = vmatpush1.msra.mxu0 %v602_v8  ;;  %v586_v24 = vld [vmem:[#allocation8 + $0x40] sm:$0xff]  ;;  %v547_v25 = vld [vmem:[%s2847_s20 + $0x8] sm:$0xff]  ;;  %v585_v26 = vld [vmem:[#allocation8 + $0x38] sm:$0xff] }
  0x8d   : > { %662 = vmatprep.subr.mxu0 %v601_v9  ;;  %718 = vmatprep.mubr.f32.mxu0 %v547_v25  ;;  %v584_v27 = vld [vmem:[#allocation8 + $0x30] sm:$0xff]  ;;  %v583_v28 = vld [vmem:[#allocation8 + $0x28] sm:$0xff]  ;;  %v582_v29 = vld [vmem:[#allocation8 + $0x20] sm:$0xff]  ;;  %p2386_p11 = pneg %p2385_p3 }
  0x8e   : > { %663 = vmatpush1.msra.mxu0 %v600_v10  ;;  %v581_v30 = vld [vmem:[#allocation8 + $0x18] sm:$0xff]  ;;  %v580_v31 = vld [vmem:[#allocation8 + $0x10] sm:$0xff]  ;;  %v579_v32 = vld [vmem:[#allocation8 + $0x8] sm:$0xff] }
  0x8f   : > { %664 = vmatprep.subr.mxu0 %v599_v11  ;;  %v578_v33 = vld [vmem:[#allocation8] sm:$0xff]  ;;  %v641_v34 = vld [vmem:[#allocation8 + $0x1f8] sm:$0xff]  ;;  %v640_v35 = vld [vmem:[#allocation8 + $0x1f0] sm:$0xff] }
  0x90   : > { %665 = vmatpush1.msra.mxu0 %v598_v12  ;;  %v639_v36 = vld [vmem:[#allocation8 + $0x1e8] sm:$0xff]  ;;  %v1100_v37 = vld [vmem:[#allocation9 + $0x78] sm:$0xff]  ;;  %v1099_v38 = vld [vmem:[#allocation9 + $0x70] sm:$0xff] }
  0x91   : > { %666 = vmatprep.subr.mxu0 %v597_v13  ;;  %v638_v39 = vld [vmem:[#allocation8 + $0x1e0] sm:$0xff]  ;;  %1990 = vmatprep.subr.mxu1 %v1100_v37  ;;  %v637_v40 = vld [vmem:[#allocation8 + $0x1d8] sm:$0xff]  ;;  %v1098_v41 = vld [vmem:[#allocation9 + $0x68] sm:$0xff] }
  0x92   : > { %667 = vmatpush1.msra.mxu0 %v596_v14  ;;  %1991 = vmatpush3.msra.mxu1 %v1100_v37  ;;  %v636_v42 = vld [vmem:[#allocation8 + $0x1d0] sm:$0xff]  ;;  %v635_v43 = vld [vmem:[#allocation8 + $0x1c8] sm:$0xff]  ;;  %v1097_v44 = vld [vmem:[#allocation9 + $0x60] sm:$0xff] }
  0x93   : > { %668 = vmatprep.subr.mxu0 %v595_v15  ;;  %1992 = vmatprep.subr.mxu1 %v1099_v38  ;;  %v634_v45 = vld [vmem:[#allocation8 + $0x1c0] sm:$0xff]  ;;  %v633_v46 = vld [vmem:[#allocation8 + $0x1b8] sm:$0xff]  ;;  %v632_v48 = vld [vmem:[#allocation8 + $0x1b0] sm:$0xff] }
  0x94   : > { %669 = vmatpush1.msra.mxu0 %v594_v16  ;;  %1993 = vmatpush3.msra.mxu1 %v1099_v38  ;;  %v1096_v47 = vld [vmem:[#allocation9 + $0x58] sm:$0xff]  ;;  %v631_v49 = vld [vmem:[#allocation8 + $0x1a8] sm:$0xff]  ;;  %v1095_v50 = vld [vmem:[#allocation9 + $0x50] sm:$0xff] }
  0x95   : > { %670 = vmatprep.subr.mxu0 %v593_v17  ;;  %1994 = vmatprep.subr.mxu1 %v1098_v41  ;;  %v630_v51 = vld [vmem:[#allocation8 + $0x1a0] sm:$0xff]  ;;  %v629_v52 = vld [vmem:[#allocation8 + $0x198] sm:$0xff]  ;;  %v1094_v53 = vld [vmem:[#allocation9 + $0x48] sm:$0xff] }
  0x96   : > { %671 = vmatpush1.msra.mxu0 %v592_v18  ;;  %1995 = vmatpush3.msra.mxu1 %v1098_v41  ;;  %v628_v54 = vld [vmem:[#allocation8 + $0x190] sm:$0xff]  ;;  %v627_v55 = vld [vmem:[#allocation8 + $0x188] sm:$0xff]  ;;  %v1093_v56 = vld [vmem:[#allocation9 + $0x40] sm:$0xff] }
  0x97   : > { %672 = vmatprep.subr.mxu0 %v591_v19  ;;  %1996 = vmatprep.subr.mxu1 %v1097_v44  ;;  %v626_v57 = vld [vmem:[#allocation8 + $0x180] sm:$0xff]  ;;  %v625_v58 = vld [vmem:[#allocation8 + $0x178] sm:$0xff]  ;;  %v624_v60 = vld [vmem:[#allocation8 + $0x170] sm:$0xff] }
  0x98   : > { %673 = vmatpush1.msra.mxu0 %v590_v20  ;;  %1997 = vmatpush3.msra.mxu1 %v1097_v44  ;;  %v1092_v59 = vld [vmem:[#allocation9 + $0x38] sm:$0xff]  ;;  %v623_v61 = vld [vmem:[#allocation8 + $0x168] sm:$0xff]  ;;  %v1091_v62 = vld [vmem:[#allocation9 + $0x30] sm:$0xff] }
  0x99   : > { %674 = vmatprep.subr.mxu0 %v589_v21  ;;  %1998 = vmatprep.subr.mxu1 %v1096_v47  ;;  %v622_v63 = vld [vmem:[#allocation8 + $0x160] sm:$0xff]  ;;  %v621_v0 = vld [vmem:[#allocation8 + $0x158] sm:$0xff]  ;;  %v1090_v1 = vld [vmem:[#allocation9 + $0x28] sm:$0xff] }
  0x9a   : > { %675 = vmatpush1.msra.mxu0 %v588_v22  ;;  %1999 = vmatpush3.msra.mxu1 %v1096_v47  ;;  %v620_v2 = vld [vmem:[#allocation8 + $0x150] sm:$0xff]  ;;  %v619_v3 = vld [vmem:[#allocation8 + $0x148] sm:$0xff]  ;;  %v618_v4 = vld [vmem:[#allocation8 + $0x140] sm:$0xff] }
  0x9b   : > { %676 = vmatprep.subr.mxu0 %v587_v23  ;;  %2000 = vmatprep.subr.mxu1 %v1095_v50  ;;  %v617_v5 = vld [vmem:[#allocation8 + $0x138] sm:$0xff]  ;;  %v616_v6 = vld [vmem:[#allocation8 + $0x130] sm:$0xff]  ;;  %v615_v7 = vld [vmem:[#allocation8 + $0x128] sm:$0xff] }
  0x9c   : > { %677 = vmatpush1.msra.mxu0 %v586_v24  ;;  %2001 = vmatpush3.msra.mxu1 %v1095_v50  ;;  %v614_v8 = vld [vmem:[#allocation8 + $0x120] sm:$0xff]  ;;  %v613_v9 = vld [vmem:[#allocation8 + $0x118] sm:$0xff]  ;;  %v612_v10 = vld [vmem:[#allocation8 + $0x110] sm:$0xff] }
  0x9d   : > { %678 = vmatprep.subr.mxu0 %v585_v26  ;;  %2002 = vmatprep.subr.mxu1 %v1094_v53  ;;  %v611_v11 = vld [vmem:[#allocation8 + $0x108] sm:$0xff]  ;;  %v610_v12 = vld [vmem:[#allocation8 + $0x100] sm:$0xff]  ;;  %v549_v14 = vld [vmem:[%s2847_s20 + $0x18] sm:$0xff] }
  0x9e   : > { %679 = vmatpush1.msra.mxu0 %v584_v27  ;;  %2003 = vmatpush3.msra.mxu1 %v1094_v53  ;;  %v546_v13 = vld [vmem:[%s2847_s20] sm:$0xff]  ;;  %v548_v15 = vld [vmem:[%s2847_s20 + $0x10] sm:$0xff]  ;;  %v551_v16 = vld [vmem:[%s2847_s20 + $0x28] sm:$0xff] }
  0x9f   : > { %680 = vmatprep.subr.mxu0 %v583_v28  ;;  %2004 = vmatprep.subr.mxu1 %v1093_v56  ;;  %v550_v17 = vld [vmem:[%s2847_s20 + $0x20] sm:$0xff]  ;;  %v553_v18 = vld [vmem:[%s2847_s20 + $0x38] sm:$0xff]  ;;  %v552_v19 = vld [vmem:[%s2847_s20 + $0x30] sm:$0xff] }
  0xa0   : > { %681 = vmatpush1.msra.mxu0 %v582_v29  ;;  %2005 = vmatpush3.msra.mxu1 %v1093_v56  ;;  %v555_v20 = vld [vmem:[%s2847_s20 + $0x48] sm:$0xff]  ;;  %v554_v21 = vld [vmem:[%s2847_s20 + $0x40] sm:$0xff]  ;;  %v557_v22 = vld [vmem:[%s2847_s20 + $0x58] sm:$0xff] }
  0xa1   : > { %682 = vmatprep.subr.mxu0 %v581_v30  ;;  %2006 = vmatprep.subr.mxu1 %v1092_v59  ;;  %v556_v23 = vld [vmem:[%s2847_s20 + $0x50] sm:$0xff]  ;;  %v559_v24 = vld [vmem:[%s2847_s20 + $0x68] sm:$0xff]  ;;  %v558_v25 = vld [vmem:[%s2847_s20 + $0x60] sm:$0xff] }
  0xa2   : > { %683 = vmatpush1.msra.mxu0 %v580_v31  ;;  %2007 = vmatpush3.msra.mxu1 %v1092_v59  ;;  %v561_v26 = vld [vmem:[%s2847_s20 + $0x78] sm:$0xff]  ;;  %v560_v27 = vld [vmem:[%s2847_s20 + $0x70] sm:$0xff]  ;;  %v563_v28 = vld [vmem:[%s2847_s20 + $0x88] sm:$0xff] }
  0xa3   : > { %684 = vmatprep.subr.mxu0 %v579_v32  ;;  %2008 = vmatprep.subr.mxu1 %v1091_v62  ;;  %v562_v29 = vld [vmem:[%s2847_s20 + $0x80] sm:$0xff]  ;;  %v565_v30 = vld [vmem:[%s2847_s20 + $0x98] sm:$0xff]  ;;  %v564_v31 = vld [vmem:[%s2847_s20 + $0x90] sm:$0xff] }
  0xa4   : > { %685 = vmatpush1.msra.mxu0 %v578_v33  ;;  %2009 = vmatpush3.msra.mxu1 %v1091_v62  ;;  %v567_v32 = vld [vmem:[%s2847_s20 + $0xa8] sm:$0xff]  ;;  %v566_v33 = vld [vmem:[%s2847_s20 + $0xa0] sm:$0xff]  ;;  %v573_v38 = vld [vmem:[%s2847_s20 + $0xd8] sm:$0xff] }
  0xa5   : > { %686 = vmatprep.subr.mxu0 %v641_v34  ;;  %2010 = vmatprep.subr.mxu1 %v1090_v1  ;;  %v569_v34 = vld [vmem:[%s2847_s20 + $0xb8] sm:$0xff]  ;;  %v570_v37 = vld [vmem:[%s2847_s20 + $0xc0] sm:$0xff]  ;;  %v1086_v47 = vld [vmem:[#allocation9 + $0x8] sm:$0xff] }
  0xa6   : > { %687 = vmatpush2.msra.mxu0 %v640_v35  ;;  %2011 = vmatpush3.msra.mxu1 %v1090_v1  ;;  %v568_v35 = vld [vmem:[%s2847_s20 + $0xb0] sm:$0xff]  ;;  %v574_v41 = vld [vmem:[%s2847_s20 + $0xe0] sm:$0xff] }
  0xa7   : > { %688 = vmatprep.subr.mxu0 %v639_v36  ;;  %v571_v36 = vld [vmem:[%s2847_s20 + $0xc8] sm:$0xff]  ;;  %v1089_v44 = vld [vmem:[#allocation9 + $0x20] sm:$0xff] }
  0xa8   : > { %689 = vmatpush2.msra.mxu0 %v638_v39  ;;  %v572_v39 = vld [vmem:[%s2847_s20 + $0xd0] sm:$0xff]  ;;  %2012 = vmatprep.subr.mxu1 %v1089_v44 }
  0xa9   : > { %690 = vmatprep.subr.mxu0 %v637_v40  ;;  %v575_v40 = vld [vmem:[%s2847_s20 + $0xe8] sm:$0xff]  ;;  %2013 = vmatpush3.msra.mxu1 %v1089_v44 }
  0xaa   : > { %691 = vmatpush2.msra.mxu0 %v636_v42  ;;  %v577_v42 = vld [vmem:[%s2847_s20 + $0xf8] sm:$0xff] }
  0xab   : > { %692 = vmatprep.subr.mxu0 %v635_v43  ;;  %v576_v43 = vld [vmem:[%s2847_s20 + $0xf0] sm:$0xff] }
  0xac   : > { %693 = vmatpush2.msra.mxu0 %v634_v45  ;;  %v1088_v45 = vld [vmem:[#allocation9 + $0x18] sm:$0xff] }
  0xad   : > { %694 = vmatprep.subr.mxu0 %v633_v46  ;;  %2014 = vmatprep.subr.mxu1 %v1088_v45  ;;  %v1087_v46 = vld [vmem:[#allocation9 + $0x10] sm:$0xff] }
  0xae   : > { %695 = vmatpush2.msra.mxu0 %v632_v48  ;;  %2015 = vmatpush3.msra.mxu1 %v1088_v45  ;;  %v1085_v48 = vld [vmem:[#allocation9] sm:$0xff] }
  0xaf   : > { %696 = vmatprep.subr.mxu0 %v631_v49  ;;  %2016 = vmatprep.subr.mxu1 %v1087_v46  ;;  %v644_v49 = vlaneseq }
  0xb0   : > { %697 = vmatpush2.msra.mxu0 %v630_v51  ;;  %2017 = vmatpush3.msra.mxu1 %v1087_v46 }
  0xb1   : > { %698 = vmatprep.subr.mxu0 %v629_v52  ;;  %2018 = vmatprep.subr.mxu1 %v1086_v47  ;;  %v645_v50 = vshrl.u32 %v644_v49, 7  ;;  %v642_v52 = vld [vmem:[%s3513_s3] sm:$0x3] }
  0xb2   : > { %699 = vmatpush2.msra.mxu0 %v628_v54  ;;  %2019 = vmatpush3.msra.mxu1 %v1086_v47 }
  0xb3   : > { %700 = vmatprep.subr.mxu0 %v627_v55  ;;  %2020 = vmatprep.subr.mxu1 %v1085_v48  ;;  %v646_v51 = vsub.s32 0, %v645_v50  ;;  %v650_v53 = vsub.s32 1, %v645_v50 }
  0xb4   : > { %701 = vmatpush2.msra.mxu0 %v626_v57  ;;  %2021 = vmatpush3.msra.mxu1 %v1085_v48 }
  0xb5   : > { %702 = vmatprep.subr.mxu0 %v625_v58  ;;  %v2910_v54 = vrot.slane %v642_v52, %v646_v51  ;;  %v2912_v55 = vrot.slane %v642_v52, %v650_v53 }
  0xb6   : > { %703 = vmatpush2.msra.mxu0 %v624_v60 }
  0xb7   : > { %704 = vmatprep.subr.mxu0 %v623_v61 }
  0xb8   : > { %705 = vmatpush2.msra.mxu0 %v622_v63 }
  0xb9   : > { %706 = vmatprep.subr.mxu0 %v621_v0 }
  0xba   : > { %707 = vmatpush2.msra.mxu0 %v620_v2 }
  0xbb   : > { %708 = vmatprep.subr.mxu0 %v619_v3 }
  0xbc   : > { %709 = vmatpush2.msra.mxu0 %v618_v4 }
  0xbd   : > { %710 = vmatprep.subr.mxu0 %v617_v5 }
  0xbe   : > { %711 = vmatpush2.msra.mxu0 %v616_v6 }
  0xbf   : > { %712 = vmatprep.subr.mxu0 %v615_v7 }
  0xc0   : > { %713 = vmatpush2.msra.mxu0 %v614_v8 }
  0xc1   : > { %714 = vmatprep.subr.mxu0 %v613_v9 }
  0xc2   : > { %715 = vmatpush2.msra.mxu0 %v612_v10 }
  0xc3   : > { %716 = vmatprep.subr.mxu0 %v611_v11 }
  0xc4   : > { %717 = vmatpush2.msra.mxu0 %v610_v12 }
  0xc5   : > { %719 = vmatmul.mubr.f32.vlgmr.msra.gmra.mxu0 %v546_v13 }
  0xc6   : > { %724 = vmatprep.mubr.f32.mxu0 %v549_v14 }
  0xc9   : > { %725 = vmatmul.mubr.f32.gmra.mxu0 %v548_v15 }
  0xca   : > { %730 = vmatprep.mubr.f32.mxu0 %v551_v16 }
  0xcd   : > { %731 = vmatmul.mubr.f32.gmra.mxu0 %v550_v17 }
  0xce   : > { %736 = vmatprep.mubr.f32.mxu0 %v553_v18 }
  0xd1   : > { %737 = vmatmul.mubr.f32.gmra.mxu0 %v552_v19 }
  0xd2   : > { %742 = vmatprep.mubr.f32.mxu0 %v555_v20 }
  0xd5   : > { %743 = vmatmul.mubr.f32.gmra.mxu0 %v554_v21 }
  0xd6   : > { %748 = vmatprep.mubr.f32.mxu0 %v557_v22 }
  0xd9   : > { %749 = vmatmul.mubr.f32.gmra.mxu0 %v556_v23 }
  0xda   : > { %754 = vmatprep.mubr.f32.mxu0 %v559_v24 }
  0xdd   : > { %755 = vmatmul.mubr.f32.gmra.mxu0 %v558_v25 }
  0xde   : > { %760 = vmatprep.mubr.f32.mxu0 %v561_v26 }
  0xe1   : > { %761 = vmatmul.mubr.f32.gmra.mxu0 %v560_v27 }
  0xe2   : > { %766 = vmatprep.mubr.f32.mxu0 %v563_v28 }
  0xe5   : > { %767 = vmatmul.mubr.f32.gmra.mxu0 %v562_v29 }
  0xe6   : > { %772 = vmatprep.mubr.f32.mxu0 %v565_v30 }
  0xe9   : > { %773 = vmatmul.mubr.f32.gmra.mxu0 %v564_v31 }
  0xea   : > { %778 = vmatprep.mubr.f32.mxu0 %v567_v32 }
  0xed   : > { %779 = vmatmul.mubr.f32.gmra.mxu0 %v566_v33 }
  0xee   : > { %784 = vmatprep.mubr.f32.mxu0 %v569_v34 }
  0xf1   : > { %785 = vmatmul.mubr.f32.gmra.mxu0 %v568_v35 }
  0xf2   : > { %790 = vmatprep.mubr.f32.mxu0 %v571_v36 }
  0xf5   : > { %791 = vmatmul.mubr.f32.gmra.mxu0 %v570_v37 }
  0xf6   : > { %796 = vmatprep.mubr.f32.mxu0 %v573_v38 }
  0xf9   : > { %797 = vmatmul.mubr.f32.gmra.mxu0 %v572_v39 }
  0xfa   : > { %802 = vmatprep.mubr.f32.mxu0 %v575_v40 }
  0xfd   : > { %803 = vmatmul.mubr.f32.gmra.mxu0 %v574_v41 }
  0xfe   : > { %808 = vmatprep.mubr.f32.mxu0 %v577_v42 }
 0x101   : > { %809 = vmatmul.mubr.f32.gmra.mxu0 %v576_v43 }
 0x185   : > { %v720_v56 = vpop.f32.mrf.mxu0 }
 0x186   : > { %v721_v57 = vadd.f32 %v720_v56, %v2910_v54 }
 0x187   : > { %v722_v58 = vpop.f32.mrf.mxu0 }
 0x188   : > { %v815_v59 = vmul.f32 0.2, %v721_v57  ;;  %v723_v60 = vadd.f32 %v722_v58, %v2912_v55 }
 0x189   : > { %v726_v61 = vpop.f32.mrf.mxu0 }
 0x18a   : > { %v2916_v62 = vmax.f32 %v721_v57, %v815_v59  ;;  %v816_v63 = vmul.f32 0.2, %v723_v60  ;;  %v727_v0 = vadd.f32 %v726_v61, %v2910_v54 }
 0x18b   : > { %v728_v1 = vpop.f32.mrf.mxu0 }
 0x18c   : > { %1413 = vst [vmem:[%s2920_s14] sm:$0xff] %v2916_v62  ;;  %v848_v2 = vmax.f32 %v723_v60, %v816_v63  ;;  %v817_v3 = vmul.f32 0.2, %v727_v0  ;;  %v729_v4 = vadd.f32 %v728_v1, %v2912_v55  ;;  %2022 = vmatprep.mubr.f32.mxu1 %v2916_v62 }
 0x18d   : > { %v732_v5 = vpop.f32.mrf.mxu0 }
 0x18e   : > { %v879_v6 = vsub.f32 0.0, %v848_v2  ;;  %v2926_v7 = vmax.f32 %v727_v0, %v817_v3  ;;  %v818_v8 = vmul.f32 0.2, %v729_v4  ;;  %v733_v9 = vadd.f32 %v732_v5, %v2910_v54 }
 0x18f   : > { %v734_v10 = vpop.f32.mrf.mxu0 }
 0x190   : > { %v895_v11 = vmul.f32 1.442695, %v879_v6  ;;  %1414 = vst [vmem:[%s2920_s14 + $0x8] sm:$0xff] %v2926_v7  ;;  %v850_v12 = vmax.f32 %v729_v4, %v818_v8  ;;  %v819_v13 = vmul.f32 0.2, %v733_v9  ;;  %v735_v14 = vadd.f32 %v734_v10, %v2912_v55  ;;  %2023 = vmatmul.mubr.f32.vlgmr.msra.gmra.mxu1 %v2926_v7 }
 0x191   : > { %v738_v15 = vpop.f32.mrf.mxu0 }
 0x192   : > { %2147 = vpow2.f32 %v895_v11  ;;  %v880_v16 = vsub.f32 0.0, %v850_v12  ;;  %v2933_v17 = vmax.f32 %v733_v9, %v819_v13  ;;  %v820_v18 = vmul.f32 0.2, %v735_v14 }
 0x193   : > { %v739_v19 = vadd.f32 %v738_v15, %v2910_v54  ;;  %v740_v20 = vpop.f32.mrf.mxu0 }
 0x194   : > { %v897_v21 = vmul.f32 1.442695, %v880_v16  ;;  %1415 = vst [vmem:[%s2920_s14 + $0x10] sm:$0xff] %v2933_v17  ;;  %v852_v22 = vmax.f32 %v735_v14, %v820_v18  ;;  %v741_v23 = vadd.f32 %v740_v20, %v2912_v55  ;;  %2025 = vmatprep.mubr.f32.mxu1 %v2933_v17 }
 0x195   : > { %v821_v24 = vmul.f32 0.2, %v739_v19  ;;  %v744_v25 = vpop.f32.mrf.mxu0 }
 0x196   : > { %2149 = vpow2.f32 %v897_v21  ;;  %v881_v26 = vsub.f32 0.0, %v852_v22  ;;  %v822_v27 = vmul.f32 0.2, %v741_v23  ;;  %v745_v28 = vadd.f32 %v744_v25, %v2910_v54 }
 0x197   : > { %v2941_v29 = vmax.f32 %v739_v19, %v821_v24  ;;  %v746_v30 = vpop.f32.mrf.mxu0 }
 0x198   : > { %v899_v31 = vmul.f32 1.442695, %v881_v26  ;;  %v854_v32 = vmax.f32 %v741_v23, %v822_v27  ;;  %v823_v33 = vmul.f32 0.2, %v745_v28  ;;  %v747_v34 = vadd.f32 %v746_v30, %v2912_v55 }
 0x199   : > { %1416 = vst [vmem:[%s2920_s14 + $0x18] sm:$0xff] %v2941_v29  ;;  %2026 = vmatmul.mubr.f32.gmra.mxu1 %v2941_v29  ;;  %v750_v35 = vpop.f32.mrf.mxu0 }
 0x19a   : > { %2151 = vpow2.f32 %v899_v31  ;;  %v882_v36 = vsub.f32 0.0, %v854_v32  ;;  %v2947_v37 = vmax.f32 %v745_v28, %v823_v33  ;;  %v824_v38 = vmul.f32 0.2, %v747_v34 }
 0x19b   : > { %v751_v39 = vadd.f32 %v750_v35, %v2910_v54  ;;  %v752_v40 = vpop.f32.mrf.mxu0 }
 0x19c   : > { %v901_v41 = vmul.f32 1.442695, %v882_v36  ;;  %1417 = vst [vmem:[%s2920_s14 + $0x20] sm:$0xff] %v2947_v37  ;;  %v856_v42 = vmax.f32 %v747_v34, %v824_v38  ;;  %v753_v43 = vadd.f32 %v752_v40, %v2912_v55  ;;  %2028 = vmatprep.mubr.f32.mxu1 %v2947_v37  ;;  %v959_v34 = vld [vmem:[%s2861_s30] sm:$0xff] }
 0x19d   : > { %v825_v44 = vmul.f32 0.2, %v751_v39  ;;  %v756_v45 = vpop.f32.mrf.mxu0 }
 0x19e   : > { %2153 = vpow2.f32 %v901_v41  ;;  %v883_v46 = vsub.f32 0.0, %v856_v42  ;;  %v826_v47 = vmul.f32 0.2, %v753_v43  ;;  %v757_v48 = vadd.f32 %v756_v45, %v2910_v54 }
 0x19f   : > { %v2148_v49 = vpop.eup %2147  ;;  %v2955_v50 = vmax.f32 %v751_v39, %v825_v44  ;;  %v758_v51 = vpop.f32.mrf.mxu0 }
 0x1a0   : > { %v927_v52 = vadd.f32 1.0, %v2148_v49  ;;  %v903_v53 = vmul.f32 1.442695, %v883_v46  ;;  %v858_v56 = vmax.f32 %v753_v43, %v826_v47  ;;  %v827_v57 = vmul.f32 0.2, %v757_v48 }
 0x1a1   : > { %1418 = vst [vmem:[%s2920_s14 + $0x28] sm:$0xff] %v2955_v50  ;;  %v759_v58 = vadd.f32 %v758_v51, %v2912_v55  ;;  %2029 = vmatmul.mubr.f32.gmra.mxu1 %v2955_v50  ;;  %v762_v59 = vpop.f32.mrf.mxu0  ;;  %v2993_v51 = vld [vmem:[%s3514_s4] ss:$0 sm:$0xff] }
 0x1a2   : > { %2155 = vrcp.f32 %v927_v52  ;;  %v884_v60 = vsub.f32 0.0, %v858_v56  ;;  %v2961_v61 = vmax.f32 %v757_v48, %v827_v57  ;;  %v763_v63 = vadd.f32 %v762_v59, %v2910_v54  ;;  %v960_v52 = vld [vmem:[%s2861_s30 + $0x8] sm:$0xff] }
 0x1a3   : > { %v2150_v0 = vpop.eup %2149  ;;  %2157 = vpow2.f32 %v903_v53  ;;  %v828_v1 = vmul.f32 0.2, %v759_v58  ;;  %v764_v2 = vpop.f32.mrf.mxu0 }
 0x1a4   : > { %v928_v3 = vadd.f32 1.0, %v2150_v0  ;;  %v905_v4 = vmul.f32 1.442695, %v884_v60  ;;  %1419 = vst [vmem:[%s2920_s14 + $0x30] sm:$0xff] %v2961_v61  ;;  %2031 = vmatprep.mubr.f32.mxu1 %v2961_v61  ;;  %v829_v5 = vmul.f32 0.2, %v763_v63  ;;  %v765_v6 = vadd.f32 %v764_v2, %v2912_v55 }
 0x1a5   : > { %v860_v8 = vmax.f32 %v759_v58, %v828_v1  ;;  %v768_v9 = vpop.f32.mrf.mxu0 }
 0x1a6   : > { %2159 = vrcp.f32 %v928_v3  ;;  %v2968_v10 = vmax.f32 %v763_v63, %v829_v5  ;;  %v830_v11 = vmul.f32 0.2, %v765_v6  ;;  %v769_v12 = vadd.f32 %v768_v9, %v2910_v54 }
 0x1a7   : > { %v2152_v13 = vpop.eup %2151  ;;  %2161 = vpow2.f32 %v905_v4  ;;  %v885_v14 = vsub.f32 0.0, %v860_v8  ;;  %v770_v15 = vpop.f32.mrf.mxu0  ;;  %v961_v8 = vld [vmem:[%s2861_s30 + $0x10] sm:$0xff] }
 0x1a8   : > { %v929_v16 = vadd.f32 1.0, %v2152_v13  ;;  %1420 = vst [vmem:[%s2920_s14 + $0x38] sm:$0xff] %v2968_v10  ;;  %v862_v18 = vmax.f32 %v765_v6, %v830_v11  ;;  %v831_v19 = vmul.f32 0.2, %v769_v12  ;;  %v771_v20 = vadd.f32 %v770_v15, %v2912_v55  ;;  %2032 = vmatmul.mubr.f32.gmra.mxu1 %v2968_v10 }
 0x1a9   : > { %v907_v21 = vmul.f32 1.442695, %v885_v14  ;;  %v774_v22 = vpop.f32.mrf.mxu0 }
 0x1aa   : > { %2163 = vrcp.f32 %v929_v16  ;;  %v886_v23 = vsub.f32 0.0, %v862_v18  ;;  %v2975_v24 = vmax.f32 %v769_v12, %v831_v19  ;;  %v832_v25 = vmul.f32 0.2, %v771_v20 }
 0x1ab   : > { %v2154_v26 = vpop.eup %2153  ;;  %2165 = vpow2.f32 %v907_v21  ;;  %v775_v27 = vadd.f32 %v774_v22, %v2910_v54  ;;  %v776_v28 = vpop.f32.mrf.mxu0 }
 0x1ac   : > { %v930_v30 = vadd.f32 1.0, %v2154_v26  ;;  %v909_v31 = vmul.f32 1.442695, %v886_v23  ;;  %1421 = vst [vmem:[%s2920_s14 + $0x40] sm:$0xff] %v2975_v24  ;;  %v864_v32 = vmax.f32 %v771_v20, %v832_v25  ;;  %v777_v33 = vadd.f32 %v776_v28, %v2912_v55  ;;  %2034 = vmatprep.mubr.f32.mxu1 %v2975_v24 }
 0x1ad   : > { %v833_v35 = vmul.f32 0.2, %v775_v27  ;;  %v780_v36 = vpop.f32.mrf.mxu0 }
 0x1ae   : > { %2167 = vrcp.f32 %v930_v30  ;;  %v887_v38 = vsub.f32 0.0, %v864_v32  ;;  %v834_v39 = vmul.f32 0.2, %v777_v33  ;;  %v781_v40 = vadd.f32 %v780_v36, %v2910_v54 }
 0x1af   : > { %v2156_v41 = vpop.eup %2155  ;;  %2169 = vpow2.f32 %v909_v31  ;;  %v2984_v42 = vmax.f32 %v775_v27, %v833_v35  ;;  %v782_v43 = vpop.f32.mrf.mxu0  ;;  %v962_v27 = vld [vmem:[%s2861_s30 + $0x18] sm:$0xff] }
 0x1b0   : > { %v2158_v44 = vpop.eup %2157  ;;  %1429 = vst [vmem:[%s2987_s18] sm:$0xff] %v2156_v41  ;;  %v911_v45 = vmul.f32 1.442695, %v887_v38  ;;  %v975_v46 = vmul.f32 %v2156_v41, %v959_v34  ;;  %v866_v47 = vmax.f32 %v777_v33, %v834_v39  ;;  %v835_v48 = vmul.f32 0.2, %v781_v40 }
 0x1b1   : > { %v931_v49 = vadd.f32 1.0, %v2158_v44  ;;  %1422 = vst [vmem:[%s2920_s14 + $0x48] sm:$0xff] %v2984_v42  ;;  %v783_v53 = vadd.f32 %v782_v43, %v2912_v55  ;;  %v786_v56 = vpop.f32.mrf.mxu0  ;;  %2035 = vmatmul.mubr.f32.gmra.mxu1 %v2984_v42 }
 0x1b2   : > { %2171 = vpow2.f32 %v911_v45  ;;  %v991_v57 = vadd.f32 %v975_v46, %v2916_v62  ;;  %v888_v58 = vsub.f32 0.0, %v866_v47  ;;  %v3001_v59 = vmax.f32 %v781_v40, %v835_v48 }
 0x1b3   : > { %v2160_v60 = vpop.eup %2159  ;;  %2173 = vrcp.f32 %v931_v49  ;;  %v836_v63 = vmul.f32 0.2, %v783_v53  ;;  %v787_v0 = vadd.f32 %v786_v56, %v2910_v54  ;;  %v788_v1 = vpop.f32.mrf.mxu0 }
 0x1b4   : > { %v2162_v2 = vpop.eup %2161  ;;  %1430 = vst [vmem:[%s2987_s18 + $0x8] sm:$0xff] %v2160_v60  ;;  %v1014_v3 = vmul.f32 %v2993_v51, %v991_v57  ;;  %1557 = vst [vmem:[%s3007_s21] sm:$0xff] %v991_v57  ;;  %v976_v4 = vmul.f32 %v2160_v60, %v960_v52  ;;  %v913_v62 = vmul.f32 1.442695, %v888_v58  ;;  %v789_v5 = vadd.f32 %v788_v1, %v2912_v55  ;;  %v963_v52 = vld [vmem:[%s2861_s30 + $0x20] sm:$0xff] }
 0x1b5   : > { %1423 = vst [vmem:[%s2920_s14 + $0x50] sm:$0xff] %v3001_v59  ;;  %2037 = vmatprep.mubr.f32.mxu1 %v3001_v59  ;;  %v932_v6 = vadd.f32 1.0, %v2162_v2  ;;  %v868_v9 = vmax.f32 %v783_v53, %v836_v63  ;;  %v837_v11 = vmul.f32 0.2, %v787_v0  ;;  %v792_v12 = vpop.f32.mrf.mxu0 }
 0x1b6   : > { %1030 = vadd.xlane.f32.xlu0 %v1014_v3  ;;  %v992_v13 = vadd.f32 %v976_v4, %v2926_v7  ;;  %2175 = vpow2.f32 %v913_v62  ;;  %v838_v14 = vmul.f32 0.2, %v789_v5  ;;  %v793_v15 = vadd.f32 %v792_v12, %v2910_v54 }
 0x1b7   : > { %v2164_v16 = vpop.eup %2163  ;;  %2177 = vrcp.f32 %v932_v6  ;;  %v889_v18 = vsub.f32 0.0, %v868_v9  ;;  %v3017_v19 = vmax.f32 %v787_v0, %v837_v11  ;;  %v794_v20 = vpop.f32.mrf.mxu0 }
 0x1b8   : > { %v2166_v21 = vpop.eup %2165  ;;  %1431 = vst [vmem:[%s2987_s18 + $0x10] sm:$0xff] %v2164_v16  ;;  %v1015_v22 = vmul.f32 %v2993_v51, %v992_v13  ;;  %1558 = vst [vmem:[%s3007_s21 + $0x8] sm:$0xff] %v992_v13  ;;  %v977_v23 = vmul.f32 %v2164_v16, %v961_v8  ;;  %v870_v25 = vmax.f32 %v789_v5, %v838_v14  ;;  %v839_v7 = vmul.f32 0.2, %v793_v15  ;;  %v964_v8 = vld [vmem:[%s2861_s30 + $0x28] sm:$0xff] }
 0x1b9   : > { %v933_v26 = vadd.f32 1.0, %v2166_v21  ;;  %v915_v28 = vmul.f32 1.442695, %v889_v18  ;;  %1424 = vst [vmem:[%s2920_s14 + $0x58] sm:$0xff] %v3017_v19  ;;  %v795_v30 = vadd.f32 %v794_v20, %v2912_v55  ;;  %v798_v31 = vpop.f32.mrf.mxu0  ;;  %2038 = vmatmul.mubr.f32.gmra.mxu1 %v3017_v19  ;;  %v2581_v13 = vmov 0  }
 0x1ba   : > { %1032 = vadd.xlane.f32.xlu1 %v1015_v22  ;;  %v993_v32 = vadd.f32 %v977_v23, %v2933_v17  ;;  %v890_v33 = vsub.f32 0.0, %v870_v25  ;;  %v3028_v34 = vmax.f32 %v793_v15, %v839_v7  ;;  %v799_v35 = vadd.f32 %v798_v31, %v2910_v54  ;;  %2145 = vset.pattern.permute.xlu0 %v2581_v13 }
 0x1bb   : > { %v2168_v36 = vpop.eup %2167  ;;  %2179 = vrcp.f32 %v933_v26  ;;  %v840_v38 = vmul.f32 0.2, %v795_v30  ;;  %v800_v39 = vpop.f32.mrf.mxu0  ;;  %2146 = vset.pattern.permute.xlu1 %v2581_v13  ;;  %v965_v26 = vld [vmem:[%s2861_s30 + $0x30] sm:$0xff] }
 0x1bc   : > { %v2170_v40 = vpop.eup %2169  ;;  %1432 = vst [vmem:[%s2987_s18 + $0x18] sm:$0xff] %v2168_v36  ;;  %v1016_v41 = vmul.f32 %v2993_v51, %v993_v32  ;;  %1559 = vst [vmem:[%s3007_s21 + $0x10] sm:$0xff] %v993_v32  ;;  %v978_v43 = vmul.f32 %v2168_v36, %v962_v27  ;;  %2181 = vpow2.f32 %v915_v28  ;;  %v917_v44 = vmul.f32 1.442695, %v890_v33  ;;  %2040 = vmatprep.mubr.f32.mxu1 %v3028_v34 }
 0x1bd   : > { %1425 = vst [vmem:[%s2920_s14 + $0x60] sm:$0xff] %v3028_v34  ;;  %v934_v17 = vadd.f32 1.0, %v2170_v40  ;;  %v872_v45 = vmax.f32 %v795_v30, %v840_v38  ;;  %v841_v46 = vmul.f32 0.2, %v799_v35  ;;  %v801_v47 = vadd.f32 %v800_v39, %v2912_v55  ;;  %v804_v48 = vpop.f32.mrf.mxu0  ;;  %v966_v40 = vld [vmem:[%s2861_s30 + $0x38] sm:$0xff] }
 0x1be   : > { %1034 = vadd.xlane.f32.xlu0 %v1016_v41  ;;  %v994_v49 = vadd.f32 %v978_v43, %v2941_v29  ;;  %2183 = vpow2.f32 %v917_v44  ;;  %v805_v53 = vadd.f32 %v804_v48, %v2910_v54  ;;  %v967_v48 = vld [vmem:[%s2861_s30 + $0x40] sm:$0xff] }
 0x1bf   : > { %v2172_v56 = vpop.eup %2171  ;;  %2185 = vrcp.f32 %v934_v17  ;;  %v891_v57 = vsub.f32 0.0, %v872_v45  ;;  %v3041_v58 = vmax.f32 %v799_v35, %v841_v46  ;;  %v842_v60 = vmul.f32 0.2, %v801_v47  ;;  %v806_v63 = vpop.f32.mrf.mxu0 }
 0x1c0   : > { %v2174_v0 = vpop.eup %2173  ;;  %v935_v1 = vadd.f32 1.0, %v2172_v56  ;;  %v1017_v2 = vmul.f32 %v2993_v51, %v994_v49  ;;  %1560 = vst [vmem:[%s3007_s21 + $0x18] sm:$0xff] %v994_v49  ;;  %v843_v29 = vmul.f32 0.2, %v805_v53  ;;  %v807_v3 = vadd.f32 %v806_v63, %v2912_v55 }
 0x1c1   : > { %1433 = vst [vmem:[%s2987_s18 + $0x20] sm:$0xff] %v2174_v0  ;;  %v979_v4 = vmul.f32 %v2174_v0, %v963_v52  ;;  %v919_v62 = vmul.f32 1.442695, %v891_v57  ;;  %1426 = vst [vmem:[%s2920_s14 + $0x68] sm:$0xff] %v3041_v58  ;;  %v874_v5 = vmax.f32 %v801_v47, %v842_v60  ;;  %v810_v6 = vpop.f32.mrf.mxu0  ;;  %2041 = vmatmul.mubr.f32.gmra.mxu1 %v3041_v58  ;;  %v968_v60 = vld [vmem:[%s2861_s30 + $0x48] sm:$0xff] }
 0x1c2   : > { %2187 = vrcp.f32 %v935_v1  ;;  %1036 = vadd.xlane.f32.xlu1 %v1017_v2  ;;  %v3051_v9 = vmax.f32 %v805_v53, %v843_v29  ;;  %v844_v11 = vmul.f32 0.2, %v807_v3  ;;  %v811_v12 = vadd.f32 %v810_v6, %v2910_v54 }
 0x1c3   : > { %v2176_v14 = vpop.eup %2175  ;;  %v995_v15 = vadd.f32 %v979_v4, %v2947_v37  ;;  %2189 = vpow2.f32 %v919_v62  ;;  %v892_v16 = vsub.f32 0.0, %v874_v5  ;;  %v812_v18 = vpop.f32.mrf.mxu0 }
 0x1c4   : > { %v2178_v20 = vpop.eup %2177  ;;  %v936_v21 = vadd.f32 1.0, %v2176_v14  ;;  %1427 = vst [vmem:[%s2920_s14 + $0x70] sm:$0xff] %v3051_v9  ;;  %v876_v22 = vmax.f32 %v807_v3, %v844_v11  ;;  %v845_v23 = vmul.f32 0.2, %v811_v12  ;;  %v813_v54 = vadd.f32 %v812_v18, %v2912_v55  ;;  %2043 = vmatprep.mubr.f32.mxu1 %v3051_v9 }
 0x1c5   : > { %1434 = vst [vmem:[%s2987_s18 + $0x28] sm:$0xff] %v2178_v20  ;;  %v1018_v25 = vmul.f32 %v2993_v51, %v995_v15  ;;  %1561 = vst [vmem:[%s3007_s21 + $0x20] sm:$0xff] %v995_v15  ;;  %v980_v37 = vmul.f32 %v2178_v20, %v964_v8  ;;  %v921_v7 = vmul.f32 1.442695, %v892_v16  ;;  %v970_v8 = vld [vmem:[%s2861_s30 + $0x58] sm:$0xff]  ;;  %v971_v20 = vld [vmem:[%s2861_s30 + $0x60] sm:$0xff] }
 0x1c6   : > { %2191 = vrcp.f32 %v936_v21  ;;  %v893_v27 = vsub.f32 0.0, %v876_v22  ;;  %v3063_v28 = vmax.f32 %v811_v12, %v845_v23  ;;  %v846_v30 = vmul.f32 0.2, %v813_v54  ;;  %v972_v23 = vld [vmem:[%s2861_s30 + $0x68] sm:$0xff] }
 0x1c7   : > { %1038 = vadd.xlane.f32.xlu0 %v1018_v25  ;;  %v996_v55 = vadd.f32 %v980_v37, %v2955_v50  ;;  %2193 = vpow2.f32 %v921_v7  ;;  %v973_v7 = vld [vmem:[%s2861_s30 + $0x70] sm:$0xff] }
 0x1c8   : > { %v2180_v31 = vpop.eup %2179  ;;  %v923_v32 = vmul.f32 1.442695, %v893_v27  ;;  %1428 = vst [vmem:[%s2920_s14 + $0x78] sm:$0xff] %v3063_v28  ;;  %v878_v33 = vmax.f32 %v813_v54, %v846_v30  ;;  %2044 = vmatmul.mubr.f32.gmra.mxu1 %v3063_v28 }
 0x1c9   : > { %v2182_v35 = vpop.eup %2181  ;;  %1435 = vst [vmem:[%s2987_s18 + $0x30] sm:$0xff] %v2180_v31  ;;  %v1019_v36 = vmul.f32 %v2993_v51, %v996_v55  ;;  %1562 = vst [vmem:[%s3007_s21 + $0x28] sm:$0xff] %v996_v55  ;;  %v981_v38 = vmul.f32 %v2180_v31, %v965_v26  ;;  %v974_v31 = vld [vmem:[%s2861_s30 + $0x78] sm:$0xff] }
 0x1ca   : > { %v937_v39 = vadd.f32 1.0, %v2182_v35  ;;  %2195 = vpow2.f32 %v923_v32  ;;  %v894_v50 = vsub.f32 0.0, %v878_v33 }
 0x1cb   : > { %v2184_v41 = vpop.eup %2183  ;;  %1040 = vadd.xlane.f32.xlu1 %v1019_v36  ;;  %v997_v43 = vadd.f32 %v981_v38, %v2961_v61  ;;  %v3120_v38 = vld [vmem:[#allocation2] ss:$0 sm:$0xff] }
 0x1cc   : > { %v2186_v44 = vpop.eup %2185  ;;  %2197 = vrcp.f32 %v937_v39  ;;  %v938_v17 = vadd.f32 1.0, %v2184_v41  ;;  %v925_v45 = vmul.f32 1.442695, %v894_v50 }
 0x1cd   : > { %1436 = vst [vmem:[%s2987_s18 + $0x38] sm:$0xff] %v2186_v44  ;;  %v1020_v46 = vmul.f32 %v2993_v51, %v997_v43  ;;  %1563 = vst [vmem:[%s3007_s21 + $0x30] sm:$0xff] %v997_v43  ;;  %v982_v47 = vmul.f32 %v2186_v44, %v966_v40 }
 0x1ce   : > { %2199 = vrcp.f32 %v938_v17 }
 0x1cf   : > { %v2188_v49 = vpop.eup %2187  ;;  %1042 = vadd.xlane.f32.xlu0 %v1020_v46  ;;  %2201 = vpow2.f32 %v925_v45  ;;  %v998_v61 = vadd.f32 %v982_v47, %v2968_v10 }
 0x1d0   : > { %v2190_v52 = vpop.eup %2189  ;;  %1437 = vst [vmem:[%s2987_s18 + $0x40] sm:$0xff] %v2188_v49  ;;  %v983_v53 = vmul.f32 %v2188_v49, %v967_v48 }
 0x1d1   : > { %v939_v56 = vadd.f32 1.0, %v2190_v52  ;;  %v1021_v57 = vmul.f32 %v2993_v51, %v998_v61  ;;  %1564 = vst [vmem:[%s3007_s21 + $0x38] sm:$0xff] %v998_v61 }
 0x1d2   : > { %v999_v63 = vadd.f32 %v983_v53, %v2975_v24  ;;  %v969_v24 = vld [vmem:[%s2861_s30 + $0x50] sm:$0xff]  ;;  %v1932_v53 = vld [vmem:[%s3517_s7] ss:$0 sm:$0xff]  ;;  %s1579_s30 = scalar_lea.sflag [#allocation13], %s2854_s0 }
 0x1d3   : > { %v2192_v0 = vpop.eup %2191  ;;  %2203 = vrcp.f32 %v939_v56  ;;  %1044 = vadd.xlane.f32.xlu1 %v1021_v57 }
 0x1d4   : > { %v2194_v1 = vpop.eup %2193  ;;  %1438 = vst [vmem:[%s2987_s18 + $0x48] sm:$0xff] %v2192_v0  ;;  %v1022_v10 = vmul.f32 %v2993_v51, %v999_v63  ;;  %1565 = vst [vmem:[%s3007_s21 + $0x40] sm:$0xff] %v999_v63  ;;  %v984_v2 = vmul.f32 %v2192_v0, %v968_v60 }
 0x1d5   : > { %v940_v29 = vadd.f32 1.0, %v2194_v1 }
 0x1d6   : > { %1046 = vadd.xlane.f32.xlu0 %v1022_v10  ;;  %v1000_v3 = vadd.f32 %v984_v2, %v2984_v42 }
 0x1d7   : > { %v2196_v4 = vpop.eup %2195  ;;  %2205 = vrcp.f32 %v940_v29 }
 0x1d8   : > { %v941_v62 = vadd.f32 1.0, %v2196_v4  ;;  %v1023_v5 = vmul.f32 %v2993_v51, %v1000_v3  ;;  %1566 = vst [vmem:[%s3007_s21 + $0x48] sm:$0xff] %v1000_v3 }
 0x1d9   : > { %v2198_v6 = vpop.eup %2197 }
 0x1da   : > { %1439 = vst [vmem:[%s2987_s18 + $0x50] sm:$0xff] %v2198_v6  ;;  %2207 = vrcp.f32 %v941_v62  ;;  %1048 = vadd.xlane.f32.xlu1 %v1023_v5  ;;  %v985_v11 = vmul.f32 %v2198_v6, %v969_v24 }
 0x1db   : > { %v2200_v12 = vpop.eup %2199 }
 0x1dc   : > { %v2202_v13 = vpop.eup %2201  ;;  %1440 = vst [vmem:[%s2987_s18 + $0x58] sm:$0xff] %v2200_v12  ;;  %v1001_v42 = vadd.f32 %v985_v11, %v3001_v59  ;;  %v986_v14 = vmul.f32 %v2200_v12, %v970_v8 }
 0x1dd   : > { %v942_v15 = vadd.f32 1.0, %v2202_v13 }
 0x1de   : > { %v1024_v16 = vmul.f32 %v2993_v51, %v1001_v42  ;;  %1567 = vst [vmem:[%s3007_s21 + $0x50] sm:$0xff] %v1001_v42  ;;  %v1002_v18 = vadd.f32 %v986_v14, %v3017_v19 }
 0x1df   : > { %2209 = vrcp.f32 %v942_v15 }
 0x1e0   : > { %v2204_v21 = vpop.eup %2203  ;;  %1050 = vadd.xlane.f32.xlu0 %v1024_v16  ;;  %v1025_v22 = vmul.f32 %v2993_v51, %v1002_v18  ;;  %1568 = vst [vmem:[%s3007_s21 + $0x58] sm:$0xff] %v1002_v18 }
 0x1e1   : > { %1441 = vst [vmem:[%s2987_s18 + $0x60] sm:$0xff] %v2204_v21  ;;  %v987_v59 = vmul.f32 %v2204_v21, %v971_v20 }
 0x1e2   : > { %1052 = vadd.xlane.f32.xlu1 %v1025_v22 }
 0x1e3   : > { %v1003_v54 = vadd.f32 %v987_v59, %v3028_v34 }
 0x1e4   : > { %v2206_v25 = vpop.eup %2205 }
 0x1e5   : > { %1442 = vst [vmem:[%s2987_s18 + $0x68] sm:$0xff] %v2206_v25  ;;  %v1026_v19 = vmul.f32 %v2993_v51, %v1003_v54  ;;  %1569 = vst [vmem:[%s3007_s21 + $0x60] sm:$0xff] %v1003_v54  ;;  %v988_v37 = vmul.f32 %v2206_v25, %v972_v23 }
 0x1e7   : > { %v2208_v26 = vpop.eup %2207  ;;  %1054 = vadd.xlane.f32.xlu0 %v1026_v19  ;;  %v1004_v27 = vadd.f32 %v988_v37, %v3041_v58 }
 0x1e8   : > { %1443 = vst [vmem:[%s2987_s18 + $0x70] sm:$0xff] %v2208_v26  ;;  %v989_v30 = vmul.f32 %v2208_v26, %v973_v7 }
 0x1e9   : > { %v1027_v55 = vmul.f32 %v2993_v51, %v1004_v27  ;;  %1570 = vst [vmem:[%s3007_s21 + $0x68] sm:$0xff] %v1004_v27 }
 0x1ea   : > { %v1005_v34 = vadd.f32 %v989_v30, %v3051_v9 }
 0x1eb   : > { %1056 = vadd.xlane.f32.xlu1 %v1027_v55 }
 0x1ec   : > { %v2210_v32 = vpop.eup %2209  ;;  %v1028_v33 = vmul.f32 %v2993_v51, %v1005_v34  ;;  %1571 = vst [vmem:[%s3007_s21 + $0x70] sm:$0xff] %v1005_v34 }
 0x1ed   : > { %1444 = vst [vmem:[%s2987_s18 + $0x78] sm:$0xff] %v2210_v32  ;;  %v990_v35 = vmul.f32 %v2210_v32, %v974_v31  ;;  %s2389_s18 = scalar_lea.vmem %s2388_s19, 4096 }
 0x1ee   : > { %1058 = vadd.xlane.f32.xlu0 %v1028_v33  ;;  %p2391_p13 = scmp.lt.s32.totalorder %s2389_s18, %s2383_s5 }
 0x1ef   : > { %v1006_v36 = vadd.f32 %v990_v35, %v3063_v28 }
 0x1f0   : > { %p2392_p1 = por %p2391_p13, %p2390_p9 }
 0x1f1   : > { %v1029_v58 = vmul.f32 %v2993_v51, %v1006_v36  ;;  %1572 = vst [vmem:[%s3007_s21 + $0x78] sm:$0xff] %v1006_v36 }
 0x1f2   : > { %p2393_p4 = pnand %p2392_p1, %p2386_p11 }
 0x1f3   : > { %1060 = vadd.xlane.f32.xlu1 %v1029_v58 }
 0x23f   : > { %v1031_v39 = vpop.xlane.xlu0 %1030 }
 0x240   : > { %v1069_v9 = vadd.f32 %v3120_v38, %v1031_v39 }
 0x242   : > { %1447 = vperm.xlu0 %2145, %v1069_v9  }
 0x243   : > { %v1033_v50 = vpop.xlane.xlu1 %1032 }
 0x244   : > { %v1070_v40 = vadd.f32 %v3120_v38, %v1033_v50 }
 0x246   : > { %1452 = vperm.xlu1 %2146, %v1070_v40  }
 0x247   : > { %v1035_v41 = vpop.xlane.xlu0 %1034 }
 0x248   : > { %v1071_v43 = vadd.f32 %v3120_v38, %v1035_v41 }
 0x24a   : > { %1457 = vperm.xlu1 %2146, %v1071_v43  }
 0x24b   : > { %v1037_v44 = vpop.xlane.xlu1 %1036 }
 0x24c   : > { %v1072_v28 = vadd.f32 %v3120_v38, %v1037_v44 }
 0x24e   : > { %1462 = vperm.xlu1 %2146, %v1072_v28  }
 0x250   : > { %v1039_v51 = vpop.xlane.xlu0 %1038  ;;  %v2024_v46 = vpop.f32.mrf.mxu1 }
 0x251   : > { %v1073_v17 = vadd.f32 %v3120_v38, %v1039_v51  ;;  %v3132_v56 = vadd.f32 %v2024_v46, %v1932_v53 }
 0x252   : > { %v1174_v49 = vpop.f32.mrf.mxu1 }
 0x253   : > { %1467 = vperm.xlu1 %2146, %v1073_v17   ;;  %v3137_v0 = vadd.f32 %v1932_v53, %v1174_v49 }
 0x254   : > { %v1041_v45 = vpop.xlane.xlu1 %1040 }
 0x255   : > { %v1074_v47 = vadd.f32 %v3120_v38, %v1041_v45 }
 0x257   : > { %1472 = vperm.xlu1 %2146, %v1074_v47  }
 0x258   : > { %v1043_v48 = vpop.xlane.xlu0 %1042 }
 0x259   : > { %v1075_v61 = vadd.f32 %v3120_v38, %v1043_v48  ;;  %v2027_v52 = vpop.f32.mrf.mxu1 }
 0x25a   : > { %v3153_v16 = vadd.f32 %v2027_v52, %v1932_v53 }
 0x25b   : > { %1477 = vperm.xlu1 %2146, %v1075_v61   ;;  %v1184_v57 = vpop.f32.mrf.mxu1 }
 0x25c   : > { %v1045_v11 = vpop.xlane.xlu1 %1044  ;;  %v3156_v20 = vadd.f32 %v1932_v53, %v1184_v57 }
 0x25d   : > { %v1076_v25 = vadd.f32 %v3120_v38, %v1045_v11 }
 0x25f   : > { %v1047_v2 = vpop.xlane.xlu0 %1046 }
 0x260   : > { %v1077_v19 = vadd.f32 %v3120_v38, %v1047_v2 }
 0x261   : > { %v2030_v60 = vpop.f32.mrf.mxu1  ;;  %1255 = vmax.xlane.f32.xlu0 %v3132_v56 }
 0x262   : > { %v3135_v63 = vadd.f32 %v2030_v60, %v1932_v53 }
 0x263   : > { %v1194_v1 = vpop.f32.mrf.mxu1  ;;  %v1049_v13 = vpop.xlane.xlu1 %1048 }
 0x264   : > { %v3140_v10 = vadd.f32 %v1932_v53, %v1194_v1  ;;  %v1078_v15 = vadd.f32 %v3120_v38, %v1049_v13 }
 0x265   : > { %1253 = vmax.xlane.f32.xlu0 %v3137_v0 }
 0x268   : > { %v2033_v29 = vpop.f32.mrf.mxu1 }
 0x269   : > { %1261 = vmax.xlane.f32.xlu0 %v3140_v10  ;;  %v3143_v3 = vadd.f32 %v2033_v29, %v1932_v53  ;;  %v1051_v4 = vpop.xlane.xlu0 %1050 }
 0x26a   : > { %v1204_v24 = vpop.f32.mrf.mxu1  ;;  %v1079_v40 = vadd.f32 %v3120_v38, %v1051_v4 }
 0x26b   : > { %v3165_v37 = vadd.f32 %v1932_v53, %v1204_v24  ;;  %v1053_v34 = vpop.xlane.xlu1 %1052 }
 0x26c   : > { %v1080_v58 = vadd.f32 %v3120_v38, %v1053_v34 }
 0x270   : > { %v1055_v62 = vpop.xlane.xlu0 %1054 }
 0x271   : > { %v3146_v5 = vadd.f32 %v3120_v38, %v1055_v62  ;;  %v2036_v6 = vpop.f32.mrf.mxu1 }
 0x272   : > { %v3148_v8 = vadd.f32 %v2036_v6, %v1932_v53 }
 0x273   : > { %v1214_v12 = vpop.f32.mrf.mxu1 }
 0x274   : > { %v3168_v7 = vadd.f32 %v1932_v53, %v1214_v12  ;;  %v1057_v31 = vpop.xlane.xlu1 %1056 }
 0x275   : > { %v1082_v9 = vadd.f32 %v3120_v38, %v1057_v31 }
 0x277   : > { %v3180_v32 = vpop.xlane.xlu0 %1058 }
 0x279   : > { %v2039_v42 = vpop.f32.mrf.mxu1 }
 0x27a   : > { %v3150_v14 = vadd.f32 %v2039_v42, %v1932_v53 }
 0x27b   : > { %v1224_v18 = vpop.f32.mrf.mxu1 }
 0x27c   : > { %v3171_v26 = vadd.f32 %v1932_v53, %v1224_v18  ;;  %v3183_v33 = vpop.xlane.xlu1 %1060 }
 0x27f   : > { %1259 = vmax.xlane.f32.xlu1 %v3153_v16  ;;  %1492 = vperm.xlu0 %2145, %v1078_v15  }
 0x281   : > { %v2042_v21 = vpop.f32.mrf.mxu1 }
 0x282   : > { %v3158_v22 = vadd.f32 %v2042_v21, %v1932_v53 }
 0x283   : > { %1257 = vmax.xlane.f32.xlu1 %v3156_v20  ;;  %v1234_v59 = vpop.f32.mrf.mxu1 }
 0x284   : > { %v3174_v27 = vadd.f32 %v1932_v53, %v1234_v59 }
 0x288   : > { %v2045_v23 = vpop.f32.mrf.mxu1 }
 0x289   : > { %v3161_v54 = vadd.f32 %v2045_v23, %v1932_v53 }
 0x28a   : > { %v1244_v30 = vpop.f32.mrf.mxu1 }
 0x28b   : > { %v3177_v55 = vadd.f32 %v1932_v53, %v1244_v30 }
 0x294   : > { %1482 = vperm.xlu1 %2146, %v1076_v25  }
 0x298   : > { %1487 = vperm.xlu1 %2146, %v1077_v19  }
 0x29e   : > { %1265 = vmax.xlane.f32.xlu0 %v3165_v37 }
 0x2a2   : > { %1269 = vmax.xlane.f32.xlu0 %v3168_v7 }
 0x2a6   : > { %1273 = vmax.xlane.f32.xlu0 %v3171_v26 }
 0x2aa   : > { %1277 = vmax.xlane.f32.xlu0 %v3174_v27 }
 0x2ae   : > { %1281 = vmax.xlane.f32.xlu0 %v3177_v55 }
 0x2bc   : > { %1263 = vmax.xlane.f32.xlu1 %v3135_v63 }
 0x2bd   : > { %v1448_v35 = vpop.permute.xlu0 %1447 }
 0x2be   : > { %1525 = vst [vmem:[%s3186_s12] sm:$0xff] %v1448_v35 }
 0x2c1   : > { %v1453_v36 = vpop.permute.xlu1 %1452 }
 0x2c2   : > { %1526 = vst [vmem:[%s3186_s12 + $0x8] sm:$0xff] %v1453_v36 }
 0x2c4   : > { %1502 = vperm.xlu0 %2145, %v1080_v58  }
 0x2c5   : > { %v1458_v39 = vpop.permute.xlu1 %1457 }
 0x2c6   : > { %1527 = vst [vmem:[%s3186_s12 + $0x10] sm:$0xff] %v1458_v39 }
 0x2c8   : > { %1512 = vperm.xlu0 %2145, %v1082_v9  }
 0x2c9   : > { %v1463_v50 = vpop.permute.xlu1 %1462 }
 0x2ca   : > { %1528 = vst [vmem:[%s3186_s12 + $0x18] sm:$0xff] %v1463_v50  ;;  %v1084_v50 = vadd.f32 %v3120_v38, %v3183_v33 }
 0x2cd   : > { %1497 = vperm.xlu1 %2146, %v1079_v40  }
 0x2ce   : > { %v1468_v41 = vpop.permute.xlu1 %1467 }
 0x2cf   : > { %1529 = vst [vmem:[%s3186_s12 + $0x20] sm:$0xff] %v1468_v41 }
 0x2d2   : > { %v1473_v43 = vpop.permute.xlu1 %1472 }
 0x2d3   : > { %1530 = vst [vmem:[%s3186_s12 + $0x28] sm:$0xff] %v1473_v43 }
 0x2d6   : > { %v1478_v44 = vpop.permute.xlu1 %1477 }
 0x2d7   : > { %1531 = vst [vmem:[%s3186_s12 + $0x30] sm:$0xff] %v1478_v44 }
 0x2ea   : > { %v1256_v28 = vpop.xlane.xlu0 %1255 }
 0x2ee   : > { %v1254_v51 = vpop.xlane.xlu0 %1253 }
 0x2ef   : > { %v3199_v17 = vsub.f32 %v3137_v0, %v1254_v51 }
 0x2f1   : > { %v1301_v45 = vmul.f32 1.442695, %v3199_v17  ;;  %1267 = vmax.xlane.f32.xlu1 %v3143_v3 }
 0x2f2   : > { %v1262_v46 = vpop.xlane.xlu0 %1261 }
 0x2f3   : > { %2211 = vpow2.f32 %v1301_v45  ;;  %v3209_v52 = vsub.f32 %v3140_v10, %v1262_v46  ;;  %v3220_v10 = vsub.f32 %v3132_v56, %v1256_v28 }
 0x2f5   : > { %1271 = vmax.xlane.f32.xlu1 %v3148_v8  ;;  %v1309_v0 = vmul.f32 1.442695, %v3209_v52  ;;  %v1303_v24 = vmul.f32 1.442695, %v3220_v10 }
 0x2f9   : > { %1275 = vmax.xlane.f32.xlu1 %v3150_v14 }
 0x2fa   : > { %v1493_v47 = vpop.permute.xlu0 %1492 }
 0x2fb   : > { %1534 = vst [vmem:[%s3186_s12 + $0x48] sm:$0xff] %v1493_v47 }
 0x2fd   : > { %1279 = vmax.xlane.f32.xlu1 %v3158_v22 }
 0x300   : > { %v2212_v48 = vpop.eup %2211 }
 0x301   : > { %1283 = vmax.xlane.f32.xlu1 %v3161_v54  ;;  %1333 = vadd.xlane.f32.xlu0 %v2212_v48 }
 0x308   : > { %v1260_v49 = vpop.xlane.xlu1 %1259 }
 0x309   : > { %v3223_v4 = vsub.f32 %v3153_v16, %v1260_v49 }
 0x30b   : > { %v1307_v62 = vmul.f32 1.442695, %v3223_v4 }
 0x30c   : > { %v1258_v61 = vpop.xlane.xlu1 %1257 }
 0x30d   : > { %v3212_v53 = vsub.f32 %v3156_v20, %v1258_v61 }
 0x30f   : > { %v1305_v57 = vmul.f32 1.442695, %v3212_v53 }
 0x310   : > { %v1483_v60 = vpop.permute.xlu1 %1482 }
 0x311   : > { %2213 = vpow2.f32 %v1305_v57  ;;  %1532 = vst [vmem:[%s3186_s12 + $0x38] sm:$0xff] %v1483_v60 }
 0x312   : > { %1507 = vperm.xlu1 %2146, %v3146_v5   ;;  %2215 = vpow2.f32 %v1309_v0 }
 0x313   : > { %2217 = vpow2.f32 %v1303_v24 }
 0x314   : > { %v1488_v1 = vpop.permute.xlu1 %1487  ;;  %2219 = vpow2.f32 %v1307_v62  ;;  %v1083_v62 = vadd.f32 %v3120_v38, %v3180_v32 }
 0x315   : > { %1533 = vst [vmem:[%s3186_s12 + $0x40] sm:$0xff] %v1488_v1 }
 0x31e   : > { %v2214_v2 = vpop.eup %2213 }
 0x31f   : > { %1337 = vadd.xlane.f32.xlu0 %v2214_v2  ;;  %v2216_v29 = vpop.eup %2215 }
 0x320   : > { %v2218_v21 = vpop.eup %2217 }
 0x321   : > { %v2220_v25 = vpop.eup %2219 }
 0x323   : > { %1341 = vadd.xlane.f32.xlu0 %v2216_v29 }
 0x327   : > { %v1266_v6 = vpop.xlane.xlu0 %1265 }
 0x328   : > { %v3228_v5 = vsub.f32 %v3165_v37, %v1266_v6 }
 0x32a   : > { %v1313_v11 = vmul.f32 1.442695, %v3228_v5 }
 0x32b   : > { %v1270_v12 = vpop.xlane.xlu0 %1269 }
 0x32c   : > { %2221 = vpow2.f32 %v1313_v11  ;;  %v3232_v56 = vsub.f32 %v3168_v7, %v1270_v12 }
 0x32e   : > { %v1317_v13 = vmul.f32 1.442695, %v3232_v56 }
 0x32f   : > { %v1274_v42 = vpop.xlane.xlu0 %1273 }
 0x330   : > { %2223 = vpow2.f32 %v1317_v13  ;;  %v3236_v15 = vsub.f32 %v3171_v26, %v1274_v42 }
 0x332   : > { %v1321_v16 = vmul.f32 1.442695, %v3236_v15 }
 0x333   : > { %v1278_v18 = vpop.xlane.xlu0 %1277 }
 0x334   : > { %2225 = vpow2.f32 %v1321_v16  ;;  %v3240_v20 = vsub.f32 %v3174_v27, %v1278_v18 }
 0x336   : > { %v1325_v59 = vmul.f32 1.442695, %v3240_v20  ;;  %1335 = vadd.xlane.f32.xlu1 %v2218_v21 }
 0x337   : > { %v1282_v23 = vpop.xlane.xlu0 %1281 }
 0x338   : > { %2227 = vpow2.f32 %v1325_v59  ;;  %v3244_v19 = vsub.f32 %v3177_v55, %v1282_v23 }
 0x339   : > { %v2222_v37 = vpop.eup %2221 }
 0x33a   : > { %v1329_v7 = vmul.f32 1.442695, %v3244_v19  ;;  %1339 = vadd.xlane.f32.xlu1 %v2220_v25  ;;  %1345 = vadd.xlane.f32.xlu0 %v2222_v37 }
 0x33c   : > { %2229 = vpow2.f32 %v1329_v7 }
 0x33d   : > { %v2224_v26 = vpop.eup %2223 }
 0x33e   : > { %1349 = vadd.xlane.f32.xlu0 %v2224_v26 }
 0x33f   : > { %v1503_v27 = vpop.permute.xlu0 %1502 }
 0x340   : > { %1536 = vst [vmem:[%s3186_s12 + $0x58] sm:$0xff] %v1503_v27 }
 0x341   : > { %v2226_v30 = vpop.eup %2225 }
 0x342   : > { %1353 = vadd.xlane.f32.xlu0 %v2226_v30 }
 0x343   : > { %v1513_v34 = vpop.permute.xlu0 %1512 }
 0x344   : > { %1538 = vst [vmem:[%s3186_s12 + $0x68] sm:$0xff] %v1513_v34 }
 0x345   : > { %v2228_v31 = vpop.eup %2227  ;;  %v1264_v35 = vpop.xlane.xlu1 %1263 }
 0x346   : > { %v3250_v55 = vsub.f32 %v3135_v63, %v1264_v35  ;;  %1357 = vadd.xlane.f32.xlu0 %v2228_v31 }
 0x348   : > { %v1311_v36 = vmul.f32 1.442695, %v3250_v55 }
 0x349   : > { %v2230_v58 = vpop.eup %2229  ;;  %v1498_v39 = vpop.permute.xlu1 %1497 }
 0x34a   : > { %2231 = vpow2.f32 %v1311_v36  ;;  %1535 = vst [vmem:[%s3186_s12 + $0x50] sm:$0xff] %v1498_v39  ;;  %1361 = vadd.xlane.f32.xlu0 %v2230_v58 }
 0x357   : > { %v2232_v9 = vpop.eup %2231 }
 0x358   : > { %1343 = vadd.xlane.f32.xlu1 %v2232_v9 }
 0x360   : > { %1522 = vperm.xlu0 %2145, %v1084_v50  }
 0x37a   : > { %v1268_v40 = vpop.xlane.xlu1 %1267 }
 0x37b   : > { %v3257_v41 = vsub.f32 %v3143_v3, %v1268_v40 }
 0x37d   : > { %v1315_v63 = vmul.f32 1.442695, %v3257_v41 }
 0x37e   : > { %v1272_v43 = vpop.xlane.xlu1 %1271 }
 0x37f   : > { %2233 = vpow2.f32 %v1315_v63  ;;  %v3261_v44 = vsub.f32 %v3148_v8, %v1272_v43 }
 0x381   : > { %v1319_v28 = vmul.f32 1.442695, %v3261_v44 }
 0x382   : > { %v1276_v51 = vpop.xlane.xlu1 %1275 }
 0x383   : > { %2235 = vpow2.f32 %v1319_v28  ;;  %v3265_v45 = vsub.f32 %v3150_v14, %v1276_v51 }
 0x385   : > { %v1323_v33 = vmul.f32 1.442695, %v3265_v45 }
 0x386   : > { %v1280_v46 = vpop.xlane.xlu1 %1279 }
 0x387   : > { %2237 = vpow2.f32 %v1323_v33  ;;  %v3269_v3 = vsub.f32 %v3158_v22, %v1280_v46 }
 0x389   : > { %v1327_v47 = vmul.f32 1.442695, %v3269_v3 }
 0x38a   : > { %v1284_v48 = vpop.xlane.xlu1 %1283  ;;  %v1334_v8 = vpop.xlane.xlu0 %1333 }
 0x38b   : > { %2239 = vpow2.f32 %v1327_v47  ;;  %v3273_v49 = vsub.f32 %v3161_v54, %v1284_v48 }
 0x38c   : > { %v2234_v61 = vpop.eup %2233  ;;  %2241 = vlog2.f32 %v1334_v8 }
 0x38d   : > { %v1331_v14 = vmul.f32 1.442695, %v3273_v49  ;;  %1347 = vadd.xlane.f32.xlu1 %v2234_v61 }
 0x38e   : > { %v1508_v57 = vpop.permute.xlu1 %1507 }
 0x38f   : > { %2243 = vpow2.f32 %v1331_v14  ;;  %1537 = vst [vmem:[%s3186_s12 + $0x60] sm:$0xff] %v1508_v57 }
 0x390   : > { %v2236_v60 = vpop.eup %2235 }
 0x391   : > { %1351 = vadd.xlane.f32.xlu1 %v2236_v60 }
 0x394   : > { %v2238_v22 = vpop.eup %2237 }
 0x395   : > { %1355 = vadd.xlane.f32.xlu1 %v2238_v22 }
 0x398   : > { %v2240_v0 = vpop.eup %2239 }
 0x399   : > { %v2242_v1 = vpop.eup %2241  ;;  %1359 = vadd.xlane.f32.xlu1 %v2240_v0 }
 0x39a   : > { %v1366_v54 = vmul.f32 0.6931472, %v2242_v1 }
 0x39c   : > { %v2244_v2 = vpop.eup %2243  ;;  %v1397_v29 = vsub.f32 %v3199_v17, %v1366_v54 }
 0x39d   : > { %1363 = vadd.xlane.f32.xlu1 %v2244_v2 }
 0x39e   : > { %1541 = vst [vmem:[%s3279_s6] sm:$0xff] %v1397_v29 }
 0x3a8   : > { %v1338_v24 = vpop.xlane.xlu0 %1337 }
 0x3a9   : > { %2245 = vlog2.f32 %v1338_v24 }
 0x3ac   : > { %v1342_v6 = vpop.xlane.xlu0 %1341 }
 0x3ad   : > { %2247 = vlog2.f32 %v1342_v6 }
 0x3ae   : > { %1517 = vperm.xlu1 %2146, %v1083_v62  }
 0x3b6   : > { %v2246_v11 = vpop.eup %2245 }
 0x3b7   : > { %v1370_v12 = vmul.f32 0.6931472, %v2246_v11 }
 0x3b9   : > { %v1399_v17 = vsub.f32 %v3212_v53, %v1370_v12 }
 0x3ba   : > { %v2248_v13 = vpop.eup %2247 }
 0x3bb   : > { %1543 = vst [vmem:[%s3279_s6 + $0x10] sm:$0xff] %v1399_v17  ;;  %v1374_v38 = vmul.f32 0.6931472, %v2248_v13 }
 0x3bc   : > { %2396 = shalt.err (!%p2393_p4)
}
 0x3bd   : > { %s2397_s22 = scalar_lea.hbm %s3293_s23, 2048  ;;  %s2401_s27 = scalar_lea.hbm %s3519_s9, 4096 }
 0x3be   : > { %p2398_p10 = scmp.ne.s32.totalorder %s3293_s23, %s2397_s22  ;;  %p2402_p2 = scmp.lt.s32.totalorder %s3293_s23, %s3519_s9 }
 0x3bf   : > { %p2403_p6 = scmp.lt.s32.totalorder %s2401_s27, %s2397_s22 }
 0x3c0   : > { %p2399_p7 = pnand %p2398_p10, %p3566_p5 }
 0x3c1   : > { %p2404_p12 = por %p2403_p6, %p2402_p2 }
 0x3c2   : > { %p2400_p8 = pneg %p2399_p7 }
 0x3c4   : > { %p2405_p0 = pnand %p2404_p12, %p2400_p8 }
 0x3c6   : > { %2408 = shalt.err (!%p2405_p0)
}
 0x3c7   : > { %s2583_s5 = smov 128   ;;  %s2584_s28 = smov 8   ;;  %v1401_v32 = vsub.f32 %v3209_v52, %v1374_v38  ;;  %v1336_v53 = vpop.xlane.xlu1 %1335 }
 0x3c8   : > { %2059 = dma.vmem_to_hbm [thread:$0]  (%p3566_p5), %s3296_s25, 2048, %s3293_s23, %s1579_s30, %s2583_s5, %s2583_s5, %s2584_s28   ;;  %2249 = vlog2.f32 %v1336_v53 }
 0x3c9   : > { %1545 = vst [vmem:[%s3279_s6 + $0x20] sm:$0xff] %v1401_v32  ;;  %s3330_s22 = scalar_lea.hbm %s3518_s8, %s3285_s17  ;;  %s1607_s29 = sshll.u32 %s2920_s14, 4  ;;  %s3333_s29 = int_to_ptr.vmem [resolvable:$true] %s1607_s29 }
 0x3ca   : > { %s1574_s13 = scalar_lea.sflag [#allocation5], %s2843_s16  ;;  %s2409_s27 = scalar_lea.vmem %s3333_s29, 2048 }
 0x3cb   : > { %p2410_p3 = scmp.ne.s32.totalorder %s3333_s29, %s2409_s27  ;;  %s2585_s25 = smov [#allocation11]  }
 0x3cc   : > { %s2413_s23 = sshll.u32 %s2585_s25, 4  ;;  %s2414_s23 = int_to_ptr.vmem [resolvable:$false] %s2413_s23 }
 0x3cd   : > { %p2411_p11 = pnand %p2410_p3, %p3566_p5  ;;  %s2415_s20 = scalar_lea.vmem %s2414_s23, 4096 }
 0x3ce   : > { %p2416_p13 = scmp.lt.s32.totalorder %s3333_s29, %s2414_s23  ;;  %p2417_p1 = scmp.lt.s32.totalorder %s2415_s20, %s2409_s27 }
 0x3cf   : > { %p2412_p9 = pneg %p2411_p11 }
 0x3d0   : > { %p2418_p4 = por %p2417_p1, %p2416_p13 }
 0x3d2   : > { %p2419_p10 = pnand %p2418_p4, %p2412_p9 }
 0x3d4   : > { %2422 = shalt.err (!%p2419_p10)
}
 0x3d5   : > { %s2423_s14 = scalar_lea.hbm %s3330_s22, 2048  ;;  %s2427_s19 = scalar_lea.hbm %s3518_s8, 4096 }
 0x3d6   : > { %p2424_p7 = scmp.ne.s32.totalorder %s3330_s22, %s2423_s14  ;;  %p2428_p6 = scmp.lt.s32.totalorder %s3330_s22, %s3518_s8 }
 0x3d7   : > { %p2429_p12 = scmp.lt.s32.totalorder %s2427_s19, %s2423_s14 }
 0x3d8   : > { %p2425_p8 = pnand %p2424_p7, %p3566_p5 }
 0x3d9   : > { %p2430_p0 = por %p2429_p12, %p2428_p6 }
 0x3da   : > { %p2426_p2 = pneg %p2425_p8 }
 0x3dc   : > { %p2431_p3 = pnand %p2430_p0, %p2426_p2 }
 0x3de   : > { %2434 = shalt.err (!%p2431_p3)
}
 0x3df   : > { %2058 = dma.vmem_to_hbm [thread:$0]  (%p3566_p5), %s3333_s29, 2048, %s3330_s22, %s1574_s13, %s2583_s5, %s2583_s5, %s2584_s28   ;;  %v1340_v52 = vpop.xlane.xlu1 %1339  ;;  %v1346_v42 = vpop.xlane.xlu0 %1345 }
 0x3e0   : > { %2251 = vlog2.f32 %v1340_v52  ;;  %v2250_v21 = vpop.eup %2249  ;;  %s1639_s22 = sshll.u32 %s3186_s12, 4  ;;  %s3383_s27 = scalar_lea.hbm %s3520_s10, %s3285_s17  ;;  %s3385_s22 = int_to_ptr.vmem [resolvable:$true] %s1639_s22 }
 0x3e1   : > { %2253 = vlog2.f32 %v1346_v42  ;;  %v1368_v59 = vmul.f32 0.6931472, %v2250_v21  ;;  %s2435_s23 = scalar_lea.vmem %s3385_s22, 2048  ;;  %s2586_s20 = smov [#allocation14]  }
 0x3e2   : > { %p2436_p11 = scmp.ne.s32.totalorder %s3385_s22, %s2435_s23  ;;  %s2439_s14 = sshll.u32 %s2586_s20, 4  ;;  %s2440_s14 = int_to_ptr.vmem [resolvable:$false] %s2439_s14 }
 0x3e3   : > { %v1350_v16 = vpop.xlane.xlu0 %1349  ;;  %v1398_v25 = vsub.f32 %v3220_v10, %v1368_v59  ;;  %v1344_v43 = vpop.xlane.xlu1 %1343  ;;  %s2441_s16 = scalar_lea.vmem %s2440_s14, 4096  ;;  %p2442_p1 = scmp.lt.s32.totalorder %s3385_s22, %s2440_s14 }
 0x3e4   : > { %2255 = vlog2.f32 %v1350_v16  ;;  %p2437_p9 = pnand %p2436_p11, %p3566_p5  ;;  %p2443_p4 = scmp.lt.s32.totalorder %s2441_s16, %s2435_s23 }
 0x3e5   : > { %1542 = vst [vmem:[%s3279_s6 + $0x8] sm:$0xff] %v1398_v25 }
 0x3e6   : > { %p2438_p13 = pneg %p2437_p9  ;;  %p2444_p10 = por %p2443_p4, %p2442_p1 }
 0x3e7   : > { %v1354_v18 = vpop.xlane.xlu0 %1353 }
 0x3e8   : > { %2257 = vlog2.f32 %v1354_v18  ;;  %p2445_p7 = pnand %p2444_p10, %p2438_p13 }
 0x3eb   : > { %v1358_v23 = vpop.xlane.xlu0 %1357 }
 0x3ec   : > { %2259 = vlog2.f32 %v1358_v23 }
 0x3ed   : > { %v2252_v37 = vpop.eup %2251 }
 0x3ee   : > { %v2254_v7 = vpop.eup %2253  ;;  %v1372_v26 = vmul.f32 0.6931472, %v2252_v37 }
 0x3ef   : > { %v1378_v27 = vmul.f32 0.6931472, %v2254_v7  ;;  %v1362_v30 = vpop.xlane.xlu0 %1361 }
 0x3f0   : > { %v1400_v34 = vsub.f32 %v3223_v4, %v1372_v26  ;;  %2261 = vlog2.f32 %v1362_v30 }
 0x3f1   : > { %v2256_v31 = vpop.eup %2255  ;;  %v1403_v35 = vsub.f32 %v3228_v5, %v1378_v27  ;;  %2263 = vlog2.f32 %v1344_v43 }
 0x3f2   : > { %1544 = vst [vmem:[%s3279_s6 + $0x18] sm:$0xff] %v1400_v34  ;;  %v1382_v36 = vmul.f32 0.6931472, %v2256_v31 }
 0x3f3   : > { %1547 = vst [vmem:[%s3279_s6 + $0x30] sm:$0xff] %v1403_v35  ;;  %v1523_v9 = vpop.permute.xlu0 %1522 }
 0x3f4   : > { %v1405_v10 = vsub.f32 %v3232_v56, %v1382_v36  ;;  %1540 = vst [vmem:[%s3186_s12 + $0x78] sm:$0xff] %v1523_v9 }
 0x3f5   : > { %v2258_v58 = vpop.eup %2257 }
 0x3f6   : > { %1549 = vst [vmem:[%s3279_s6 + $0x40] sm:$0xff] %v1405_v10  ;;  %v1386_v39 = vmul.f32 0.6931472, %v2258_v58 }
 0x3f8   : > { %v1407_v50 = vsub.f32 %v3236_v15, %v1386_v39 }
 0x3f9   : > { %v2260_v4 = vpop.eup %2259 }
 0x3fa   : > { %1551 = vst [vmem:[%s3279_s6 + $0x50] sm:$0xff] %v1407_v50  ;;  %v1390_v40 = vmul.f32 0.6931472, %v2260_v4 }
 0x3fc   : > { %v1409_v5 = vsub.f32 %v3240_v20, %v1390_v40 }
 0x3fd   : > { %v2262_v63 = vpop.eup %2261 }
 0x3fe   : > { %1553 = vst [vmem:[%s3279_s6 + $0x60] sm:$0xff] %v1409_v5  ;;  %v1394_v28 = vmul.f32 0.6931472, %v2262_v63  ;;  %v2264_v51 = vpop.eup %2263 }
 0x3ff   : > { %v1376_v33 = vmul.f32 0.6931472, %v2264_v51 }
 0x400   : > { %v1411_v56 = vsub.f32 %v3244_v19, %v1394_v28 }
 0x401   : > { %v1402_v15 = vsub.f32 %v3250_v55, %v1376_v33 }
 0x402   : > { %1555 = vst [vmem:[%s3279_s6 + $0x70] sm:$0xff] %v1411_v56 }
 0x403   : > { %1546 = vst [vmem:[%s3279_s6 + $0x28] sm:$0xff] %v1402_v15 }
 0x416   : > { %v1348_v46 = vpop.xlane.xlu1 %1347 }
 0x417   : > { %2265 = vlog2.f32 %v1348_v46 }
 0x41a   : > { %v1352_v47 = vpop.xlane.xlu1 %1351 }
 0x41b   : > { %2267 = vlog2.f32 %v1352_v47 }
 0x41e   : > { %v1356_v20 = vpop.xlane.xlu1 %1355 }
 0x41f   : > { %2269 = vlog2.f32 %v1356_v20 }
 0x422   : > { %v1360_v48 = vpop.xlane.xlu1 %1359 }
 0x423   : > { %2271 = vlog2.f32 %v1360_v48 }
 0x424   : > { %v2266_v8 = vpop.eup %2265 }
 0x425   : > { %v1380_v19 = vmul.f32 0.6931472, %v2266_v8 }
 0x426   : > { %v1364_v61 = vpop.xlane.xlu1 %1363 }
 0x427   : > { %v1404_v14 = vsub.f32 %v3257_v41, %v1380_v19  ;;  %2273 = vlog2.f32 %v1364_v61 }
 0x428   : > { %v2268_v55 = vpop.eup %2267 }
 0x429   : > { %1548 = vst [vmem:[%s3279_s6 + $0x38] sm:$0xff] %v1404_v14  ;;  %v1384_v57 = vmul.f32 0.6931472, %v2268_v55 }
 0x42a   : > { %v1518_v60 = vpop.permute.xlu1 %1517 }
 0x42b   : > { %v1406_v22 = vsub.f32 %v3261_v44, %v1384_v57  ;;  %1539 = vst [vmem:[%s3186_s12 + $0x70] sm:$0xff] %v1518_v60 }
 0x42c   : > { %v2270_v0 = vpop.eup %2269 }
 0x42d   : > { %2448 = shalt.err (!%p2445_p7)
}
 0x42e   : > { %s2449_s12 = scalar_lea.hbm %s3383_s27, 2048  ;;  %s2453_s18 = scalar_lea.hbm %s3520_s10, 4096 }
 0x42f   : > { %p2450_p8 = scmp.ne.s32.totalorder %s3383_s27, %s2449_s12  ;;  %p2454_p12 = scmp.lt.s32.totalorder %s3383_s27, %s3520_s10 }
 0x430   : > { %p2455_p0 = scmp.lt.s32.totalorder %s2453_s18, %s2449_s12 }
 0x431   : > { %p2451_p2 = pnand %p2450_p8, %p3566_p5 }
 0x432   : > { %p2456_p3 = por %p2455_p0, %p2454_p12 }
 0x433   : > { %p2452_p6 = pneg %p2451_p2 }
 0x435   : > { %p2457_p11 = pnand %p2456_p3, %p2452_p6 }
 0x437   : > { %2460 = shalt.err (!%p2457_p11)
}
 0x438   : > { %2060 = dma.vmem_to_hbm [thread:$0]  (%p3566_p5), %s3385_s22, 2048, %s3383_s27, %s1579_s30, %s2583_s5, %s2583_s5, %s2584_s28   ;;  %v1388_v41 = vmul.f32 0.6931472, %v2270_v0  ;;  %v2272_v1 = vpop.eup %2271 }
 0x439   : > { %1550 = vst [vmem:[%s3279_s6 + $0x48] sm:$0xff] %v1406_v22  ;;  %v1392_v54 = vmul.f32 0.6931472, %v2272_v1  ;;  %v2274_v29 = vpop.eup %2273  ;;  %s1655_s13 = sshll.u32 %s3279_s6, 4  ;;  %s1671_s23 = sshll.u32 %s3007_s21, 4  ;;  %s3428_s13 = int_to_ptr.vmem [resolvable:$true] %s1655_s13  ;;  %s3436_s23 = int_to_ptr.vmem [resolvable:$true] %s1671_s23 }
 0x43a   : > { %v1408_v44 = vsub.f32 %v3265_v45, %v1388_v41  ;;  %v1396_v24 = vmul.f32 0.6931472, %v2274_v29  ;;  %s3426_s27 = scalar_lea.hbm %s3521_s11, %s3285_s17  ;;  %s3567_s16 = sld [smem:[#allocation33_spill]] }
 0x43b   : > { %v1410_v2 = vsub.f32 %v3269_v3, %v1392_v54  ;;  %s1589_s21 = scalar_lea.sflag [#allocation16], %s2854_s0  ;;  %s2461_s2 = scalar_lea.vmem %s3428_s13, 2048 }
 0x43c   : > { %1552 = vst [vmem:[%s3279_s6 + $0x58] sm:$0xff] %v1408_v44  ;;  %v1412_v62 = vsub.f32 %v3273_v49, %v1396_v24  ;;  %p2462_p9 = scmp.ne.s32.totalorder %s3428_s13, %s2461_s2  ;;  %s2587_s19 = smov [#allocation15]  }
 0x43d   : > { %1554 = vst [vmem:[%s3279_s6 + $0x68] sm:$0xff] %v1410_v2  ;;  %s2465_s18 = sshll.u32 %s2587_s19, 4  ;;  %s2466_s18 = int_to_ptr.vmem [resolvable:$false] %s2465_s18 }
 0x43e   : > { %1556 = vst [vmem:[%s3279_s6 + $0x78] sm:$0xff] %v1412_v62  ;;  %p2463_p13 = pnand %p2462_p9, %p3566_p5  ;;  %s2467_s25 = scalar_lea.vmem %s2466_s18, 4096 }
 0x43f   : > { %p2468_p4 = scmp.lt.s32.totalorder %s3428_s13, %s2466_s18  ;;  %p2469_p10 = scmp.lt.s32.totalorder %s2467_s25, %s2461_s2 }
 0x440   : > { %s3434_s12 = scalar_lea.hbm %s3567_s16, %s3285_s17  ;;  %p2464_p1 = pneg %p2463_p13 }
 0x441   : > { %p2470_p7 = por %p2469_p10, %p2468_p4 }
 0x443   : > { %p2471_p8 = pnand %p2470_p7, %p2464_p1 }
 0x445   : > { %2474 = shalt.err (!%p2471_p8)
}
 0x446   : > { %s2475_s6 = scalar_lea.hbm %s3426_s27, 2048  ;;  %s2479_s30 = scalar_lea.hbm %s3521_s11, 4096 }
 0x447   : > { %p2476_p2 = scmp.ne.s32.totalorder %s3426_s27, %s2475_s6  ;;  %p2480_p0 = scmp.lt.s32.totalorder %s3426_s27, %s3521_s11 }
 0x448   : > { %p2481_p3 = scmp.lt.s32.totalorder %s2479_s30, %s2475_s6 }
 0x449   : > { %p2477_p6 = pnand %p2476_p2, %p3566_p5 }
 0x44a   : > { %p2482_p11 = por %p2481_p3, %p2480_p0 }
 0x44b   : > { %p2478_p12 = pneg %p2477_p6 }
 0x44d   : > { %p2483_p9 = pnand %p2482_p11, %p2478_p12 }
 0x44f   : > { %2486 = shalt.err (!%p2483_p9)
}
 0x450   : > { %2061 = dma.vmem_to_hbm [thread:$0]  (%p3566_p5), %s3428_s13, 2048, %s3426_s27, %s1589_s21, %s2583_s5, %s2583_s5, %s2584_s28  }
 0x451   : > { %s2487_s14 = scalar_lea.vmem %s3436_s23, 2048  ;;  %s2588_s2 = smov [#allocation17]  }
 0x452   : > { %p2488_p13 = scmp.ne.s32.totalorder %s3436_s23, %s2487_s14  ;;  %s2491_s19 = sshll.u32 %s2588_s2, 4  ;;  %s2492_s19 = int_to_ptr.vmem [resolvable:$false] %s2491_s19 }
 0x453   : > { %s2493_s18 = scalar_lea.vmem %s2492_s19, 4096  ;;  %p2494_p10 = scmp.lt.s32.totalorder %s3436_s23, %s2492_s19 }
 0x454   : > { %p2489_p1 = pnand %p2488_p13, %p3566_p5  ;;  %p2495_p7 = scmp.lt.s32.totalorder %s2493_s18, %s2487_s14 }
 0x456   : > { %p2490_p4 = pneg %p2489_p1  ;;  %p2496_p8 = por %p2495_p7, %p2494_p10 }
 0x458   : > { %p2497_p2 = pnand %p2496_p8, %p2490_p4 }
 0x45a   : > { %2500 = shalt.err (!%p2497_p2)
}
 0x45b   : > { %s2501_s25 = scalar_lea.hbm %s3434_s12, 2048  ;;  %s2505_s6 = scalar_lea.hbm %s3567_s16, 4096 }
 0x45c   : > { %p2502_p6 = scmp.ne.s32.totalorder %s3434_s12, %s2501_s25  ;;  %p2506_p3 = scmp.lt.s32.totalorder %s3434_s12, %s3567_s16 }
 0x45d   : > { %p2507_p11 = scmp.lt.s32.totalorder %s2505_s6, %s2501_s25 }
 0x45e   : > { %p2503_p12 = pnand %p2502_p6, %p3566_p5 }
 0x45f   : > { %p2508_p9 = por %p2507_p11, %p2506_p3 }
 0x460   : > { %p2504_p0 = pneg %p2503_p12 }
 0x462   : > { %p2509_p13 = pnand %p2508_p9, %p2504_p0 }
 0x464   : > { %2512 = shalt.err (!%p2509_p13)
}
 0x465   : > { %2062 = dma.vmem_to_hbm [thread:$0]  (%p3566_p5), %s3436_s23, 2048, %s3434_s12, %s1589_s21, %s2583_s5, %s2583_s5, %s2584_s28  }
 0x466 PF: > { %s3568_s30 = sld [smem:[#allocation25_spill]]  ;;  %p3571_p4 = scmp.ge.s32.totalorder %s2571_s26, 2 }
 0x467   : > { %s3569_s22 = sld [smem:[#allocation27_spill]] }
 0x46c   : > { %s1686_s20 = sand.u32 1, %s3568_s30  }
 0x46d   : > { %p3570_p1 = scmp.ne.s32.totalorder %s3569_s22, 0  ;;  %s1687_s14 = scalar_lea.sflag [#allocation5], %s1686_s20 }
 0x46f   : > { %p2083_p10 = pnand %p3571_p4, %p3570_p1 }
 0x471   : > { %p2084_p7 = pneg %p2083_p10 }
 0x473   : > { %2546 = dma.done.wait (%p2084_p7), %s1687_s14, 2048  }
 0x474   : > { %2548 = vsyncadd (%p2084_p7), %s1687_s14, 4294965248  ;;  %s3572_s15 = sadd.s32 4294967294, %s2571_s26  }
 0x475   : > { %s1695_s2 = sand.u32 1, %s3572_s15  }
 0x476   : > { %s1696_s19 = scalar_lea.sflag [#allocation13], %s1695_s2 }
 0x477   : > { %2550 = dma.done.wait (%p2084_p7), %s1696_s19, 4096  }
 0x478   : > { %2552 = vsyncadd (%p2084_p7), %s1696_s19, 4294963200  ;;  %s1714_s0 = scalar_lea.sflag [#allocation16], %s1695_s2 }
 0x479   : > { %2554 = dma.done.wait (%p2084_p7), %s1714_s0, 4096  }
 0x47a   : > { %2556 = vsyncadd (%p2084_p7), %s1714_s0, 4294963200  ;;  %s3573_s26 = sld [smem:[#allocation28_spill]]  ;;  %s3576_s23 = smov %s2563_s24 }
 0x47b   : > { %s3574_s5 = sld [smem:[#allocation26_spill]] }
 0x47c   : > { %s3575_s25 = sld [smem:[#allocation29_spill]] }
 0x480   : > { %p38_p5 = scmp.ge.s32.totalorder %s3573_s26, 4  }
 0x481   : > { %s3577_s24 = smov %s3574_s5 }
 0x482   :  { %40 = sbr.rel (!%p38_p5) target bundleno = 17 (0x11), region = 182 }
 0x487   :  { %1728 = vsyncpa [#allocation4], 1 }
 0x488   :  { %1730 = vsyncpa [#allocation4 + $0x1], 1 }
 0x489   :  { %1731 = vsyncpa [#allocation7], 1 }
 0x48a   :  { %1733 = vsyncpa [#allocation7 + $0x1], 1 }
 0x48b   :  { %1734 = vsyncpa [#allocation10], 1 }
 0x48c   :  { %1735 = vsyncpa [#allocation5], 1 }
 0x48d   :  { %1737 = vsyncpa [#allocation5 + $0x1], 1 }
 0x48e   :  { %1738 = vsyncpa [#allocation13], 1 }
 0x48f   :  { %1740 = vsyncpa [#allocation13 + $0x1], 1 }
 0x490   :  { %1741 = vsyncpa [#allocation16], 1 }
 0x491   :  { %1743 = vsyncpa [#allocation16 + $0x1], 1 }

// kernel: tpu_custom_call.1
= control target key start
LH: loop header
LB: loop body
LE: loop exit
PB: predicated region body
PF: predicated region fallthrough
CT: control target
= control target key end

     0   :  { %s3510_s0 = inlined_call_operand.hbm [shape: f32[256,256], index: 0, kind: input, shape index: {}]   ;;  %s3511_s1 = inlined_call_operand.hbm [shape: f32[256,128], index: 1, kind: input, shape index: {}]   ;;  %s3512_s2 = inlined_call_operand.hbm [shape: f32[256,256], index: 2, kind: input, shape index: {}]   ;;  %s3513_s3 = inlined_call_operand.vmem [shape: f32[1,256], index: 3, kind: input, shape index: {}]   ;;  %s3514_s4 = inlined_call_operand.vmem [shape: f32[1,128], index: 4, kind: input, shape index: {}]   ;;  %s3515_s5 = inlined_call_operand.<no memory space> [shape: f32[1,1], index: 5, kind: input, shape index: {}]   ;;  %s3516_s6 = inlined_call_operand.hbm [shape: f32[128,128], index: 6, kind: input, shape index: {}]   ;;  %s3517_s7 = inlined_call_operand.vmem [shape: f32[1,128], index: 7, kind: input, shape index: {}]   ;;  %s3518_s8 = inlined_call_operand.hbm [shape: f32[256,128], index: 8, kind: output, shape index: {0}]   ;;  %s3519_s9 = inlined_call_operand.hbm [shape: f32[256,128], index: 9, kind: output, shape index: {1}]   ;;  %s3520_s10 = inlined_call_operand.hbm [shape: f32[256,128], index: 10, kind: output, shape index: {2}]   ;;  %s3521_s11 = inlined_call_operand.hbm [shape: f32[256,128], index: 11, kind: output, shape index: {3}]   ;;  %s3522_s12 = inlined_call_operand.hbm [shape: f32[256,128], index: 12, kind: output, shape index: {4}]  }
   0x1   :  { %3537 = sst [smem:[#allocation30_spill]] %s3510_s0  ;;  %v18_v0 = vstv %s3515_s5 }
   0x2   :  { %3538 = sst [smem:[#allocation31_spill]] %s3512_s2  ;;  %19 = vst [vmem:[#allocation2] sm:$0x1] %v18_v0 }
   0x3   :  { %3539 = sst [smem:[#allocation32_spill]] %s3516_s6 }
   0x4   :  { %3540 = sst [smem:[#allocation33_spill]] %s3522_s12 }
   0x5   :  { %20 = vsyncpa [#allocation4], 0 }
   0x6   :  { %22 = vsyncpa [#allocation4 + $0x1], 0 }
   0x7   :  { %23 = vsyncpa [#allocation7], 0 }
   0x8   :  { %25 = vsyncpa [#allocation7 + $0x1], 0 }
   0x9   :  { %26 = vsyncpa [#allocation10], 0 }
   0xa   :  { %27 = vsyncpa [#allocation5], 0 }
   0xb   :  { %29 = vsyncpa [#allocation5 + $0x1], 0 }
   0xc   :  { %30 = vsyncpa [#allocation13], 0 }
   0xd   :  { %32 = vsyncpa [#allocation13 + $0x1], 0 }
   0xe   :  { %33 = vsyncpa [#allocation16], 0 }
   0xf   :  { %35 = vsyncpa [#allocation16 + $0x1], 0  ;;  %s2657_s23 = smov 0   ;;  %s2659_s24 = smov 0  }
  0x10   :  { %s2661_s25 = smov 0   ;;  %s2663_s26 = smov 0  }
  0x11 LB: > { %3541 = sst [smem:[#allocation25_spill]] %s2559_s23  ;;  %s2678_s5 = sadd.s32 4294967295, %s2571_s26   ;;  %s2571_s26 = sphi %s2663_s26, %s3573_s26   ;;  %s2567_s25 = sphi %s2661_s25, %s3575_s25   ;;  %s2563_s24 = sphi %s2659_s24, %s3577_s24   ;;  %s2559_s23 = sphi %s2657_s23, %s3576_s23  }
  0x12   : > { %3542 = sst [smem:[#allocation26_spill]] %s2567_s25  ;;  %s3523_s27 = sadd.s32 4294967294, %s2571_s26  }
  0x13   : > { %p61_p0 = scmp.ne.s32.totalorder %s2563_s24, %s2559_s23  ;;  %p3531_p1 = scmp.eq.s32.totalorder %s2678_s5, 0 }
  0x14   : > { %p237_p2 = scmp.eq.s32.totalorder %s2678_s5, 1  ;;  %p243_p3 = scmp.eq.s32.totalorder %s3523_s27, 1 }
  0x15   : > { %p2689_p4 = por %p3531_p1, %p61_p0  ;;  %p1909_p5 = scmp.ge.s32.totalorder %s2571_s26, 1 }
  0x16   : > { %p2694_p6 = por %p243_p3, %p61_p0  ;;  %p354_p7 = scmp.lt.s32.totalorder %s2571_s26, 3 }
  0x17   : > { %s3543_s28 = scalar_select %p2689_p4, 1, 0 }
  0x18   : > { %s3544_s29 = scalar_select %p2694_p6, 1, 0 }
  0x19   : > { %p2699_p8 = pnand %p1909_p5, %p354_p7  ;;  %s2573_s13 = smov [#allocation8]  }
  0x1a   : > { %3545 = sst [smem:[#allocation27_spill]] %s3544_s29  ;;  %s366_s14 = sshll.u32 %s2573_s13, 4  ;;  %s367_s14 = int_to_ptr.vmem [resolvable:$true] %s366_s14 }
  0x1b   : > { %p2068_p9 = pneg %p2699_p8  ;;  %s2574_s16 = smov [#allocation9]  }
  0x1c   : > { %s388_s17 = sshll.u32 %s2574_s16, 4  ;;  %s2286_s18 = scalar_lea.vmem %s367_s14, 8192  ;;  %s389_s17 = int_to_ptr.vmem [resolvable:$true] %s388_s17 }
  0x1d   : > { %p2708_p11 = pnand %p2068_p9, %p3531_p1  ;;  %p2287_p13 = scmp.ne.s32.totalorder %s367_s14, %s2286_s18 }
  0x1e   : > { %p2294_p5 = scmp.lt.s32.totalorder %s367_s14, %s367_s14  ;;  %p2295_p7 = scmp.lt.s32.totalorder %s2286_s18, %s2286_s18 }
  0x1f   : > { %p2277_p12 = pneg %p2708_p11 }
  0x20   : > { %p2296_p10 = por %p2295_p7, %p2294_p5 }
  0x21   : > { %p2289_p0 = pnand %p2287_p13, %p2277_p12 }
  0x23   : > { %p2290_p3 = pneg %p2289_p0 }
  0x25   : > { %p2297_p9 = pnand %p2296_p10, %p2290_p3 }
  0x27   : > { %2300 = shalt.err (!%p2297_p9)
}
  0x28   : > { %s3524_s19 = smov 256   ;;  %s3527_s20 = smov 16  }
  0x29   : > { %s3548_s2 = sld [smem:[#allocation31_spill]]  ;;  %s2312_s13 = scalar_lea.vmem %s389_s17, 2048 }
  0x2a   : > { %p2313_p13 = scmp.ne.s32.totalorder %s389_s17, %s2312_s13  ;;  %p2320_p10 = scmp.lt.s32.totalorder %s389_s17, %s389_s17 }
  0x2b   : > { %p2321_p3 = scmp.lt.s32.totalorder %s2312_s13, %s2312_s13 }
  0x2c   : > { %p2315_p0 = pnand %p2313_p13, %p2277_p12 }
  0x2d   : > { %p2322_p7 = por %p2321_p3, %p2320_p10 }
  0x2e   : > { %p2316_p5 = pneg %p2315_p0 }
  0x2f   : > { %2071 = dma.hbm_to_vmem [thread:$0]  (!%p2708_p11), %s3548_s2, 8192, %s367_s14, [#allocation7], %s3524_s19, %s3524_s19, %s3527_s20  }
  0x30   : > { %p2323_p9 = pnand %p2322_p7, %p2316_p5 }
  0x32   : > { %2326 = shalt.err (!%p2323_p9)
}
  0x33   : > { %s3525_s16 = smov 128   ;;  %s3526_s14 = smov 8  }
  0x34   : > { %s3549_s6 = sld [smem:[#allocation32_spill]]  ;;  %s2737_s22 = sadd.s32 1, %s2571_s26  }
  0x35   : > { %3550 = sst [smem:[#allocation28_spill]] %s2737_s22  ;;  %s45_s13 = ssub.s32 %s2571_s26, %s2737_s22 }
  0x36   : > { %p46_p12 = scmp.eq.s32.totalorder %s45_s13, 0  ;;  %s48_s27 = sadd.s32 1, %s2567_s25 }
  0x37   : > { %p55_p13 = scmp.ne.s32.totalorder %s2567_s25, %s2563_s24  ;;  %p56_p0 = scmp.eq.s32.totalorder %s2571_s26, 0 }
  0x38   : > { %s2746_s19 = scalar_select %p46_p12, %s2567_s25, %s48_s27  }
  0x39   : > { %p57_p5 = por %p56_p0, %p55_p13  ;;  %p2750_p10 = por %p237_p2, %p55_p13 }
  0x3a   : > { %2074 = dma.hbm_to_vmem [thread:$0]  (!%p2708_p11), %s3549_s6, 2048, %s389_s17, [#allocation10], %s3525_s16, %s3525_s16, %s3526_s14  }
  0x3b   : > { %3551 = sst [smem:[#allocation29_spill]] %s2746_s19  ;;  %p2100_p3 = scmp.lt.s32.totalorder %s2571_s26, 2 }
  0x3c   : > { %s3552_s15 = scalar_select %p2750_p10, 1, 0 }
  0x3d   : > { %s2756_s18 = sand.u32 1, %s2567_s25   ;;  %s1951_s21 = sshll.u32 %s2571_s26, 12 }
  0x3e   : > { %s1913_s17 = sshll.u32 %s2756_s18, 8  ;;  %s3553_s0 = sld [smem:[#allocation30_spill]] }
  0x3f   : > { %s409_s27 = scalar_lea.vmem [#allocation3], %s1913_s17  ;;  %p2767_p2 = pnand %p2100_p3, %p57_p5 }
  0x40   : > { %s417_s20 = sshll.u32 %s409_s27, 4  ;;  %s406_s25 = scalar_lea.sflag [#allocation4], %s2756_s18  ;;  %s2765_s20 = int_to_ptr.vmem [resolvable:$true] %s417_s20 }
  0x41   : > { %p2329_p7 = pneg %p2767_p2 }
  0x44   : > { %s2763_s14 = scalar_lea.hbm %s3553_s0, %s1951_s21  ;;  %s2332_s21 = scalar_lea.hbm %s3553_s0, 8192 }
  0x45   : > { %s2327_s22 = scalar_lea.hbm %s2763_s14, 4096  ;;  %p2333_p13 = scmp.lt.s32.totalorder %s2763_s14, %s3553_s0 }
  0x46   : > { %p2328_p11 = scmp.ne.s32.totalorder %s2763_s14, %s2327_s22  ;;  %p2334_p0 = scmp.lt.s32.totalorder %s2332_s21, %s2327_s22 }
  0x48   : > { %p2330_p9 = pnand %p2329_p7, %p2328_p11  ;;  %p2335_p5 = por %p2334_p0, %p2333_p13 }
  0x4a   : > { %p2331_p12 = pneg %p2330_p9 }
  0x4c   : > { %p2336_p3 = pnand %p2335_p5, %p2331_p12 }
  0x4e   : > { %2339 = shalt.err (!%p2336_p3)
}
  0x4f   : > { %s2340_s6 = scalar_lea.vmem %s2765_s20, 4096  ;;  %s2579_s16 = smov [#allocation3]  }
  0x50   : > { %p2341_p1 = scmp.ne.s32.totalorder %s2765_s20, %s2340_s6  ;;  %s2345_s17 = sshll.u32 %s2579_s16, 4  ;;  %s2346_s17 = int_to_ptr.vmem [resolvable:$false] %s2345_s17 }
  0x51   : > { %s2347_s19 = scalar_lea.vmem %s2346_s17, 8192  ;;  %p2348_p6 = scmp.lt.s32.totalorder %s2765_s20, %s2346_s17 }
  0x52   : > { %p2343_p11 = pnand %p2341_p1, %p2329_p7  ;;  %p2349_p10 = scmp.lt.s32.totalorder %s2347_s19, %s2340_s6 }
  0x54   : > { %p2344_p9 = pneg %p2343_p11  ;;  %p2350_p4 = por %p2349_p10, %p2348_p6 }
  0x56   : > { %p2351_p13 = pnand %p2350_p4, %p2344_p9 }
  0x58   : > { %2354 = shalt.err (!%p2351_p13)
}
  0x59   : > { %s3555_s22 = smov 16   ;;  %s3556_s21 = smov 256  }
  0x5a   : > { %2078 = dma.hbm_to_vmem [thread:$0]  (!%p2767_p2), %s2763_s14, 4096, %s2765_s20, %s406_s25, %s3556_s21, %s3556_s21, %s3555_s22  }
  0x5b   : > { %s1952_s13 = sshll.u32 %s2571_s26, 11  ;;  %s3557_s16 = sshll.u32 %s2756_s18, 7 }
  0x5c   : > { %s2807_s19 = scalar_lea.hbm %s3511_s1, %s1952_s13  ;;  %s431_s17 = scalar_lea.vmem [#allocation6], %s3557_s16 }
  0x5d   : > { %s438_s0 = sshll.u32 %s431_s17, 4  ;;  %s3558_s29 = sand.u32 1, %s2571_s26   ;;  %s2811_s0 = int_to_ptr.vmem [resolvable:$true] %s438_s0 }
  0x5e   : > { %s428_s23 = scalar_lea.sflag [#allocation7], %s3558_s29  ;;  %s2355_s12 = scalar_lea.hbm %s2807_s19, 2048 }
  0x5f   : > { %p2356_p1 = scmp.ne.s32.totalorder %s2807_s19, %s2355_s12  ;;  %s2360_s14 = scalar_lea.hbm %s3511_s1, 4096 }
  0x60   : > { %p2361_p10 = scmp.lt.s32.totalorder %s2807_s19, %s3511_s1  ;;  %p2362_p12 = scmp.lt.s32.totalorder %s2360_s14, %s2355_s12 }
  0x61   : > { %p2358_p4 = pnand %p2356_p1, %p2329_p7 }
  0x62   : > { %p2363_p0 = por %p2362_p12, %p2361_p10 }
  0x63   : > { %p2359_p6 = pneg %p2358_p4 }
  0x65   : > { %p2364_p5 = pnand %p2363_p0, %p2359_p6 }
  0x67   : > { %2367 = shalt.err (!%p2364_p5)
}
  0x68   : > { %s2368_s29 = scalar_lea.vmem %s2811_s0, 2048  ;;  %s2580_s21 = smov [#allocation6]  }
  0x69   : > { %p2369_p3 = scmp.ne.s32.totalorder %s2811_s0, %s2368_s29  ;;  %s2373_s13 = sshll.u32 %s2580_s21, 4  ;;  %s2374_s13 = int_to_ptr.vmem [resolvable:$false] %s2373_s13 }
  0x6a   : > { %s2375_s27 = scalar_lea.vmem %s2374_s13, 4096  ;;  %p2376_p13 = scmp.lt.s32.totalorder %s2811_s0, %s2374_s13 }
  0x6b   : > { %p2371_p11 = pnand %p2369_p3, %p2329_p7  ;;  %p2377_p1 = scmp.lt.s32.totalorder %s2375_s27, %s2368_s29 }
  0x6d   : > { %p2372_p9 = pneg %p2371_p11  ;;  %p2378_p4 = por %p2377_p1, %p2376_p13 }
  0x6f   : > { %p2379_p10 = pnand %p2378_p4, %p2372_p9 }
  0x71   : > { %2382 = shalt.err (!%p2379_p10)
}
  0x72   : > { %s3559_s12 = smov 8   ;;  %s3560_s6 = smov 128  }
  0x73   : > { %2081 = dma.hbm_to_vmem [thread:$0]  (!%p2767_p2), %s2807_s19, 2048, %s2811_s0, %s428_s23, %s3560_s6, %s3560_s6, %s3559_s12  }
  0x74   : > { %450 = sbr.rel (%p2699_p8) target bundleno = 1126 (0x466), region = 52  ;;  %s2843_s16 = sand.u32 (!%p2699_p8), 1, %s2563_s24  }
  0x75   : > { %s1921_s17 = sshll.u32 (!%p2699_p8), %s2843_s16, 8  ;;  %s453_s25 = scalar_lea.sflag (!%p2699_p8), [#allocation4], %s2843_s16 }
  0x76   : > { %s2847_s20 = scalar_lea.vmem (!%p2699_p8), [#allocation3], %s1921_s17  ;;  %p3561_p7 = scmp.ne.s32.totalorder (!%p2699_p8), %s3543_s28, 0 }
  0x79   : > { %2530 = dma.done.wait (%p3561_p7), %s453_s25, 4096  }
  0x7a   : > { %2532 = vsyncadd (%p3561_p7), %s453_s25, 4294963200  ;;  %s2854_s0 = sand.u32 1, %s2678_s5   ;;  %s2857_s2 = sshll.u32 %s2843_s16, 7 }
  0x7b   : > { %s462_s23 = scalar_lea.sflag [#allocation7], %s2854_s0  ;;  %s2861_s30 = scalar_lea.vmem [#allocation6], %s2857_s2 }
  0x7c   : > { %2534 = dma.done.wait (%p3561_p7), %s462_s23, 2048  }
  0x7d   : > { %2536 = vsyncadd (%p3561_p7), %s462_s23, 4294965248  ;;  %p3562_p8 = scmp.eq.s32.totalorder %s2678_s5, 0 }
  0x7f   : > { %2538 = dma.done.wait (%p3562_p8), [#allocation7], 8192   ;;  %p3563_p2 = pmov %p3562_p8 }
  0x81   : > { %2540 = vsyncadd (%p3563_p2), [#allocation7], 4294959104  ;;  %p3564_p6 = pmov %p3563_p2 }
  0x82   : > { %p3565_p12 = pmov %p3563_p2 }
  0x83   : > { %2542 = dma.done.wait (%p3564_p6), [#allocation10], 2048  }
  0x84   : > { %2544 = vsyncadd (%p3565_p12), [#allocation10], 4294965248  ;;  %v609_v1 = vld [vmem:[#allocation8 + $0xf8] sm:$0xff]  ;;  %v608_v2 = vld [vmem:[#allocation8 + $0xf0] sm:$0xff]  ;;  %s2920_s14 = scalar_lea.vmem [#allocation11], %s2857_s2  ;;  %s2987_s18 = scalar_lea.vmem [#allocation12], %s2857_s2 }
  0x85   : > { %v607_v3 = vld [vmem:[#allocation8 + $0xe8] sm:$0xff]  ;;  %654 = vmatprep.subr.mxu0 %v609_v1  ;;  %v606_v4 = vld [vmem:[#allocation8 + $0xe0] sm:$0xff]  ;;  %v605_v5 = vld [vmem:[#allocation8 + $0xd8] sm:$0xff]  ;;  %s3007_s21 = scalar_lea.vmem [#allocation17], %s2857_s2  ;;  %s3186_s12 = scalar_lea.vmem [#allocation14], %s2857_s2 }
  0x86   : > { %655 = vmatpush1.msra.mxu0 %v608_v2  ;;  %v604_v6 = vld [vmem:[#allocation8 + $0xd0] sm:$0xff]  ;;  %v603_v7 = vld [vmem:[#allocation8 + $0xc8] sm:$0xff]  ;;  %v602_v8 = vld [vmem:[#allocation8 + $0xc0] sm:$0xff]  ;;  %s3279_s6 = scalar_lea.vmem [#allocation15], %s2857_s2  ;;  %s3285_s17 = sshll.u32 %s2678_s5, 11 }
  0x87   : > { %656 = vmatprep.subr.mxu0 %v607_v3  ;;  %v601_v9 = vld [vmem:[#allocation8 + $0xb8] sm:$0xff]  ;;  %v600_v10 = vld [vmem:[#allocation8 + $0xb0] sm:$0xff]  ;;  %v599_v11 = vld [vmem:[#allocation8 + $0xa8] sm:$0xff]  ;;  %s1623_s25 = sshll.u32 %s2987_s18, 4  ;;  %s3293_s23 = scalar_lea.hbm %s3519_s9, %s3285_s17  ;;  %s3296_s25 = int_to_ptr.vmem [resolvable:$true] %s1623_s25 }
  0x88   : > { %657 = vmatpush1.msra.mxu0 %v606_v4  ;;  %v598_v12 = vld [vmem:[#allocation8 + $0xa0] sm:$0xff]  ;;  %v597_v13 = vld [vmem:[#allocation8 + $0x98] sm:$0xff]  ;;  %v596_v14 = vld [vmem:[#allocation8 + $0x90] sm:$0xff]  ;;  %s2383_s5 = scalar_lea.vmem %s3296_s25, 2048  ;;  %p3566_p5 = scmp.ne.s32.totalorder %s3552_s15, 0 }
  0x89   : > { %658 = vmatprep.subr.mxu0 %v605_v5  ;;  %v595_v15 = vld [vmem:[#allocation8 + $0x88] sm:$0xff]  ;;  %v594_v16 = vld [vmem:[#allocation8 + $0x80] sm:$0xff]  ;;  %v593_v17 = vld [vmem:[#allocation8 + $0x78] sm:$0xff]  ;;  %p2384_p0 = scmp.ne.s32.totalorder %s3296_s25, %s2383_s5  ;;  %s2582_s28 = smov [#allocation12]  }
  0x8a   : > { %659 = vmatpush1.msra.mxu0 %v604_v6  ;;  %v592_v18 = vld [vmem:[#allocation8 + $0x70] sm:$0xff]  ;;  %v591_v19 = vld [vmem:[#allocation8 + $0x68] sm:$0xff]  ;;  %v590_v20 = vld [vmem:[#allocation8 + $0x60] sm:$0xff]  ;;  %s2387_s19 = sshll.u32 %s2582_s28, 4  ;;  %s2388_s19 = int_to_ptr.vmem [resolvable:$false] %s2387_s19 }
  0x8b   : > { %660 = vmatprep.subr.mxu0 %v603_v7  ;;  %v589_v21 = vld [vmem:[#allocation8 + $0x58] sm:$0xff]  ;;  %v588_v22 = vld [vmem:[#allocation8 + $0x50] sm:$0xff]  ;;  %v587_v23 = vld [vmem:[#allocation8 + $0x48] sm:$0xff]  ;;  %p2385_p3 = pnand %p2384_p0, %p3566_p5  ;;  %p2390_p9 = scmp.lt.s32.totalorder %s3296_s25, %s2388_s19 }
  0x8c   : > { %661 = vmatpush1.msra.mxu0 %v602_v8  ;;  %v586_v24 = vld [vmem:[#allocation8 + $0x40] sm:$0xff]  ;;  %v547_v25 = vld [vmem:[%s2847_s20 + $0x8] sm:$0xff]  ;;  %v585_v26 = vld [vmem:[#allocation8 + $0x38] sm:$0xff] }
  0x8d   : > { %662 = vmatprep.subr.mxu0 %v601_v9  ;;  %718 = vmatprep.mubr.f32.mxu0 %v547_v25  ;;  %v584_v27 = vld [vmem:[#allocation8 + $0x30] sm:$0xff]  ;;  %v583_v28 = vld [vmem:[#allocation8 + $0x28] sm:$0xff]  ;;  %v582_v29 = vld [vmem:[#allocation8 + $0x20] sm:$0xff]  ;;  %p2386_p11 = pneg %p2385_p3 }
  0x8e   : > { %663 = vmatpush1.msra.mxu0 %v600_v10  ;;  %v581_v30 = vld [vmem:[#allocation8 + $0x18] sm:$0xff]  ;;  %v580_v31 = vld [vmem:[#allocation8 + $0x10] sm:$0xff]  ;;  %v579_v32 = vld [vmem:[#allocation8 + $0x8] sm:$0xff] }
  0x8f   : > { %664 = vmatprep.subr.mxu0 %v599_v11  ;;  %v578_v33 = vld [vmem:[#allocation8] sm:$0xff]  ;;  %v641_v34 = vld [vmem:[#allocation8 + $0x1f8] sm:$0xff]  ;;  %v640_v35 = vld [vmem:[#allocation8 + $0x1f0] sm:$0xff] }
  0x90   : > { %665 = vmatpush1.msra.mxu0 %v598_v12  ;;  %v639_v36 = vld [vmem:[#allocation8 + $0x1e8] sm:$0xff]  ;;  %v1100_v37 = vld [vmem:[#allocation9 + $0x78] sm:$0xff]  ;;  %v1099_v38 = vld [vmem:[#allocation9 + $0x70] sm:$0xff] }
  0x91   : > { %666 = vmatprep.subr.mxu0 %v597_v13  ;;  %v638_v39 = vld [vmem:[#allocation8 + $0x1e0] sm:$0xff]  ;;  %1990 = vmatprep.subr.mxu1 %v1100_v37  ;;  %v637_v40 = vld [vmem:[#allocation8 + $0x1d8] sm:$0xff]  ;;  %v1098_v41 = vld [vmem:[#allocation9 + $0x68] sm:$0xff] }
  0x92   : > { %667 = vmatpush1.msra.mxu0 %v596_v14  ;;  %1991 = vmatpush3.msra.mxu1 %v1100_v37  ;;  %v636_v42 = vld [vmem:[#allocation8 + $0x1d0] sm:$0xff]  ;;  %v635_v43 = vld [vmem:[#allocation8 + $0x1c8] sm:$0xff]  ;;  %v1097_v44 = vld [vmem:[#allocation9 + $0x60] sm:$0xff] }
  0x93   : > { %668 = vmatprep.subr.mxu0 %v595_v15  ;;  %1992 = vmatprep.subr.mxu1 %v1099_v38  ;;  %v634_v45 = vld [vmem:[#allocation8 + $0x1c0] sm:$0xff]  ;;  %v633_v46 = vld [vmem:[#allocation8 + $0x1b8] sm:$0xff]  ;;  %v632_v48 = vld [vmem:[#allocation8 + $0x1b0] sm:$0xff] }
  0x94   : > { %669 = vmatpush1.msra.mxu0 %v594_v16  ;;  %1993 = vmatpush3.msra.mxu1 %v1099_v38  ;;  %v1096_v47 = vld [vmem:[#allocation9 + $0x58] sm:$0xff]  ;;  %v631_v49 = vld [vmem:[#allocation8 + $0x1a8] sm:$0xff]  ;;  %v1095_v50 = vld [vmem:[#allocation9 + $0x50] sm:$0xff] }
  0x95   : > { %670 = vmatprep.subr.mxu0 %v593_v17  ;;  %1994 = vmatprep.subr.mxu1 %v1098_v41  ;;  %v630_v51 = vld [vmem:[#allocation8 + $0x1a0] sm:$0xff]  ;;  %v629_v52 = vld [vmem:[#allocation8 + $0x198] sm:$0xff]  ;;  %v1094_v53 = vld [vmem:[#allocation9 + $0x48] sm:$0xff] }
  0x96   : > { %671 = vmatpush1.msra.mxu0 %v592_v18  ;;  %1995 = vmatpush3.msra.mxu1 %v1098_v41  ;;  %v628_v54 = vld [vmem:[#allocation8 + $0x190] sm:$0xff]  ;;  %v627_v55 = vld [vmem:[#allocation8 + $0x188] sm:$0xff]  ;;  %v1093_v56 = vld [vmem:[#allocation9 + $0x40] sm:$0xff] }
  0x97   : > { %672 = vmatprep.subr.mxu0 %v591_v19  ;;  %1996 = vmatprep.subr.mxu1 %v1097_v44  ;;  %v626_v57 = vld [vmem:[#allocation8 + $0x180] sm:$0xff]  ;;  %v625_v58 = vld [vmem:[#allocation8 + $0x178] sm:$0xff]  ;;  %v624_v60 = vld [vmem:[#allocation8 + $0x170] sm:$0xff] }
  0x98   : > { %673 = vmatpush1.msra.mxu0 %v590_v20  ;;  %1997 = vmatpush3.msra.mxu1 %v1097_v44  ;;  %v1092_v59 = vld [vmem:[#allocation9 + $0x38] sm:$0xff]  ;;  %v623_v61 = vld [vmem:[#allocation8 + $0x168] sm:$0xff]  ;;  %v1091_v62 = vld [vmem:[#allocation9 + $0x30] sm:$0xff] }
  0x99   : > { %674 = vmatprep.subr.mxu0 %v589_v21  ;;  %1998 = vmatprep.subr.mxu1 %v1096_v47  ;;  %v622_v63 = vld [vmem:[#allocation8 + $0x160] sm:$0xff]  ;;  %v621_v0 = vld [vmem:[#allocation8 + $0x158] sm:$0xff]  ;;  %v1090_v1 = vld [vmem:[#allocation9 + $0x28] sm:$0xff] }
  0x9a   : > { %675 = vmatpush1.msra.mxu0 %v588_v22  ;;  %1999 = vmatpush3.msra.mxu1 %v1096_v47  ;;  %v620_v2 = vld [vmem:[#allocation8 + $0x150] sm:$0xff]  ;;  %v619_v3 = vld [vmem:[#allocation8 + $0x148] sm:$0xff]  ;;  %v618_v4 = vld [vmem:[#allocation8 + $0x140] sm:$0xff] }
  0x9b   : > { %676 = vmatprep.subr.mxu0 %v587_v23  ;;  %2000 = vmatprep.subr.mxu1 %v1095_v50  ;;  %v617_v5 = vld [vmem:[#allocation8 + $0x138] sm:$0xff]  ;;  %v616_v6 = vld [vmem:[#allocation8 + $0x130] sm:$0xff]  ;;  %v615_v7 = vld [vmem:[#allocation8 + $0x128] sm:$0xff] }
  0x9c   : > { %677 = vmatpush1.msra.mxu0 %v586_v24  ;;  %2001 = vmatpush3.msra.mxu1 %v1095_v50  ;;  %v614_v8 = vld [vmem:[#allocation8 + $0x120] sm:$0xff]  ;;  %v613_v9 = vld [vmem:[#allocation8 + $0x118] sm:$0xff]  ;;  %v612_v10 = vld [vmem:[#allocation8 + $0x110] sm:$0xff] }
  0x9d   : > { %678 = vmatprep.subr.mxu0 %v585_v26  ;;  %2002 = vmatprep.subr.mxu1 %v1094_v53  ;;  %v611_v11 = vld [vmem:[#allocation8 + $0x108] sm:$0xff]  ;;  %v610_v12 = vld [vmem:[#allocation8 + $0x100] sm:$0xff]  ;;  %v549_v14 = vld [vmem:[%s2847_s20 + $0x18] sm:$0xff] }
  0x9e   : > { %679 = vmatpush1.msra.mxu0 %v584_v27  ;;  %2003 = vmatpush3.msra.mxu1 %v1094_v53  ;;  %v546_v13 = vld [vmem:[%s2847_s20] sm:$0xff]  ;;  %v548_v15 = vld [vmem:[%s2847_s20 + $0x10] sm:$0xff]  ;;  %v551_v16 = vld [vmem:[%s2847_s20 + $0x28] sm:$0xff] }
  0x9f   : > { %680 = vmatprep.subr.mxu0 %v583_v28  ;;  %2004 = vmatprep.subr.mxu1 %v1093_v56  ;;  %v550_v17 = vld [vmem:[%s2847_s20 + $0x20] sm:$0xff]  ;;  %v553_v18 = vld [vmem:[%s2847_s20 + $0x38] sm:$0xff]  ;;  %v552_v19 = vld [vmem:[%s2847_s20 + $0x30] sm:$0xff] }
  0xa0   : > { %681 = vmatpush1.msra.mxu0 %v582_v29  ;;  %2005 = vmatpush3.msra.mxu1 %v1093_v56  ;;  %v555_v20 = vld [vmem:[%s2847_s20 + $0x48] sm:$0xff]  ;;  %v554_v21 = vld [vmem:[%s2847_s20 + $0x40] sm:$0xff]  ;;  %v557_v22 = vld [vmem:[%s2847_s20 + $0x58] sm:$0xff] }
  0xa1   : > { %682 = vmatprep.subr.mxu0 %v581_v30  ;;  %2006 = vmatprep.subr.mxu1 %v1092_v59  ;;  %v556_v23 = vld [vmem:[%s2847_s20 + $0x50] sm:$0xff]  ;;  %v559_v24 = vld [vmem:[%s2847_s20 + $0x68] sm:$0xff]  ;;  %v558_v25 = vld [vmem:[%s2847_s20 + $0x60] sm:$0xff] }
  0xa2   : > { %683 = vmatpush1.msra.mxu0 %v580_v31  ;;  %2007 = vmatpush3.msra.mxu1 %v1092_v59  ;;  %v561_v26 = vld [vmem:[%s2847_s20 + $0x78] sm:$0xff]  ;;  %v560_v27 = vld [vmem:[%s2847_s20 + $0x70] sm:$0xff]  ;;  %v563_v28 = vld [vmem:[%s2847_s20 + $0x88] sm:$0xff] }
  0xa3   : > { %684 = vmatprep.subr.mxu0 %v579_v32  ;;  %2008 = vmatprep.subr.mxu1 %v1091_v62  ;;  %v562_v29 = vld [vmem:[%s2847_s20 + $0x80] sm:$0xff]  ;;  %v565_v30 = vld [vmem:[%s2847_s20 + $0x98] sm:$0xff]  ;;  %v564_v31 = vld [vmem:[%s2847_s20 + $0x90] sm:$0xff] }
  0xa4   : > { %685 = vmatpush1.msra.mxu0 %v578_v33  ;;  %2009 = vmatpush3.msra.mxu1 %v1091_v62  ;;  %v567_v32 = vld [vmem:[%s2847_s20 + $0xa8] sm:$0xff]  ;;  %v566_v33 = vld [vmem:[%s2847_s20 + $0xa0] sm:$0xff]  ;;  %v573_v38 = vld [vmem:[%s2847_s20 + $0xd8] sm:$0xff] }
  0xa5   : > { %686 = vmatprep.subr.mxu0 %v641_v34  ;;  %2010 = vmatprep.subr.mxu1 %v1090_v1  ;;  %v569_v34 = vld [vmem:[%s2847_s20 + $0xb8] sm:$0xff]  ;;  %v570_v37 = vld [vmem:[%s2847_s20 + $0xc0] sm:$0xff]  ;;  %v1086_v47 = vld [vmem:[#allocation9 + $0x8] sm:$0xff] }
  0xa6   : > { %687 = vmatpush2.msra.mxu0 %v640_v35  ;;  %2011 = vmatpush3.msra.mxu1 %v1090_v1  ;;  %v568_v35 = vld [vmem:[%s2847_s20 + $0xb0] sm:$0xff]  ;;  %v574_v41 = vld [vmem:[%s2847_s20 + $0xe0] sm:$0xff] }
  0xa7   : > { %688 = vmatprep.subr.mxu0 %v639_v36  ;;  %v571_v36 = vld [vmem:[%s2847_s20 + $0xc8] sm:$0xff]  ;;  %v1089_v44 = vld [vmem:[#allocation9 + $0x20] sm:$0xff] }
  0xa8   : > { %689 = vmatpush2.msra.mxu0 %v638_v39  ;;  %v572_v39 = vld [vmem:[%s2847_s20 + $0xd0] sm:$0xff]  ;;  %2012 = vmatprep.subr.mxu1 %v1089_v44 }
  0xa9   : > { %690 = vmatprep.subr.mxu0 %v637_v40  ;;  %v575_v40 = vld [vmem:[%s2847_s20 + $0xe8] sm:$0xff]  ;;  %2013 = vmatpush3.msra.mxu1 %v1089_v44 }
  0xaa   : > { %691 = vmatpush2.msra.mxu0 %v636_v42  ;;  %v577_v42 = vld [vmem:[%s2847_s20 + $0xf8] sm:$0xff] }
  0xab   : > { %692 = vmatprep.subr.mxu0 %v635_v43  ;;  %v576_v43 = vld [vmem:[%s2847_s20 + $0xf0] sm:$0xff] }
  0xac   : > { %693 = vmatpush2.msra.mxu0 %v634_v45  ;;  %v1088_v45 = vld [vmem:[#allocation9 + $0x18] sm:$0xff] }
  0xad   : > { %694 = vmatprep.subr.mxu0 %v633_v46  ;;  %2014 = vmatprep.subr.mxu1 %v1088_v45  ;;  %v1087_v46 = vld [vmem:[#allocation9 + $0x10] sm:$0xff] }
  0xae   : > { %695 = vmatpush2.msra.mxu0 %v632_v48  ;;  %2015 = vmatpush3.msra.mxu1 %v1088_v45  ;;  %v1085_v48 = vld [vmem:[#allocation9] sm:$0xff] }
  0xaf   : > { %696 = vmatprep.subr.mxu0 %v631_v49  ;;  %2016 = vmatprep.subr.mxu1 %v1087_v46  ;;  %v644_v49 = vlaneseq }
  0xb0   : > { %697 = vmatpush2.msra.mxu0 %v630_v51  ;;  %2017 = vmatpush3.msra.mxu1 %v1087_v46 }
  0xb1   : > { %698 = vmatprep.subr.mxu0 %v629_v52  ;;  %2018 = vmatprep.subr.mxu1 %v1086_v47  ;;  %v645_v50 = vshrl.u32 %v644_v49, 7  ;;  %v642_v52 = vld [vmem:[%s3513_s3] sm:$0x3] }
  0xb2   : > { %699 = vmatpush2.msra.mxu0 %v628_v54  ;;  %2019 = vmatpush3.msra.mxu1 %v1086_v47 }
  0xb3   : > { %700 = vmatprep.subr.mxu0 %v627_v55  ;;  %2020 = vmatprep.subr.mxu1 %v1085_v48  ;;  %v646_v51 = vsub.s32 0, %v645_v50  ;;  %v650_v53 = vsub.s32 1, %v645_v50 }
  0xb4   : > { %701 = vmatpush2.msra.mxu0 %v626_v57  ;;  %2021 = vmatpush3.msra.mxu1 %v1085_v48 }
  0xb5   : > { %702 = vmatprep.subr.mxu0 %v625_v58  ;;  %v2910_v54 = vrot.slane %v642_v52, %v646_v51  ;;  %v2912_v55 = vrot.slane %v642_v52, %v650_v53 }
  0xb6   : > { %703 = vmatpush2.msra.mxu0 %v624_v60 }
  0xb7   : > { %704 = vmatprep.subr.mxu0 %v623_v61 }
  0xb8   : > { %705 = vmatpush2.msra.mxu0 %v622_v63 }
  0xb9   : > { %706 = vmatprep.subr.mxu0 %v621_v0 }
  0xba   : > { %707 = vmatpush2.msra.mxu0 %v620_v2 }
  0xbb   : > { %708 = vmatprep.subr.mxu0 %v619_v3 }
  0xbc   : > { %709 = vmatpush2.msra.mxu0 %v618_v4 }
  0xbd   : > { %710 = vmatprep.subr.mxu0 %v617_v5 }
  0xbe   : > { %711 = vmatpush2.msra.mxu0 %v616_v6 }
  0xbf   : > { %712 = vmatprep.subr.mxu0 %v615_v7 }
  0xc0   : > { %713 = vmatpush2.msra.mxu0 %v614_v8 }
  0xc1   : > { %714 = vmatprep.subr.mxu0 %v613_v9 }
  0xc2   : > { %715 = vmatpush2.msra.mxu0 %v612_v10 }
  0xc3   : > { %716 = vmatprep.subr.mxu0 %v611_v11 }
  0xc4   : > { %717 = vmatpush2.msra.mxu0 %v610_v12 }
  0xc5   : > { %719 = vmatmul.mubr.f32.vlgmr.msra.gmra.mxu0 %v546_v13 }
  0xc6   : > { %724 = vmatprep.mubr.f32.mxu0 %v549_v14 }
  0xc9   : > { %725 = vmatmul.mubr.f32.gmra.mxu0 %v548_v15 }
  0xca   : > { %730 = vmatprep.mubr.f32.mxu0 %v551_v16 }
  0xcd   : > { %731 = vmatmul.mubr.f32.gmra.mxu0 %v550_v17 }
  0xce   : > { %736 = vmatprep.mubr.f32.mxu0 %v553_v18 }
  0xd1   : > { %737 = vmatmul.mubr.f32.gmra.mxu0 %v552_v19 }
  0xd2   : > { %742 = vmatprep.mubr.f32.mxu0 %v555_v20 }
  0xd5   : > { %743 = vmatmul.mubr.f32.gmra.mxu0 %v554_v21 }
  0xd6   : > { %748 = vmatprep.mubr.f32.mxu0 %v557_v22 }
  0xd9   : > { %749 = vmatmul.mubr.f32.gmra.mxu0 %v556_v23 }
  0xda   : > { %754 = vmatprep.mubr.f32.mxu0 %v559_v24 }
  0xdd   : > { %755 = vmatmul.mubr.f32.gmra.mxu0 %v558_v25 }
  0xde   : > { %760 = vmatprep.mubr.f32.mxu0 %v561_v26 }
  0xe1   : > { %761 = vmatmul.mubr.f32.gmra.mxu0 %v560_v27 }
  0xe2   : > { %766 = vmatprep.mubr.f32.mxu0 %v563_v28 }
  0xe5   : > { %767 = vmatmul.mubr.f32.gmra.mxu0 %v562_v29 }
  0xe6   : > { %772 = vmatprep.mubr.f32.mxu0 %v565_v30 }
  0xe9   : > { %773 = vmatmul.mubr.f32.gmra.mxu0 %v564_v31 }
  0xea   : > { %778 = vmatprep.mubr.f32.mxu0 %v567_v32 }
  0xed   : > { %779 = vmatmul.mubr.f32.gmra.mxu0 %v566_v33 }
  0xee   : > { %784 = vmatprep.mubr.f32.mxu0 %v569_v34 }
  0xf1   : > { %785 = vmatmul.mubr.f32.gmra.mxu0 %v568_v35 }
  0xf2   : > { %790 = vmatprep.mubr.f32.mxu0 %v571_v36 }
  0xf5   : > { %791 = vmatmul.mubr.f32.gmra.mxu0 %v570_v37 }
  0xf6   : > { %796 = vmatprep.mubr.f32.mxu0 %v573_v38 }
  0xf9   : > { %797 = vmatmul.mubr.f32.gmra.mxu0 %v572_v39 }
  0xfa   : > { %802 = vmatprep.mubr.f32.mxu0 %v575_v40 }
  0xfd   : > { %803 = vmatmul.mubr.f32.gmra.mxu0 %v574_v41 }
  0xfe   : > { %808 = vmatprep.mubr.f32.mxu0 %v577_v42 }
 0x101   : > { %809 = vmatmul.mubr.f32.gmra.mxu0 %v576_v43 }
 0x185   : > { %v720_v56 = vpop.f32.mrf.mxu0 }
 0x186   : > { %v721_v57 = vadd.f32 %v720_v56, %v2910_v54 }
 0x187   : > { %v722_v58 = vpop.f32.mrf.mxu0 }
 0x188   : > { %v815_v59 = vmul.f32 0.2, %v721_v57  ;;  %v723_v60 = vadd.f32 %v722_v58, %v2912_v55 }
 0x189   : > { %v726_v61 = vpop.f32.mrf.mxu0 }
 0x18a   : > { %v2916_v62 = vmax.f32 %v721_v57, %v815_v59  ;;  %v816_v63 = vmul.f32 0.2, %v723_v60  ;;  %v727_v0 = vadd.f32 %v726_v61, %v2910_v54 }
 0x18b   : > { %v728_v1 = vpop.f32.mrf.mxu0 }
 0x18c   : > { %1413 = vst [vmem:[%s2920_s14] sm:$0xff] %v2916_v62  ;;  %v848_v2 = vmax.f32 %v723_v60, %v816_v63  ;;  %v817_v3 = vmul.f32 0.2, %v727_v0  ;;  %v729_v4 = vadd.f32 %v728_v1, %v2912_v55  ;;  %2022 = vmatprep.mubr.f32.mxu1 %v2916_v62 }
 0x18d   : > { %v732_v5 = vpop.f32.mrf.mxu0 }
 0x18e   : > { %v879_v6 = vsub.f32 0.0, %v848_v2  ;;  %v2926_v7 = vmax.f32 %v727_v0, %v817_v3  ;;  %v818_v8 = vmul.f32 0.2, %v729_v4  ;;  %v733_v9 = vadd.f32 %v732_v5, %v2910_v54 }
 0x18f   : > { %v734_v10 = vpop.f32.mrf.mxu0 }
 0x190   : > { %v895_v11 = vmul.f32 1.442695, %v879_v6  ;;  %1414 = vst [vmem:[%s2920_s14 + $0x8] sm:$0xff] %v2926_v7  ;;  %v850_v12 = vmax.f32 %v729_v4, %v818_v8  ;;  %v819_v13 = vmul.f32 0.2, %v733_v9  ;;  %v735_v14 = vadd.f32 %v734_v10, %v2912_v55  ;;  %2023 = vmatmul.mubr.f32.vlgmr.msra.gmra.mxu1 %v2926_v7 }
 0x191   : > { %v738_v15 = vpop.f32.mrf.mxu0 }
 0x192   : > { %2147 = vpow2.f32 %v895_v11  ;;  %v880_v16 = vsub.f32 0.0, %v850_v12  ;;  %v2933_v17 = vmax.f32 %v733_v9, %v819_v13  ;;  %v820_v18 = vmul.f32 0.2, %v735_v14 }
 0x193   : > { %v739_v19 = vadd.f32 %v738_v15, %v2910_v54  ;;  %v740_v20 = vpop.f32.mrf.mxu0 }
 0x194   : > { %v897_v21 = vmul.f32 1.442695, %v880_v16  ;;  %1415 = vst [vmem:[%s2920_s14 + $0x10] sm:$0xff] %v2933_v17  ;;  %v852_v22 = vmax.f32 %v735_v14, %v820_v18  ;;  %v741_v23 = vadd.f32 %v740_v20, %v2912_v55  ;;  %2025 = vmatprep.mubr.f32.mxu1 %v2933_v17 }
 0x195   : > { %v821_v24 = vmul.f32 0.2, %v739_v19  ;;  %v744_v25 = vpop.f32.mrf.mxu0 }
 0x196   : > { %2149 = vpow2.f32 %v897_v21  ;;  %v881_v26 = vsub.f32 0.0, %v852_v22  ;;  %v822_v27 = vmul.f32 0.2, %v741_v23  ;;  %v745_v28 = vadd.f32 %v744_v25, %v2910_v54 }
 0x197   : > { %v2941_v29 = vmax.f32 %v739_v19, %v821_v24  ;;  %v746_v30 = vpop.f32.mrf.mxu0 }
 0x198   : > { %v899_v31 = vmul.f32 1.442695, %v881_v26  ;;  %v854_v32 = vmax.f32 %v741_v23, %v822_v27  ;;  %v823_v33 = vmul.f32 0.2, %v745_v28  ;;  %v747_v34 = vadd.f32 %v746_v30, %v2912_v55 }
 0x199   : > { %1416 = vst [vmem:[%s2920_s14 + $0x18] sm:$0xff] %v2941_v29  ;;  %2026 = vmatmul.mubr.f32.gmra.mxu1 %v2941_v29  ;;  %v750_v35 = vpop.f32.mrf.mxu0 }
 0x19a   : > { %2151 = vpow2.f32 %v899_v31  ;;  %v882_v36 = vsub.f32 0.0, %v854_v32  ;;  %v2947_v37 = vmax.f32 %v745_v28, %v823_v33  ;;  %v824_v38 = vmul.f32 0.2, %v747_v34 }
 0x19b   : > { %v751_v39 = vadd.f32 %v750_v35, %v2910_v54  ;;  %v752_v40 = vpop.f32.mrf.mxu0 }
 0x19c   : > { %v901_v41 = vmul.f32 1.442695, %v882_v36  ;;  %1417 = vst [vmem:[%s2920_s14 + $0x20] sm:$0xff] %v2947_v37  ;;  %v856_v42 = vmax.f32 %v747_v34, %v824_v38  ;;  %v753_v43 = vadd.f32 %v752_v40, %v2912_v55  ;;  %2028 = vmatprep.mubr.f32.mxu1 %v2947_v37  ;;  %v959_v34 = vld [vmem:[%s2861_s30] sm:$0xff] }
 0x19d   : > { %v825_v44 = vmul.f32 0.2, %v751_v39  ;;  %v756_v45 = vpop.f32.mrf.mxu0 }
 0x19e   : > { %2153 = vpow2.f32 %v901_v41  ;;  %v883_v46 = vsub.f32 0.0, %v856_v42  ;;  %v826_v47 = vmul.f32 0.2, %v753_v43  ;;  %v757_v48 = vadd.f32 %v756_v45, %v2910_v54 }
 0x19f   : > { %v2148_v49 = vpop.eup %2147  ;;  %v2955_v50 = vmax.f32 %v751_v39, %v825_v44  ;;  %v758_v51 = vpop.f32.mrf.mxu0 }
 0x1a0   : > { %v927_v52 = vadd.f32 1.0, %v2148_v49  ;;  %v903_v53 = vmul.f32 1.442695, %v883_v46  ;;  %v858_v56 = vmax.f32 %v753_v43, %v826_v47  ;;  %v827_v57 = vmul.f32 0.2, %v757_v48 }
 0x1a1   : > { %1418 = vst [vmem:[%s2920_s14 + $0x28] sm:$0xff] %v2955_v50  ;;  %v759_v58 = vadd.f32 %v758_v51, %v2912_v55  ;;  %2029 = vmatmul.mubr.f32.gmra.mxu1 %v2955_v50  ;;  %v762_v59 = vpop.f32.mrf.mxu0  ;;  %v2993_v51 = vld [vmem:[%s3514_s4] ss:$0 sm:$0xff] }
 0x1a2   : > { %2155 = vrcp.f32 %v927_v52  ;;  %v884_v60 = vsub.f32 0.0, %v858_v56  ;;  %v2961_v61 = vmax.f32 %v757_v48, %v827_v57  ;;  %v763_v63 = vadd.f32 %v762_v59, %v2910_v54  ;;  %v960_v52 = vld [vmem:[%s2861_s30 + $0x8] sm:$0xff] }
 0x1a3   : > { %v2150_v0 = vpop.eup %2149  ;;  %2157 = vpow2.f32 %v903_v53  ;;  %v828_v1 = vmul.f32 0.2, %v759_v58  ;;  %v764_v2 = vpop.f32.mrf.mxu0 }
 0x1a4   : > { %v928_v3 = vadd.f32 1.0, %v2150_v0  ;;  %v905_v4 = vmul.f32 1.442695, %v884_v60  ;;  %1419 = vst [vmem:[%s2920_s14 + $0x30] sm:$0xff] %v2961_v61  ;;  %2031 = vmatprep.mubr.f32.mxu1 %v2961_v61  ;;  %v829_v5 = vmul.f32 0.2, %v763_v63  ;;  %v765_v6 = vadd.f32 %v764_v2, %v2912_v55 }
 0x1a5   : > { %v860_v8 = vmax.f32 %v759_v58, %v828_v1  ;;  %v768_v9 = vpop.f32.mrf.mxu0 }
 0x1a6   : > { %2159 = vrcp.f32 %v928_v3  ;;  %v2968_v10 = vmax.f32 %v763_v63, %v829_v5  ;;  %v830_v11 = vmul.f32 0.2, %v765_v6  ;;  %v769_v12 = vadd.f32 %v768_v9, %v2910_v54 }
 0x1a7   : > { %v2152_v13 = vpop.eup %2151  ;;  %2161 = vpow2.f32 %v905_v4  ;;  %v885_v14 = vsub.f32 0.0, %v860_v8  ;;  %v770_v15 = vpop.f32.mrf.mxu0  ;;  %v961_v8 = vld [vmem:[%s2861_s30 + $0x10] sm:$0xff] }
 0x1a8   : > { %v929_v16 = vadd.f32 1.0, %v2152_v13  ;;  %1420 = vst [vmem:[%s2920_s14 + $0x38] sm:$0xff] %v2968_v10  ;;  %v862_v18 = vmax.f32 %v765_v6, %v830_v11  ;;  %v831_v19 = vmul.f32 0.2, %v769_v12  ;;  %v771_v20 = vadd.f32 %v770_v15, %v2912_v55  ;;  %2032 = vmatmul.mubr.f32.gmra.mxu1 %v2968_v10 }
 0x1a9   : > { %v907_v21 = vmul.f32 1.442695, %v885_v14  ;;  %v774_v22 = vpop.f32.mrf.mxu0 }
 0x1aa   : > { %2163 = vrcp.f32 %v929_v16  ;;  %v886_v23 = vsub.f32 0.0, %v862_v18  ;;  %v2975_v24 = vmax.f32 %v769_v12, %v831_v19  ;;  %v832_v25 = vmul.f32 0.2, %v771_v20 }
 0x1ab   : > { %v2154_v26 = vpop.eup %2153  ;;  %2165 = vpow2.f32 %v907_v21  ;;  %v775_v27 = vadd.f32 %v774_v22, %v2910_v54  ;;  %v776_v28 = vpop.f32.mrf.mxu0 }
 0x1ac   : > { %v930_v30 = vadd.f32 1.0, %v2154_v26  ;;  %v909_v31 = vmul.f32 1.442695, %v886_v23  ;;  %1421 = vst [vmem:[%s2920_s14 + $0x40] sm:$0xff] %v2975_v24  ;;  %v864_v32 = vmax.f32 %v771_v20, %v832_v25  ;;  %v777_v33 = vadd.f32 %v776_v28, %v2912_v55  ;;  %2034 = vmatprep.mubr.f32.mxu1 %v2975_v24 }
 0x1ad   : > { %v833_v35 = vmul.f32 0.2, %v775_v27  ;;  %v780_v36 = vpop.f32.mrf.mxu0 }
 0x1ae   : > { %2167 = vrcp.f32 %v930_v30  ;;  %v887_v38 = vsub.f32 0.0, %v864_v32  ;;  %v834_v39 = vmul.f32 0.2, %v777_v33  ;;  %v781_v40 = vadd.f32 %v780_v36, %v2910_v54 }
 0x1af   : > { %v2156_v41 = vpop.eup %2155  ;;  %2169 = vpow2.f32 %v909_v31  ;;  %v2984_v42 = vmax.f32 %v775_v27, %v833_v35  ;;  %v782_v43 = vpop.f32.mrf.mxu0  ;;  %v962_v27 = vld [vmem:[%s2861_s30 + $0x18] sm:$0xff] }
 0x1b0   : > { %v2158_v44 = vpop.eup %2157  ;;  %1429 = vst [vmem:[%s2987_s18] sm:$0xff] %v2156_v41  ;;  %v911_v45 = vmul.f32 1.442695, %v887_v38  ;;  %v975_v46 = vmul.f32 %v2156_v41, %v959_v34  ;;  %v866_v47 = vmax.f32 %v777_v33, %v834_v39  ;;  %v835_v48 = vmul.f32 0.2, %v781_v40 }
 0x1b1   : > { %v931_v49 = vadd.f32 1.0, %v2158_v44  ;;  %1422 = vst [vmem:[%s2920_s14 + $0x48] sm:$0xff] %v2984_v42  ;;  %v783_v53 = vadd.f32 %v782_v43, %v2912_v55  ;;  %v786_v56 = vpop.f32.mrf.mxu0  ;;  %2035 = vmatmul.mubr.f32.gmra.mxu1 %v2984_v42 }
 0x1b2   : > { %2171 = vpow2.f32 %v911_v45  ;;  %v991_v57 = vadd.f32 %v975_v46, %v2916_v62  ;;  %v888_v58 = vsub.f32 0.0, %v866_v47  ;;  %v3001_v59 = vmax.f32 %v781_v40, %v835_v48 }
 0x1b3   : > { %v2160_v60 = vpop.eup %2159  ;;  %2173 = vrcp.f32 %v931_v49  ;;  %v836_v63 = vmul.f32 0.2, %v783_v53  ;;  %v787_v0 = vadd.f32 %v786_v56, %v2910_v54  ;;  %v788_v1 = vpop.f32.mrf.mxu0 }
 0x1b4   : > { %v2162_v2 = vpop.eup %2161  ;;  %1430 = vst [vmem:[%s2987_s18 + $0x8] sm:$0xff] %v2160_v60  ;;  %v1014_v3 = vmul.f32 %v2993_v51, %v991_v57  ;;  %1557 = vst [vmem:[%s3007_s21] sm:$0xff] %v991_v57  ;;  %v976_v4 = vmul.f32 %v2160_v60, %v960_v52  ;;  %v913_v62 = vmul.f32 1.442695, %v888_v58  ;;  %v789_v5 = vadd.f32 %v788_v1, %v2912_v55  ;;  %v963_v52 = vld [vmem:[%s2861_s30 + $0x20] sm:$0xff] }
 0x1b5   : > { %1423 = vst [vmem:[%s2920_s14 + $0x50] sm:$0xff] %v3001_v59  ;;  %2037 = vmatprep.mubr.f32.mxu1 %v3001_v59  ;;  %v932_v6 = vadd.f32 1.0, %v2162_v2  ;;  %v868_v9 = vmax.f32 %v783_v53, %v836_v63  ;;  %v837_v11 = vmul.f32 0.2, %v787_v0  ;;  %v792_v12 = vpop.f32.mrf.mxu0 }
 0x1b6   : > { %1030 = vadd.xlane.f32.xlu0 %v1014_v3  ;;  %v992_v13 = vadd.f32 %v976_v4, %v2926_v7  ;;  %2175 = vpow2.f32 %v913_v62  ;;  %v838_v14 = vmul.f32 0.2, %v789_v5  ;;  %v793_v15 = vadd.f32 %v792_v12, %v2910_v54 }
 0x1b7   : > { %v2164_v16 = vpop.eup %2163  ;;  %2177 = vrcp.f32 %v932_v6  ;;  %v889_v18 = vsub.f32 0.0, %v868_v9  ;;  %v3017_v19 = vmax.f32 %v787_v0, %v837_v11  ;;  %v794_v20 = vpop.f32.mrf.mxu0 }
 0x1b8   : > { %v2166_v21 = vpop.eup %2165  ;;  %1431 = vst [vmem:[%s2987_s18 + $0x10] sm:$0xff] %v2164_v16  ;;  %v1015_v22 = vmul.f32 %v2993_v51, %v992_v13  ;;  %1558 = vst [vmem:[%s3007_s21 + $0x8] sm:$0xff] %v992_v13  ;;  %v977_v23 = vmul.f32 %v2164_v16, %v961_v8  ;;  %v870_v25 = vmax.f32 %v789_v5, %v838_v14  ;;  %v839_v7 = vmul.f32 0.2, %v793_v15  ;;  %v964_v8 = vld [vmem:[%s2861_s30 + $0x28] sm:$0xff] }
 0x1b9   : > { %v933_v26 = vadd.f32 1.0, %v2166_v21  ;;  %v915_v28 = vmul.f32 1.442695, %v889_v18  ;;  %1424 = vst [vmem:[%s2920_s14 + $0x58] sm:$0xff] %v3017_v19  ;;  %v795_v30 = vadd.f32 %v794_v20, %v2912_v55  ;;  %v798_v31 = vpop.f32.mrf.mxu0  ;;  %2038 = vmatmul.mubr.f32.gmra.mxu1 %v3017_v19  ;;  %v2581_v13 = vmov 0  }
 0x1ba   : > { %1032 = vadd.xlane.f32.xlu1 %v1015_v22  ;;  %v993_v32 = vadd.f32 %v977_v23, %v2933_v17  ;;  %v890_v33 = vsub.f32 0.0, %v870_v25  ;;  %v3028_v34 = vmax.f32 %v793_v15, %v839_v7  ;;  %v799_v35 = vadd.f32 %v798_v31, %v2910_v54  ;;  %2145 = vset.pattern.permute.xlu0 %v2581_v13 }
 0x1bb   : > { %v2168_v36 = vpop.eup %2167  ;;  %2179 = vrcp.f32 %v933_v26  ;;  %v840_v38 = vmul.f32 0.2, %v795_v30  ;;  %v800_v39 = vpop.f32.mrf.mxu0  ;;  %2146 = vset.pattern.permute.xlu1 %v2581_v13  ;;  %v965_v26 = vld [vmem:[%s2861_s30 + $0x30] sm:$0xff] }
 0x1bc   : > { %v2170_v40 = vpop.eup %2169  ;;  %1432 = vst [vmem:[%s2987_s18 + $0x18] sm:$0xff] %v2168_v36  ;;  %v1016_v41 = vmul.f32 %v2993_v51, %v993_v32  ;;  %1559 = vst [vmem:[%s3007_s21 + $0x10] sm:$0xff] %v993_v32  ;;  %v978_v43 = vmul.f32 %v2168_v36, %v962_v27  ;;  %2181 = vpow2.f32 %v915_v28  ;;  %v917_v44 = vmul.f32 1.442695, %v890_v33  ;;  %2040 = vmatprep.mubr.f32.mxu1 %v3028_v34 }
 0x1bd   : > { %1425 = vst [vmem:[%s2920_s14 + $0x60] sm:$0xff] %v3028_v34  ;;  %v934_v17 = vadd.f32 1.0, %v2170_v40  ;;  %v872_v45 = vmax.f32 %v795_v30, %v840_v38  ;;  %v841_v46 = vmul.f32 0.2, %v799_v35  ;;  %v801_v47 = vadd.f32 %v800_v39, %v2912_v55  ;;  %v804_v48 = vpop.f32.mrf.mxu0  ;;  %v966_v40 = vld [vmem:[%s2861_s30 + $0x38] sm:$0xff] }
 0x1be   : > { %1034 = vadd.xlane.f32.xlu0 %v1016_v41  ;;  %v994_v49 = vadd.f32 %v978_v43, %v2941_v29  ;;  %2183 = vpow2.f32 %v917_v44  ;;  %v805_v53 = vadd.f32 %v804_v48, %v2910_v54  ;;  %v967_v48 = vld [vmem:[%s2861_s30 + $0x40] sm:$0xff] }
 0x1bf   : > { %v2172_v56 = vpop.eup %2171  ;;  %2185 = vrcp.f32 %v934_v17  ;;  %v891_v57 = vsub.f32 0.0, %v872_v45  ;;  %v3041_v58 = vmax.f32 %v799_v35, %v841_v46  ;;  %v842_v60 = vmul.f32 0.2, %v801_v47  ;;  %v806_v63 = vpop.f32.mrf.mxu0 }
 0x1c0   : > { %v2174_v0 = vpop.eup %2173  ;;  %v935_v1 = vadd.f32 1.0, %v2172_v56  ;;  %v1017_v2 = vmul.f32 %v2993_v51, %v994_v49  ;;  %1560 = vst [vmem:[%s3007_s21 + $0x18] sm:$0xff] %v994_v49  ;;  %v843_v29 = vmul.f32 0.2, %v805_v53  ;;  %v807_v3 = vadd.f32 %v806_v63, %v2912_v55 }
 0x1c1   : > { %1433 = vst [vmem:[%s2987_s18 + $0x20] sm:$0xff] %v2174_v0  ;;  %v979_v4 = vmul.f32 %v2174_v0, %v963_v52  ;;  %v919_v62 = vmul.f32 1.442695, %v891_v57  ;;  %1426 = vst [vmem:[%s2920_s14 + $0x68] sm:$0xff] %v3041_v58  ;;  %v874_v5 = vmax.f32 %v801_v47, %v842_v60  ;;  %v810_v6 = vpop.f32.mrf.mxu0  ;;  %2041 = vmatmul.mubr.f32.gmra.mxu1 %v3041_v58  ;;  %v968_v60 = vld [vmem:[%s2861_s30 + $0x48] sm:$0xff] }
 0x1c2   : > { %2187 = vrcp.f32 %v935_v1  ;;  %1036 = vadd.xlane.f32.xlu1 %v1017_v2  ;;  %v3051_v9 = vmax.f32 %v805_v53, %v843_v29  ;;  %v844_v11 = vmul.f32 0.2, %v807_v3  ;;  %v811_v12 = vadd.f32 %v810_v6, %v2910_v54 }
 0x1c3   : > { %v2176_v14 = vpop.eup %2175  ;;  %v995_v15 = vadd.f32 %v979_v4, %v2947_v37  ;;  %2189 = vpow2.f32 %v919_v62  ;;  %v892_v16 = vsub.f32 0.0, %v874_v5  ;;  %v812_v18 = vpop.f32.mrf.mxu0 }
 0x1c4   : > { %v2178_v20 = vpop.eup %2177  ;;  %v936_v21 = vadd.f32 1.0, %v2176_v14  ;;  %1427 = vst [vmem:[%s2920_s14 + $0x70] sm:$0xff] %v3051_v9  ;;  %v876_v22 = vmax.f32 %v807_v3, %v844_v11  ;;  %v845_v23 = vmul.f32 0.2, %v811_v12  ;;  %v813_v54 = vadd.f32 %v812_v18, %v2912_v55  ;;  %2043 = vmatprep.mubr.f32.mxu1 %v3051_v9 }
 0x1c5   : > { %1434 = vst [vmem:[%s2987_s18 + $0x28] sm:$0xff] %v2178_v20  ;;  %v1018_v25 = vmul.f32 %v2993_v51, %v995_v15  ;;  %1561 = vst [vmem:[%s3007_s21 + $0x20] sm:$0xff] %v995_v15  ;;  %v980_v37 = vmul.f32 %v2178_v20, %v964_v8  ;;  %v921_v7 = vmul.f32 1.442695, %v892_v16  ;;  %v970_v8 = vld [vmem:[%s2861_s30 + $0x58] sm:$0xff]  ;;  %v971_v20 = vld [vmem:[%s2861_s30 + $0x60] sm:$0xff] }
 0x1c6   : > { %2191 = vrcp.f32 %v936_v21  ;;  %v893_v27 = vsub.f32 0.0, %v876_v22  ;;  %v3063_v28 = vmax.f32 %v811_v12, %v845_v23  ;;  %v846_v30 = vmul.f32 0.2, %v813_v54  ;;  %v972_v23 = vld [vmem:[%s2861_s30 + $0x68] sm:$0xff] }
 0x1c7   : > { %1038 = vadd.xlane.f32.xlu0 %v1018_v25  ;;  %v996_v55 = vadd.f32 %v980_v37, %v2955_v50  ;;  %2193 = vpow2.f32 %v921_v7  ;;  %v973_v7 = vld [vmem:[%s2861_s30 + $0x70] sm:$0xff] }
 0x1c8   : > { %v2180_v31 = vpop.eup %2179  ;;  %v923_v32 = vmul.f32 1.442695, %v893_v27  ;;  %1428 = vst [vmem:[%s2920_s14 + $0x78] sm:$0xff] %v3063_v28  ;;  %v878_v33 = vmax.f32 %v813_v54, %v846_v30  ;;  %2044 = vmatmul.mubr.f32.gmra.mxu1 %v3063_v28 }
 0x1c9   : > { %v2182_v35 = vpop.eup %2181  ;;  %1435 = vst [vmem:[%s2987_s18 + $0x30] sm:$0xff] %v2180_v31  ;;  %v1019_v36 = vmul.f32 %v2993_v51, %v996_v55  ;;  %1562 = vst [vmem:[%s3007_s21 + $0x28] sm:$0xff] %v996_v55  ;;  %v981_v38 = vmul.f32 %v2180_v31, %v965_v26  ;;  %v974_v31 = vld [vmem:[%s2861_s30 + $0x78] sm:$0xff] }
 0x1ca   : > { %v937_v39 = vadd.f32 1.0, %v2182_v35  ;;  %2195 = vpow2.f32 %v923_v32  ;;  %v894_v50 = vsub.f32 0.0, %v878_v33 }
 0x1cb   : > { %v2184_v41 = vpop.eup %2183  ;;  %1040 = vadd.xlane.f32.xlu1 %v1019_v36  ;;  %v997_v43 = vadd.f32 %v981_v38, %v2961_v61  ;;  %v3120_v38 = vld [vmem:[#allocation2] ss:$0 sm:$0xff] }
 0x1cc   : > { %v2186_v44 = vpop.eup %2185  ;;  %2197 = vrcp.f32 %v937_v39  ;;  %v938_v17 = vadd.f32 1.0, %v2184_v41  ;;  %v925_v45 = vmul.f32 1.442695, %v894_v50 }
 0x1cd   : > { %1436 = vst [vmem:[%s2987_s18 + $0x38] sm:$0xff] %v2186_v44  ;;  %v1020_v46 = vmul.f32 %v2993_v51, %v997_v43  ;;  %1563 = vst [vmem:[%s3007_s21 + $0x30] sm:$0xff] %v997_v43  ;;  %v982_v47 = vmul.f32 %v2186_v44, %v966_v40 }
 0x1ce   : > { %2199 = vrcp.f32 %v938_v17 }
 0x1cf   : > { %v2188_v49 = vpop.eup %2187  ;;  %1042 = vadd.xlane.f32.xlu0 %v1020_v46  ;;  %2201 = vpow2.f32 %v925_v45  ;;  %v998_v61 = vadd.f32 %v982_v47, %v2968_v10 }
 0x1d0   : > { %v2190_v52 = vpop.eup %2189  ;;  %1437 = vst [vmem:[%s2987_s18 + $0x40] sm:$0xff] %v2188_v49  ;;  %v983_v53 = vmul.f32 %v2188_v49, %v967_v48 }
 0x1d1   : > { %v939_v56 = vadd.f32 1.0, %v2190_v52  ;;  %v1021_v57 = vmul.f32 %v2993_v51, %v998_v61  ;;  %1564 = vst [vmem:[%s3007_s21 + $0x38] sm:$0xff] %v998_v61 }
 0x1d2   : > { %v999_v63 = vadd.f32 %v983_v53, %v2975_v24  ;;  %v969_v24 = vld [vmem:[%s2861_s30 + $0x50] sm:$0xff]  ;;  %v1932_v53 = vld [vmem:[%s3517_s7] ss:$0 sm:$0xff]  ;;  %s1579_s30 = scalar_lea.sflag [#allocation13], %s2854_s0 }
 0x1d3   : > { %v2192_v0 = vpop.eup %2191  ;;  %2203 = vrcp.f32 %v939_v56  ;;  %1044 = vadd.xlane.f32.xlu1 %v1021_v57 }
 0x1d4   : > { %v2194_v1 = vpop.eup %2193  ;;  %1438 = vst [vmem:[%s2987_s18 + $0x48] sm:$0xff] %v2192_v0  ;;  %v1022_v10 = vmul.f32 %v2993_v51, %v999_v63  ;;  %1565 = vst [vmem:[%s3007_s21 + $0x40] sm:$0xff] %v999_v63  ;;  %v984_v2 = vmul.f32 %v2192_v0, %v968_v60 }
 0x1d5   : > { %v940_v29 = vadd.f32 1.0, %v2194_v1 }
 0x1d6   : > { %1046 = vadd.xlane.f32.xlu0 %v1022_v10  ;;  %v1000_v3 = vadd.f32 %v984_v2, %v2984_v42 }
 0x1d7   : > { %v2196_v4 = vpop.eup %2195  ;;  %2205 = vrcp.f32 %v940_v29 }
 0x1d8   : > { %v941_v62 = vadd.f32 1.0, %v2196_v4  ;;  %v1023_v5 = vmul.f32 %v2993_v51, %v1000_v3  ;;  %1566 = vst [vmem:[%s3007_s21 + $0x48] sm:$0xff] %v1000_v3 }
 0x1d9   : > { %v2198_v6 = vpop.eup %2197 }
 0x1da   : > { %1439 = vst [vmem:[%s2987_s18 + $0x50] sm:$0xff] %v2198_v6  ;;  %2207 = vrcp.f32 %v941_v62  ;;  %1048 = vadd.xlane.f32.xlu1 %v1023_v5  ;;  %v985_v11 = vmul.f32 %v2198_v6, %v969_v24 }
 0x1db   : > { %v2200_v12 = vpop.eup %2199 }
 0x1dc   : > { %v2202_v13 = vpop.eup %2201  ;;  %1440 = vst [vmem:[%s2987_s18 + $0x58] sm:$0xff] %v2200_v12  ;;  %v1001_v42 = vadd.f32 %v985_v11, %v3001_v59  ;;  %v986_v14 = vmul.f32 %v2200_v12, %v970_v8 }
 0x1dd   : > { %v942_v15 = vadd.f32 1.0, %v2202_v13 }
 0x1de   : > { %v1024_v16 = vmul.f32 %v2993_v51, %v1001_v42  ;;  %1567 = vst [vmem:[%s3007_s21 + $0x50] sm:$0xff] %v1001_v42  ;;  %v1002_v18 = vadd.f32 %v986_v14, %v3017_v19 }
 0x1df   : > { %2209 = vrcp.f32 %v942_v15 }
 0x1e0   : > { %v2204_v21 = vpop.eup %2203  ;;  %1050 = vadd.xlane.f32.xlu0 %v1024_v16  ;;  %v1025_v22 = vmul.f32 %v2993_v51, %v1002_v18  ;;  %1568 = vst [vmem:[%s3007_s21 + $0x58] sm:$0xff] %v1002_v18 }
 0x1e1   : > { %1441 = vst [vmem:[%s2987_s18 + $0x60] sm:$0xff] %v2204_v21  ;;  %v987_v59 = vmul.f32 %v2204_v21, %v971_v20 }
 0x1e2   : > { %1052 = vadd.xlane.f32.xlu1 %v1025_v22 }
 0x1e3   : > { %v1003_v54 = vadd.f32 %v987_v59, %v3028_v34 }
 0x1e4   : > { %v2206_v25 = vpop.eup %2205 }
 0x1e5   : > { %1442 = vst [vmem:[%s2987_s18 + $0x68] sm:$0xff] %v2206_v25  ;;  %v1026_v19 = vmul.f32 %v2993_v51, %v1003_v54  ;;  %1569 = vst [vmem:[%s3007_s21 + $0x60] sm:$0xff] %v1003_v54  ;;  %v988_v37 = vmul.f32 %v2206_v25, %v972_v23 }
 0x1e7   : > { %v2208_v26 = vpop.eup %2207  ;;  %1054 = vadd.xlane.f32.xlu0 %v1026_v19  ;;  %v1004_v27 = vadd.f32 %v988_v37, %v3041_v58 }
 0x1e8   : > { %1443 = vst [vmem:[%s2987_s18 + $0x70] sm:$0xff] %v2208_v26  ;;  %v989_v30 = vmul.f32 %v2208_v26, %v973_v7 }
 0x1e9   : > { %v1027_v55 = vmul.f32 %v2993_v51, %v1004_v27  ;;  %1570 = vst [vmem:[%s3007_s21 + $0x68] sm:$0xff] %v1004_v27 }
 0x1ea   : > { %v1005_v34 = vadd.f32 %v989_v30, %v3051_v9 }
 0x1eb   : > { %1056 = vadd.xlane.f32.xlu1 %v1027_v55 }
 0x1ec   : > { %v2210_v32 = vpop.eup %2209  ;;  %v1028_v33 = vmul.f32 %v2993_v51, %v1005_v34  ;;  %1571 = vst [vmem:[%s3007_s21 + $0x70] sm:$0xff] %v1005_v34 }
 0x1ed   : > { %1444 = vst [vmem:[%s2987_s18 + $0x78] sm:$0xff] %v2210_v32  ;;  %v990_v35 = vmul.f32 %v2210_v32, %v974_v31  ;;  %s2389_s18 = scalar_lea.vmem %s2388_s19, 4096 }
 0x1ee   : > { %1058 = vadd.xlane.f32.xlu0 %v1028_v33  ;;  %p2391_p13 = scmp.lt.s32.totalorder %s2389_s18, %s2383_s5 }
 0x1ef   : > { %v1006_v36 = vadd.f32 %v990_v35, %v3063_v28 }
 0x1f0   : > { %p2392_p1 = por %p2391_p13, %p2390_p9 }
 0x1f1   : > { %v1029_v58 = vmul.f32 %v2993_v51, %v1006_v36  ;;  %1572 = vst [vmem:[%s3007_s21 + $0x78] sm:$0xff] %v1006_v36 }
 0x1f2   : > { %p2393_p4 = pnand %p2392_p1, %p2386_p11 }
 0x1f3   : > { %1060 = vadd.xlane.f32.xlu1 %v1029_v58 }
 0x23f   : > { %v1031_v39 = vpop.xlane.xlu0 %1030 }
 0x240   : > { %v1069_v9 = vadd.f32 %v3120_v38, %v1031_v39 }
 0x242   : > { %1447 = vperm.xlu0 %2145, %v1069_v9  }
 0x243   : > { %v1033_v50 = vpop.xlane.xlu1 %1032 }
 0x244   : > { %v1070_v40 = vadd.f32 %v3120_v38, %v1033_v50 }
 0x246   : > { %1452 = vperm.xlu1 %2146, %v1070_v40  }
 0x247   : > { %v1035_v41 = vpop.xlane.xlu0 %1034 }
 0x248   : > { %v1071_v43 = vadd.f32 %v3120_v38, %v1035_v41 }
 0x24a   : > { %1457 = vperm.xlu1 %2146, %v1071_v43  }
 0x24b   : > { %v1037_v44 = vpop.xlane.xlu1 %1036 }
 0x24c   : > { %v1072_v28 = vadd.f32 %v3120_v38, %v1037_v44 }
 0x24e   : > { %1462 = vperm.xlu1 %2146, %v1072_v28  }
 0x250   : > { %v1039_v51 = vpop.xlane.xlu0 %1038  ;;  %v2024_v46 = vpop.f32.mrf.mxu1 }
 0x251   : > { %v1073_v17 = vadd.f32 %v3120_v38, %v1039_v51  ;;  %v3132_v56 = vadd.f32 %v2024_v46, %v1932_v53 }
 0x252   : > { %v1174_v49 = vpop.f32.mrf.mxu1 }
 0x253   : > { %1467 = vperm.xlu1 %2146, %v1073_v17   ;;  %v3137_v0 = vadd.f32 %v1932_v53, %v1174_v49 }
 0x254   : > { %v1041_v45 = vpop.xlane.xlu1 %1040 }
 0x255   : > { %v1074_v47 = vadd.f32 %v3120_v38, %v1041_v45 }
 0x257   : > { %1472 = vperm.xlu1 %2146, %v1074_v47  }
 0x258   : > { %v1043_v48 = vpop.xlane.xlu0 %1042 }
 0x259   : > { %v1075_v61 = vadd.f32 %v3120_v38, %v1043_v48  ;;  %v2027_v52 = vpop.f32.mrf.mxu1 }
 0x25a   : > { %v3153_v16 = vadd.f32 %v2027_v52, %v1932_v53 }
 0x25b   : > { %1477 = vperm.xlu1 %2146, %v1075_v61   ;;  %v1184_v57 = vpop.f32.mrf.mxu1 }
 0x25c   : > { %v1045_v11 = vpop.xlane.xlu1 %1044  ;;  %v3156_v20 = vadd.f32 %v1932_v53, %v1184_v57 }
 0x25d   : > { %v1076_v25 = vadd.f32 %v3120_v38, %v1045_v11 }
 0x25f   : > { %v1047_v2 = vpop.xlane.xlu0 %1046 }
 0x260   : > { %v1077_v19 = vadd.f32 %v3120_v38, %v1047_v2 }
 0x261   : > { %v2030_v60 = vpop.f32.mrf.mxu1  ;;  %1255 = vmax.xlane.f32.xlu0 %v3132_v56 }
 0x262   : > { %v3135_v63 = vadd.f32 %v2030_v60, %v1932_v53 }
 0x263   : > { %v1194_v1 = vpop.f32.mrf.mxu1  ;;  %v1049_v13 = vpop.xlane.xlu1 %1048 }
 0x264   : > { %v3140_v10 = vadd.f32 %v1932_v53, %v1194_v1  ;;  %v1078_v15 = vadd.f32 %v3120_v38, %v1049_v13 }
 0x265   : > { %1253 = vmax.xlane.f32.xlu0 %v3137_v0 }
 0x268   : > { %v2033_v29 = vpop.f32.mrf.mxu1 }
 0x269   : > { %1261 = vmax.xlane.f32.xlu0 %v3140_v10  ;;  %v3143_v3 = vadd.f32 %v2033_v29, %v1932_v53  ;;  %v1051_v4 = vpop.xlane.xlu0 %1050 }
 0x26a   : > { %v1204_v24 = vpop.f32.mrf.mxu1  ;;  %v1079_v40 = vadd.f32 %v3120_v38, %v1051_v4 }
 0x26b   : > { %v3165_v37 = vadd.f32 %v1932_v53, %v1204_v24  ;;  %v1053_v34 = vpop.xlane.xlu1 %1052 }
 0x26c   : > { %v1080_v58 = vadd.f32 %v3120_v38, %v1053_v34 }
 0x270   : > { %v1055_v62 = vpop.xlane.xlu0 %1054 }
 0x271   : > { %v3146_v5 = vadd.f32 %v3120_v38, %v1055_v62  ;;  %v2036_v6 = vpop.f32.mrf.mxu1 }
 0x272   : > { %v3148_v8 = vadd.f32 %v2036_v6, %v1932_v53 }
 0x273   : > { %v1214_v12 = vpop.f32.mrf.mxu1 }
 0x274   : > { %v3168_v7 = vadd.f32 %v1932_v53, %v1214_v12  ;;  %v1057_v31 = vpop.xlane.xlu1 %1056 }
 0x275   : > { %v1082_v9 = vadd.f32 %v3120_v38, %v1057_v31 }
 0x277   : > { %v3180_v32 = vpop.xlane.xlu0 %1058 }
 0x279   : > { %v2039_v42 = vpop.f32.mrf.mxu1 }
 0x27a   : > { %v3150_v14 = vadd.f32 %v2039_v42, %v1932_v53 }
 0x27b   : > { %v1224_v18 = vpop.f32.mrf.mxu1 }
 0x27c   : > { %v3171_v26 = vadd.f32 %v1932_v53, %v1224_v18  ;;  %v3183_v33 = vpop.xlane.xlu1 %1060 }
 0x27f   : > { %1259 = vmax.xlane.f32.xlu1 %v3153_v16  ;;  %1492 = vperm.xlu0 %2145, %v1078_v15  }
 0x281   : > { %v2042_v21 = vpop.f32.mrf.mxu1 }
 0x282   : > { %v3158_v22 = vadd.f32 %v2042_v21, %v1932_v53 }
 0x283   : > { %1257 = vmax.xlane.f32.xlu1 %v3156_v20  ;;  %v1234_v59 = vpop.f32.mrf.mxu1 }
 0x284   : > { %v3174_v27 = vadd.f32 %v1932_v53, %v1234_v59 }
 0x288   : > { %v2045_v23 = vpop.f32.mrf.mxu1 }
 0x289   : > { %v3161_v54 = vadd.f32 %v2045_v23, %v1932_v53 }
 0x28a   : > { %v1244_v30 = vpop.f32.mrf.mxu1 }
 0x28b   : > { %v3177_v55 = vadd.f32 %v1932_v53, %v1244_v30 }
 0x294   : > { %1482 = vperm.xlu1 %2146, %v1076_v25  }
 0x298   : > { %1487 = vperm.xlu1 %2146, %v1077_v19  }
 0x29e   : > { %1265 = vmax.xlane.f32.xlu0 %v3165_v37 }
 0x2a2   : > { %1269 = vmax.xlane.f32.xlu0 %v3168_v7 }
 0x2a6   : > { %1273 = vmax.xlane.f32.xlu0 %v3171_v26 }
 0x2aa   : > { %1277 = vmax.xlane.f32.xlu0 %v3174_v27 }
 0x2ae   : > { %1281 = vmax.xlane.f32.xlu0 %v3177_v55 }
 0x2bc   : > { %1263 = vmax.xlane.f32.xlu1 %v3135_v63 }
 0x2bd   : > { %v1448_v35 = vpop.permute.xlu0 %1447 }
 0x2be   : > { %1525 = vst [vmem:[%s3186_s12] sm:$0xff] %v1448_v35 }
 0x2c1   : > { %v1453_v36 = vpop.permute.xlu1 %1452 }
 0x2c2   : > { %1526 = vst [vmem:[%s3186_s12 + $0x8] sm:$0xff] %v1453_v36 }
 0x2c4   : > { %1502 = vperm.xlu0 %2145, %v1080_v58  }
 0x2c5   : > { %v1458_v39 = vpop.permute.xlu1 %1457 }
 0x2c6   : > { %1527 = vst [vmem:[%s3186_s12 + $0x10] sm:$0xff] %v1458_v39 }
 0x2c8   : > { %1512 = vperm.xlu0 %2145, %v1082_v9  }
 0x2c9   : > { %v1463_v50 = vpop.permute.xlu1 %1462 }
 0x2ca   : > { %1528 = vst [vmem:[%s3186_s12 + $0x18] sm:$0xff] %v1463_v50  ;;  %v1084_v50 = vadd.f32 %v3120_v38, %v3183_v33 }
 0x2cd   : > { %1497 = vperm.xlu1 %2146, %v1079_v40  }
 0x2ce   : > { %v1468_v41 = vpop.permute.xlu1 %1467 }
 0x2cf   : > { %1529 = vst [vmem:[%s3186_s12 + $0x20] sm:$0xff] %v1468_v41 }
 0x2d2   : > { %v1473_v43 = vpop.permute.xlu1 %1472 }
 0x2d3   : > { %1530 = vst [vmem:[%s3186_s12 + $0x28] sm:$0xff] %v1473_v43 }
 0x2d6   : > { %v1478_v44 = vpop.permute.xlu1 %1477 }
 0x2d7   : > { %1531 = vst [vmem:[%s3186_s12 + $0x30] sm:$0xff] %v1478_v44 }
 0x2ea   : > { %v1256_v28 = vpop.xlane.xlu0 %1255 }
 0x2ee   : > { %v1254_v51 = vpop.xlane.xlu0 %1253 }
 0x2ef   : > { %v3199_v17 = vsub.f32 %v3137_v0, %v1254_v51 }
 0x2f1   : > { %v1301_v45 = vmul.f32 1.442695, %v3199_v17  ;;  %1267 = vmax.xlane.f32.xlu1 %v3143_v3 }
 0x2f2   : > { %v1262_v46 = vpop.xlane.xlu0 %1261 }
 0x2f3   : > { %2211 = vpow2.f32 %v1301_v45  ;;  %v3209_v52 = vsub.f32 %v3140_v10, %v1262_v46  ;;  %v3220_v10 = vsub.f32 %v3132_v56, %v1256_v28 }
 0x2f5   : > { %1271 = vmax.xlane.f32.xlu1 %v3148_v8  ;;  %v1309_v0 = vmul.f32 1.442695, %v3209_v52  ;;  %v1303_v24 = vmul.f32 1.442695, %v3220_v10 }
 0x2f9   : > { %1275 = vmax.xlane.f32.xlu1 %v3150_v14 }
 0x2fa   : > { %v1493_v47 = vpop.permute.xlu0 %1492 }
 0x2fb   : > { %1534 = vst [vmem:[%s3186_s12 + $0x48] sm:$0xff] %v1493_v47 }
 0x2fd   : > { %1279 = vmax.xlane.f32.xlu1 %v3158_v22 }
 0x300   : > { %v2212_v48 = vpop.eup %2211 }
 0x301   : > { %1283 = vmax.xlane.f32.xlu1 %v3161_v54  ;;  %1333 = vadd.xlane.f32.xlu0 %v2212_v48 }
 0x308   : > { %v1260_v49 = vpop.xlane.xlu1 %1259 }
 0x309   : > { %v3223_v4 = vsub.f32 %v3153_v16, %v1260_v49 }
 0x30b   : > { %v1307_v62 = vmul.f32 1.442695, %v3223_v4 }
 0x30c   : > { %v1258_v61 = vpop.xlane.xlu1 %1257 }
 0x30d   : > { %v3212_v53 = vsub.f32 %v3156_v20, %v1258_v61 }
 0x30f   : > { %v1305_v57 = vmul.f32 1.442695, %v3212_v53 }
 0x310   : > { %v1483_v60 = vpop.permute.xlu1 %1482 }
 0x311   : > { %2213 = vpow2.f32 %v1305_v57  ;;  %1532 = vst [vmem:[%s3186_s12 + $0x38] sm:$0xff] %v1483_v60 }
 0x312   : > { %1507 = vperm.xlu1 %2146, %v3146_v5   ;;  %2215 = vpow2.f32 %v1309_v0 }
 0x313   : > { %2217 = vpow2.f32 %v1303_v24 }
 0x314   : > { %v1488_v1 = vpop.permute.xlu1 %1487  ;;  %2219 = vpow2.f32 %v1307_v62  ;;  %v1083_v62 = vadd.f32 %v3120_v38, %v3180_v32 }
 0x315   : > { %1533 = vst [vmem:[%s3186_s12 + $0x40] sm:$0xff] %v1488_v1 }
 0x31e   : > { %v2214_v2 = vpop.eup %2213 }
 0x31f   : > { %1337 = vadd.xlane.f32.xlu0 %v2214_v2  ;;  %v2216_v29 = vpop.eup %2215 }
 0x320   : > { %v2218_v21 = vpop.eup %2217 }
 0x321   : > { %v2220_v25 = vpop.eup %2219 }
 0x323   : > { %1341 = vadd.xlane.f32.xlu0 %v2216_v29 }
 0x327   : > { %v1266_v6 = vpop.xlane.xlu0 %1265 }
 0x328   : > { %v3228_v5 = vsub.f32 %v3165_v37, %v1266_v6 }
 0x32a   : > { %v1313_v11 = vmul.f32 1.442695, %v3228_v5 }
 0x32b   : > { %v1270_v12 = vpop.xlane.xlu0 %1269 }
 0x32c   : > { %2221 = vpow2.f32 %v1313_v11  ;;  %v3232_v56 = vsub.f32 %v3168_v7, %v1270_v12 }
 0x32e   : > { %v1317_v13 = vmul.f32 1.442695, %v3232_v56 }
 0x32f   : > { %v1274_v42 = vpop.xlane.xlu0 %1273 }
 0x330   : > { %2223 = vpow2.f32 %v1317_v13  ;;  %v3236_v15 = vsub.f32 %v3171_v26, %v1274_v42 }
 0x332   : > { %v1321_v16 = vmul.f32 1.442695, %v3236_v15 }
 0x333   : > { %v1278_v18 = vpop.xlane.xlu0 %1277 }
 0x334   : > { %2225 = vpow2.f32 %v1321_v16  ;;  %v3240_v20 = vsub.f32 %v3174_v27, %v1278_v18 }
 0x336   : > { %v1325_v59 = vmul.f32 1.442695, %v3240_v20  ;;  %1335 = vadd.xlane.f32.xlu1 %v2218_v21 }
 0x337   : > { %v1282_v23 = vpop.xlane.xlu0 %1281 }
 0x338   : > { %2227 = vpow2.f32 %v1325_v59  ;;  %v3244_v19 = vsub.f32 %v3177_v55, %v1282_v23 }
 0x339   : > { %v2222_v37 = vpop.eup %2221 }
 0x33a   : > { %v1329_v7 = vmul.f32 1.442695, %v3244_v19  ;;  %1339 = vadd.xlane.f32.xlu1 %v2220_v25  ;;  %1345 = vadd.xlane.f32.xlu0 %v2222_v37 }
 0x33c   : > { %2229 = vpow2.f32 %v1329_v7 }
 0x33d   : > { %v2224_v26 = vpop.eup %2223 }
 0x33e   : > { %1349 = vadd.xlane.f32.xlu0 %v2224_v26 }
 0x33f   : > { %v1503_v27 = vpop.permute.xlu0 %1502 }
 0x340   : > { %1536 = vst [vmem:[%s3186_s12 + $0x58] sm:$0xff] %v1503_v27 }
 0x341   : > { %v2226_v30 = vpop.eup %2225 }
 0x342   : > { %1353 = vadd.xlane.f32.xlu0 %v2226_v30 }
 0x343   : > { %v1513_v34 = vpop.permute.xlu0 %1512 }
 0x344   : > { %1538 = vst [vmem:[%s3186_s12 + $0x68] sm:$0xff] %v1513_v34 }
 0x345   : > { %v2228_v31 = vpop.eup %2227  ;;  %v1264_v35 = vpop.xlane.xlu1 %1263 }
 0x346   : > { %v3250_v55 = vsub.f32 %v3135_v63, %v1264_v35  ;;  %1357 = vadd.xlane.f32.xlu0 %v2228_v31 }
 0x348   : > { %v1311_v36 = vmul.f32 1.442695, %v3250_v55 }
 0x349   : > { %v2230_v58 = vpop.eup %2229  ;;  %v1498_v39 = vpop.permute.xlu1 %1497 }
 0x34a   : > { %2231 = vpow2.f32 %v1311_v36  ;;  %1535 = vst [vmem:[%s3186_s12 + $0x50] sm:$0xff] %v1498_v39  ;;  %1361 = vadd.xlane.f32.xlu0 %v2230_v58 }
 0x357   : > { %v2232_v9 = vpop.eup %2231 }
 0x358   : > { %1343 = vadd.xlane.f32.xlu1 %v2232_v9 }
 0x360   : > { %1522 = vperm.xlu0 %2145, %v1084_v50  }
 0x37a   : > { %v1268_v40 = vpop.xlane.xlu1 %1267 }
 0x37b   : > { %v3257_v41 = vsub.f32 %v3143_v3, %v1268_v40 }
 0x37d   : > { %v1315_v63 = vmul.f32 1.442695, %v3257_v41 }
 0x37e   : > { %v1272_v43 = vpop.xlane.xlu1 %1271 }
 0x37f   : > { %2233 = vpow2.f32 %v1315_v63  ;;  %v3261_v44 = vsub.f32 %v3148_v8, %v1272_v43 }
 0x381   : > { %v1319_v28 = vmul.f32 1.442695, %v3261_v44 }
 0x382   : > { %v1276_v51 = vpop.xlane.xlu1 %1275 }
 0x383   : > { %2235 = vpow2.f32 %v1319_v28  ;;  %v3265_v45 = vsub.f32 %v3150_v14, %v1276_v51 }
 0x385   : > { %v1323_v33 = vmul.f32 1.442695, %v3265_v45 }
 0x386   : > { %v1280_v46 = vpop.xlane.xlu1 %1279 }
 0x387   : > { %2237 = vpow2.f32 %v1323_v33  ;;  %v3269_v3 = vsub.f32 %v3158_v22, %v1280_v46 }
 0x389   : > { %v1327_v47 = vmul.f32 1.442695, %v3269_v3 }
 0x38a   : > { %v1284_v48 = vpop.xlane.xlu1 %1283  ;;  %v1334_v8 = vpop.xlane.xlu0 %1333 }
 0x38b   : > { %2239 = vpow2.f32 %v1327_v47  ;;  %v3273_v49 = vsub.f32 %v3161_v54, %v1284_v48 }
 0x38c   : > { %v2234_v61 = vpop.eup %2233  ;;  %2241 = vlog2.f32 %v1334_v8 }
 0x38d   : > { %v1331_v14 = vmul.f32 1.442695, %v3273_v49  ;;  %1347 = vadd.xlane.f32.xlu1 %v2234_v61 }
 0x38e   : > { %v1508_v57 = vpop.permute.xlu1 %1507 }
 0x38f   : > { %2243 = vpow2.f32 %v1331_v14  ;;  %1537 = vst [vmem:[%s3186_s12 + $0x60] sm:$0xff] %v1508_v57 }
 0x390   : > { %v2236_v60 = vpop.eup %2235 }
 0x391   : > { %1351 = vadd.xlane.f32.xlu1 %v2236_v60 }
 0x394   : > { %v2238_v22 = vpop.eup %2237 }
 0x395   : > { %1355 = vadd.xlane.f32.xlu1 %v2238_v22 }
 0x398   : > { %v2240_v0 = vpop.eup %2239 }
 0x399   : > { %v2242_v1 = vpop.eup %2241  ;;  %1359 = vadd.xlane.f32.xlu1 %v2240_v0 }
 0x39a   : > { %v1366_v54 = vmul.f32 0.6931472, %v2242_v1 }
 0x39c   : > { %v2244_v2 = vpop.eup %2243  ;;  %v1397_v29 = vsub.f32 %v3199_v17, %v1366_v54 }
 0x39d   : > { %1363 = vadd.xlane.f32.xlu1 %v2244_v2 }
 0x39e   : > { %1541 = vst [vmem:[%s3279_s6] sm:$0xff] %v1397_v29 }
 0x3a8   : > { %v1338_v24 = vpop.xlane.xlu0 %1337 }
 0x3a9   : > { %2245 = vlog2.f32 %v1338_v24 }
 0x3ac   : > { %v1342_v6 = vpop.xlane.xlu0 %1341 }
 0x3ad   : > { %2247 = vlog2.f32 %v1342_v6 }
 0x3ae   : > { %1517 = vperm.xlu1 %2146, %v1083_v62  }
 0x3b6   : > { %v2246_v11 = vpop.eup %2245 }
 0x3b7   : > { %v1370_v12 = vmul.f32 0.6931472, %v2246_v11 }
 0x3b9   : > { %v1399_v17 = vsub.f32 %v3212_v53, %v1370_v12 }
 0x3ba   : > { %v2248_v13 = vpop.eup %2247 }
 0x3bb   : > { %1543 = vst [vmem:[%s3279_s6 + $0x10] sm:$0xff] %v1399_v17  ;;  %v1374_v38 = vmul.f32 0.6931472, %v2248_v13 }
 0x3bc   : > { %2396 = shalt.err (!%p2393_p4)
}
 0x3bd   : > { %s2397_s22 = scalar_lea.hbm %s3293_s23, 2048  ;;  %s2401_s27 = scalar_lea.hbm %s3519_s9, 4096 }
 0x3be   : > { %p2398_p10 = scmp.ne.s32.totalorder %s3293_s23, %s2397_s22  ;;  %p2402_p2 = scmp.lt.s32.totalorder %s3293_s23, %s3519_s9 }
 0x3bf   : > { %p2403_p6 = scmp.lt.s32.totalorder %s2401_s27, %s2397_s22 }
 0x3c0   : > { %p2399_p7 = pnand %p2398_p10, %p3566_p5 }
 0x3c1   : > { %p2404_p12 = por %p2403_p6, %p2402_p2 }
 0x3c2   : > { %p2400_p8 = pneg %p2399_p7 }
 0x3c4   : > { %p2405_p0 = pnand %p2404_p12, %p2400_p8 }
 0x3c6   : > { %2408 = shalt.err (!%p2405_p0)
}
 0x3c7   : > { %s2583_s5 = smov 128   ;;  %s2584_s28 = smov 8   ;;  %v1401_v32 = vsub.f32 %v3209_v52, %v1374_v38  ;;  %v1336_v53 = vpop.xlane.xlu1 %1335 }
 0x3c8   : > { %2059 = dma.vmem_to_hbm [thread:$0]  (%p3566_p5), %s3296_s25, 2048, %s3293_s23, %s1579_s30, %s2583_s5, %s2583_s5, %s2584_s28   ;;  %2249 = vlog2.f32 %v1336_v53 }
 0x3c9   : > { %1545 = vst [vmem:[%s3279_s6 + $0x20] sm:$0xff] %v1401_v32  ;;  %s3330_s22 = scalar_lea.hbm %s3518_s8, %s3285_s17  ;;  %s1607_s29 = sshll.u32 %s2920_s14, 4  ;;  %s3333_s29 = int_to_ptr.vmem [resolvable:$true] %s1607_s29 }
 0x3ca   : > { %s1574_s13 = scalar_lea.sflag [#allocation5], %s2843_s16  ;;  %s2409_s27 = scalar_lea.vmem %s3333_s29, 2048 }
 0x3cb   : > { %p2410_p3 = scmp.ne.s32.totalorder %s3333_s29, %s2409_s27  ;;  %s2585_s25 = smov [#allocation11]  }
 0x3cc   : > { %s2413_s23 = sshll.u32 %s2585_s25, 4  ;;  %s2414_s23 = int_to_ptr.vmem [resolvable:$false] %s2413_s23 }
 0x3cd   : > { %p2411_p11 = pnand %p2410_p3, %p3566_p5  ;;  %s2415_s20 = scalar_lea.vmem %s2414_s23, 4096 }
 0x3ce   : > { %p2416_p13 = scmp.lt.s32.totalorder %s3333_s29, %s2414_s23  ;;  %p2417_p1 = scmp.lt.s32.totalorder %s2415_s20, %s2409_s27 }
 0x3cf   : > { %p2412_p9 = pneg %p2411_p11 }
 0x3d0   : > { %p2418_p4 = por %p2417_p1, %p2416_p13 }
 0x3d2   : > { %p2419_p10 = pnand %p2418_p4, %p2412_p9 }
 0x3d4   : > { %2422 = shalt.err (!%p2419_p10)
}
 0x3d5   : > { %s2423_s14 = scalar_lea.hbm %s3330_s22, 2048  ;;  %s2427_s19 = scalar_lea.hbm %s3518_s8, 4096 }
 0x3d6   : > { %p2424_p7 = scmp.ne.s32.totalorder %s3330_s22, %s2423_s14  ;;  %p2428_p6 = scmp.lt.s32.totalorder %s3330_s22, %s3518_s8 }
 0x3d7   : > { %p2429_p12 = scmp.lt.s32.totalorder %s2427_s19, %s2423_s14 }
 0x3d8   : > { %p2425_p8 = pnand %p2424_p7, %p3566_p5 }
 0x3d9   : > { %p2430_p0 = por %p2429_p12, %p2428_p6 }
 0x3da   : > { %p2426_p2 = pneg %p2425_p8 }
 0x3dc   : > { %p2431_p3 = pnand %p2430_p0, %p2426_p2 }
 0x3de   : > { %2434 = shalt.err (!%p2431_p3)
}
 0x3df   : > { %2058 = dma.vmem_to_hbm [thread:$0]  (%p3566_p5), %s3333_s29, 2048, %s3330_s22, %s1574_s13, %s2583_s5, %s2583_s5, %s2584_s28   ;;  %v1340_v52 = vpop.xlane.xlu1 %1339  ;;  %v1346_v42 = vpop.xlane.xlu0 %1345 }
 0x3e0   : > { %2251 = vlog2.f32 %v1340_v52  ;;  %v2250_v21 = vpop.eup %2249  ;;  %s1639_s22 = sshll.u32 %s3186_s12, 4  ;;  %s3383_s27 = scalar_lea.hbm %s3520_s10, %s3285_s17  ;;  %s3385_s22 = int_to_ptr.vmem [resolvable:$true] %s1639_s22 }
 0x3e1   : > { %2253 = vlog2.f32 %v1346_v42  ;;  %v1368_v59 = vmul.f32 0.6931472, %v2250_v21  ;;  %s2435_s23 = scalar_lea.vmem %s3385_s22, 2048  ;;  %s2586_s20 = smov [#allocation14]  }
 0x3e2   : > { %p2436_p11 = scmp.ne.s32.totalorder %s3385_s22, %s2435_s23  ;;  %s2439_s14 = sshll.u32 %s2586_s20, 4  ;;  %s2440_s14 = int_to_ptr.vmem [resolvable:$false] %s2439_s14 }
 0x3e3   : > { %v1350_v16 = vpop.xlane.xlu0 %1349  ;;  %v1398_v25 = vsub.f32 %v3220_v10, %v1368_v59  ;;  %v1344_v43 = vpop.xlane.xlu1 %1343  ;;  %s2441_s16 = scalar_lea.vmem %s2440_s14, 4096  ;;  %p2442_p1 = scmp.lt.s32.totalorder %s3385_s22, %s2440_s14 }
 0x3e4   : > { %2255 = vlog2.f32 %v1350_v16  ;;  %p2437_p9 = pnand %p2436_p11, %p3566_p5  ;;  %p2443_p4 = scmp.lt.s32.totalorder %s2441_s16, %s2435_s23 }
 0x3e5   : > { %1542 = vst [vmem:[%s3279_s6 + $0x8] sm:$0xff] %v1398_v25 }
 0x3e6   : > { %p2438_p13 = pneg %p2437_p9  ;;  %p2444_p10 = por %p2443_p4, %p2442_p1 }
 0x3e7   : > { %v1354_v18 = vpop.xlane.xlu0 %1353 }
 0x3e8   : > { %2257 = vlog2.f32 %v1354_v18  ;;  %p2445_p7 = pnand %p2444_p10, %p2438_p13 }
 0x3eb   : > { %v1358_v23 = vpop.xlane.xlu0 %1357 }
 0x3ec   : > { %2259 = vlog2.f32 %v1358_v23 }
 0x3ed   : > { %v2252_v37 = vpop.eup %2251 }
 0x3ee   : > { %v2254_v7 = vpop.eup %2253  ;;  %v1372_v26 = vmul.f32 0.6931472, %v2252_v37 }
 0x3ef   : > { %v1378_v27 = vmul.f32 0.6931472, %v2254_v7  ;;  %v1362_v30 = vpop.xlane.xlu0 %1361 }
 0x3f0   : > { %v1400_v34 = vsub.f32 %v3223_v4, %v1372_v26  ;;  %2261 = vlog2.f32 %v1362_v30 }
 0x3f1   : > { %v2256_v31 = vpop.eup %2255  ;;  %v1403_v35 = vsub.f32 %v3228_v5, %v1378_v27  ;;  %2263 = vlog2.f32 %v1344_v43 }
 0x3f2   : > { %1544 = vst [vmem:[%s3279_s6 + $0x18] sm:$0xff] %v1400_v34  ;;  %v1382_v36 = vmul.f32 0.6931472, %v2256_v31 }
 0x3f3   : > { %1547 = vst [vmem:[%s3279_s6 + $0x30] sm:$0xff] %v1403_v35  ;;  %v1523_v9 = vpop.permute.xlu0 %1522 }
 0x3f4   : > { %v1405_v10 = vsub.f32 %v3232_v56, %v1382_v36  ;;  %1540 = vst [vmem:[%s3186_s12 + $0x78] sm:$0xff] %v1523_v9 }
 0x3f5   : > { %v2258_v58 = vpop.eup %2257 }
 0x3f6   : > { %1549 = vst [vmem:[%s3279_s6 + $0x40] sm:$0xff] %v1405_v10  ;;  %v1386_v39 = vmul.f32 0.6931472, %v2258_v58 }
 0x3f8   : > { %v1407_v50 = vsub.f32 %v3236_v15, %v1386_v39 }
 0x3f9   : > { %v2260_v4 = vpop.eup %2259 }
 0x3fa   : > { %1551 = vst [vmem:[%s3279_s6 + $0x50] sm:$0xff] %v1407_v50  ;;  %v1390_v40 = vmul.f32 0.6931472, %v2260_v4 }
 0x3fc   : > { %v1409_v5 = vsub.f32 %v3240_v20, %v1390_v40 }
 0x3fd   : > { %v2262_v63 = vpop.eup %2261 }
 0x3fe   : > { %1553 = vst [vmem:[%s3279_s6 + $0x60] sm:$0xff] %v1409_v5  ;;  %v1394_v28 = vmul.f32 0.6931472, %v2262_v63  ;;  %v2264_v51 = vpop.eup %2263 }
 0x3ff   : > { %v1376_v33 = vmul.f32 0.6931472, %v2264_v51 }
 0x400   : > { %v1411_v56 = vsub.f32 %v3244_v19, %v1394_v28 }
 0x401   : > { %v1402_v15 = vsub.f32 %v3250_v55, %v1376_v33 }
 0x402   : > { %1555 = vst [vmem:[%s3279_s6 + $0x70] sm:$0xff] %v1411_v56 }
 0x403   : > { %1546 = vst [vmem:[%s3279_s6 + $0x28] sm:$0xff] %v1402_v15 }
 0x416   : > { %v1348_v46 = vpop.xlane.xlu1 %1347 }
 0x417   : > { %2265 = vlog2.f32 %v1348_v46 }
 0x41a   : > { %v1352_v47 = vpop.xlane.xlu1 %1351 }
 0x41b   : > { %2267 = vlog2.f32 %v1352_v47 }
 0x41e   : > { %v1356_v20 = vpop.xlane.xlu1 %1355 }
 0x41f   : > { %2269 = vlog2.f32 %v1356_v20 }
 0x422   : > { %v1360_v48 = vpop.xlane.xlu1 %1359 }
 0x423   : > { %2271 = vlog2.f32 %v1360_v48 }
 0x424   : > { %v2266_v8 = vpop.eup %2265 }
 0x425   : > { %v1380_v19 = vmul.f32 0.6931472, %v2266_v8 }
 0x426   : > { %v1364_v61 = vpop.xlane.xlu1 %1363 }
 0x427   : > { %v1404_v14 = vsub.f32 %v3257_v41, %v1380_v19  ;;  %2273 = vlog2.f32 %v1364_v61 }
 0x428   : > { %v2268_v55 = vpop.eup %2267 }
 0x429   : > { %1548 = vst [vmem:[%s3279_s6 + $0x38] sm:$0xff] %v1404_v14  ;;  %v1384_v57 = vmul.f32 0.6931472, %v2268_v55 }
 0x42a   : > { %v1518_v60 = vpop.permute.xlu1 %1517 }
 0x42b   : > { %v1406_v22 = vsub.f32 %v3261_v44, %v1384_v57  ;;  %1539 = vst [vmem:[%s3186_s12 + $0x70] sm:$0xff] %v1518_v60 }
 0x42c   : > { %v2270_v0 = vpop.eup %2269 }
 0x42d   : > { %2448 = shalt.err (!%p2445_p7)
}
 0x42e   : > { %s2449_s12 = scalar_lea.hbm %s3383_s27, 2048  ;;  %s2453_s18 = scalar_lea.hbm %s3520_s10, 4096 }
 0x42f   : > { %p2450_p8 = scmp.ne.s32.totalorder %s3383_s27, %s2449_s12  ;;  %p2454_p12 = scmp.lt.s32.totalorder %s3383_s27, %s3520_s10 }
 0x430   : > { %p2455_p0 = scmp.lt.s32.totalorder %s2453_s18, %s2449_s12 }
 0x431   : > { %p2451_p2 = pnand %p2450_p8, %p3566_p5 }
 0x432   : > { %p2456_p3 = por %p2455_p0, %p2454_p12 }
 0x433   : > { %p2452_p6 = pneg %p2451_p2 }
 0x435   : > { %p2457_p11 = pnand %p2456_p3, %p2452_p6 }
 0x437   : > { %2460 = shalt.err (!%p2457_p11)
}
 0x438   : > { %2060 = dma.vmem_to_hbm [thread:$0]  (%p3566_p5), %s3385_s22, 2048, %s3383_s27, %s1579_s30, %s2583_s5, %s2583_s5, %s2584_s28   ;;  %v1388_v41 = vmul.f32 0.6931472, %v2270_v0  ;;  %v2272_v1 = vpop.eup %2271 }
 0x439   : > { %1550 = vst [vmem:[%s3279_s6 + $0x48] sm:$0xff] %v1406_v22  ;;  %v1392_v54 = vmul.f32 0.6931472, %v2272_v1  ;;  %v2274_v29 = vpop.eup %2273  ;;  %s1655_s13 = sshll.u32 %s3279_s6, 4  ;;  %s1671_s23 = sshll.u32 %s3007_s21, 4  ;;  %s3428_s13 = int_to_ptr.vmem [resolvable:$true] %s1655_s13  ;;  %s3436_s23 = int_to_ptr.vmem [resolvable:$true] %s1671_s23 }
 0x43a   : > { %v1408_v44 = vsub.f32 %v3265_v45, %v1388_v41  ;;  %v1396_v24 = vmul.f32 0.6931472, %v2274_v29  ;;  %s3426_s27 = scalar_lea.hbm %s3521_s11, %s3285_s17  ;;  %s3567_s16 = sld [smem:[#allocation33_spill]] }
 0x43b   : > { %v1410_v2 = vsub.f32 %v3269_v3, %v1392_v54  ;;  %s1589_s21 = scalar_lea.sflag [#allocation16], %s2854_s0  ;;  %s2461_s2 = scalar_lea.vmem %s3428_s13, 2048 }
 0x43c   : > { %1552 = vst [vmem:[%s3279_s6 + $0x58] sm:$0xff] %v1408_v44  ;;  %v1412_v62 = vsub.f32 %v3273_v49, %v1396_v24  ;;  %p2462_p9 = scmp.ne.s32.totalorder %s3428_s13, %s2461_s2  ;;  %s2587_s19 = smov [#allocation15]  }
 0x43d   : > { %1554 = vst [vmem:[%s3279_s6 + $0x68] sm:$0xff] %v1410_v2  ;;  %s2465_s18 = sshll.u32 %s2587_s19, 4  ;;  %s2466_s18 = int_to_ptr.vmem [resolvable:$false] %s2465_s18 }
 0x43e   : > { %1556 = vst [vmem:[%s3279_s6 + $0x78] sm:$0xff] %v1412_v62  ;;  %p2463_p13 = pnand %p2462_p9, %p3566_p5  ;;  %s2467_s25 = scalar_lea.vmem %s2466_s18, 4096 }
 0x43f   : > { %p2468_p4 = scmp.lt.s32.totalorder %s3428_s13, %s2466_s18  ;;  %p2469_p10 = scmp.lt.s32.totalorder %s2467_s25, %s2461_s2 }
 0x440   : > { %s3434_s12 = scalar_lea.hbm %s3567_s16, %s3285_s17  ;;  %p2464_p1 = pneg %p2463_p13 }
 0x441   : > { %p2470_p7 = por %p2469_p10, %p2468_p4 }
 0x443   : > { %p2471_p8 = pnand %p2470_p7, %p2464_p1 }
 0x445   : > { %2474 = shalt.err (!%p2471_p8)
}
 0x446   : > { %s2475_s6 = scalar_lea.hbm %s3426_s27, 2048  ;;  %s2479_s30 = scalar_lea.hbm %s3521_s11, 4096 }
 0x447   : > { %p2476_p2 = scmp.ne.s32.totalorder %s3426_s27, %s2475_s6  ;;  %p2480_p0 = scmp.lt.s32.totalorder %s3426_s27, %s3521_s11 }
 0x448   : > { %p2481_p3 = scmp.lt.s32.totalorder %s2479_s30, %s2475_s6 }
 0x449   : > { %p2477_p6 = pnand %p2476_p2, %p3566_p5 }
 0x44a   : > { %p2482_p11 = por %p2481_p3, %p2480_p0 }
 0x44b   : > { %p2478_p12 = pneg %p2477_p6 }
 0x44d   : > { %p2483_p9 = pnand %p2482_p11, %p2478_p12 }
 0x44f   : > { %2486 = shalt.err (!%p2483_p9)
}
 0x450   : > { %2061 = dma.vmem_to_hbm [thread:$0]  (%p3566_p5), %s3428_s13, 2048, %s3426_s27, %s1589_s21, %s2583_s5, %s2583_s5, %s2584_s28  }
 0x451   : > { %s2487_s14 = scalar_lea.vmem %s3436_s23, 2048  ;;  %s2588_s2 = smov [#allocation17]  }
 0x452   : > { %p2488_p13 = scmp.ne.s32.totalorder %s3436_s23, %s2487_s14  ;;  %s2491_s19 = sshll.u32 %s2588_s2, 4  ;;  %s2492_s19 = int_to_ptr.vmem [resolvable:$false] %s2491_s19 }
 0x453   : > { %s2493_s18 = scalar_lea.vmem %s2492_s19, 4096  ;;  %p2494_p10 = scmp.lt.s32.totalorder %s3436_s23, %s2492_s19 }
 0x454   : > { %p2489_p1 = pnand %p2488_p13, %p3566_p5  ;;  %p2495_p7 = scmp.lt.s32.totalorder %s2493_s18, %s2487_s14 }
 0x456   : > { %p2490_p4 = pneg %p2489_p1  ;;  %p2496_p8 = por %p2495_p7, %p2494_p10 }
 0x458   : > { %p2497_p2 = pnand %p2496_p8, %p2490_p4 }
 0x45a   : > { %2500 = shalt.err (!%p2497_p2)
}
 0x45b   : > { %s2501_s25 = scalar_lea.hbm %s3434_s12, 2048  ;;  %s2505_s6 = scalar_lea.hbm %s3567_s16, 4096 }
 0x45c   : > { %p2502_p6 = scmp.ne.s32.totalorder %s3434_s12, %s2501_s25  ;;  %p2506_p3 = scmp.lt.s32.totalorder %s3434_s12, %s3567_s16 }
 0x45d   : > { %p2507_p11 = scmp.lt.s32.totalorder %s2505_s6, %s2501_s25 }
 0x45e   : > { %p2503_p12 = pnand %p2502_p6, %p3566_p5 }
 0x45f   : > { %p2508_p9 = por %p2507_p11, %p2506_p3 }
 0x460   : > { %p2504_p0 = pneg %p2503_p12 }
 0x462   : > { %p2509_p13 = pnand %p2508_p9, %p2504_p0 }
 0x464   : > { %2512 = shalt.err (!%p2509_p13)
}
 0x465   : > { %2062 = dma.vmem_to_hbm [thread:$0]  (%p3566_p5), %s3436_s23, 2048, %s3434_s12, %s1589_s21, %s2583_s5, %s2583_s5, %s2584_s28  }
 0x466 PF: > { %s3568_s30 = sld [smem:[#allocation25_spill]]  ;;  %p3571_p4 = scmp.ge.s32.totalorder %s2571_s26, 2 }
 0x467   : > { %s3569_s22 = sld [smem:[#allocation27_spill]] }
 0x46c   : > { %s1686_s20 = sand.u32 1, %s3568_s30  }
 0x46d   : > { %p3570_p1 = scmp.ne.s32.totalorder %s3569_s22, 0  ;;  %s1687_s14 = scalar_lea.sflag [#allocation5], %s1686_s20 }
 0x46f   : > { %p2083_p10 = pnand %p3571_p4, %p3570_p1 }
 0x471   : > { %p2084_p7 = pneg %p2083_p10 }
 0x473   : > { %2546 = dma.done.wait (%p2084_p7), %s1687_s14, 2048  }
 0x474   : > { %2548 = vsyncadd (%p2084_p7), %s1687_s14, 4294965248  ;;  %s3572_s15 = sadd.s32 4294967294, %s2571_s26  }
 0x475   : > { %s1695_s2 = sand.u32 1, %s3572_s15  }
 0x476   : > { %s1696_s19 = scalar_lea.sflag [#allocation13], %s1695_s2 }
 0x477   : > { %2550 = dma.done.wait (%p2084_p7), %s1696_s19, 4096  }
 0x478   : > { %2552 = vsyncadd (%p2084_p7), %s1696_s19, 4294963200  ;;  %s1714_s0 = scalar_lea.sflag [#allocation16], %s1695_s2 }
 0x479   : > { %2554 = dma.done.wait (%p2084_p7), %s1714_s0, 4096  }
 0x47a   : > { %2556 = vsyncadd (%p2084_p7), %s1714_s0, 4294963200  ;;  %s3573_s26 = sld [smem:[#allocation28_spill]]  ;;  %s3576_s23 = smov %s2563_s24 }
 0x47b   : > { %s3574_s5 = sld [smem:[#allocation26_spill]] }
 0x47c   : > { %s3575_s25 = sld [smem:[#allocation29_spill]] }
 0x480   : > { %p38_p5 = scmp.ge.s32.totalorder %s3573_s26, 4  }
 0x481   : > { %s3577_s24 = smov %s3574_s5 }
 0x482   :  { %40 = sbr.rel (!%p38_p5) target bundleno = 17 (0x11), region = 182 }
 0x487   :  { %1728 = vsyncpa [#allocation4], 1 }
 0x488   :  { %1730 = vsyncpa [#allocation4 + $0x1], 1 }
 0x489   :  { %1731 = vsyncpa [#allocation7], 1 }
 0x48a   :  { %1733 = vsyncpa [#allocation7 + $0x1], 1 }
 0x48b   :  { %1734 = vsyncpa [#allocation10], 1 }
 0x48c   :  { %1735 = vsyncpa [#allocation5], 1 }
 0x48d   :  { %1737 = vsyncpa [#allocation5 + $0x1], 1 }
 0x48e   :  { %1738 = vsyncpa [#allocation13], 1 }
 0x48f   :  { %1740 = vsyncpa [#allocation13 + $0x1], 1 }
 0x490   :  { %1741 = vsyncpa [#allocation16], 1 }
 0x491   :  { %1743 = vsyncpa [#allocation16 + $0x1], 1 }

</bundles_post_ra>
